<compile_context>
chip_gen: v7x
topology: tpu7x:2x2x1
jax: 0.10.0
libtpu: 0.0.40
codegen_flags: <defaults>
</compile_context>

<pallas_src>
import functools

import jax
import jax.numpy as jnp
from jax.experimental import pallas as pl
from jax.experimental.pallas import tpu as pltpu


# ----------------------------------------------------------------------------
# Shared helpers
# ----------------------------------------------------------------------------
def _group_sum_matrix(c_out, out_channels, dtype):
    """(C_out, C_out) 0/1 matrix: 1 where i//out_channels == j//out_channels."""
    grp = jnp.arange(c_out) // out_channels
    return (grp[:, None] == grp[None, :]).astype(dtype)


def _vmem_cap_bytes():
    """Generation-aware VMEM ceiling with ~8 MiB of headroom for the compiler."""
    phys = 64 * 1024 * 1024                      # conservative default (v7x TC)
    try:
        info = pltpu.get_tpu_info()
        cap = int(getattr(info, "vmem_capacity_bytes", 0))
        if cap > 0:
            phys = cap
    except Exception:
        pass
    return phys - (8 << 20)


# ----------------------------------------------------------------------------
# Primary path: direct conv, lane-packed patch built in VMEM, one big-K matmul
# ----------------------------------------------------------------------------
def _direct_conv_kernel(x_ref, w_ref, b_ref, g_ref, o_ref, *,
                        k, w_stride, hw_stride, rows):
    # x_ref: (1, rows, C_in)      bf16, one batch item, channels-last voxels
    # w_ref: (k^3*C_in, C_out)    bf16, resident, (kd, kh, kw, c) row order
    # b_ref: (1, C_out)           f32,  resident
    # g_ref: (C_out, C_out)       bf16, resident 0/1 group-sum matrix
    # o_ref: (1, rows, C_out)     bf16  (invalid rows cropped by the wrapper)
    x = x_ref[0].astype(jnp.float32)                       # (rows, C_in)

    def expand(t, stride):
        # Tap j reads row r + j*stride (wrap-around only lands in rows that are
        # cropped later); concat along lanes so later levels are lane-dense.
        parts = [t] + [pltpu.roll(t, rows - j * stride, 0) for j in range(1, k)]
        return jnp.concatenate(parts, axis=-1)

    # lane order after the three levels: (kd, kh, kw, c) — matches w_ref rows.
    patch = expand(expand(expand(x, 1), w_stride), hw_stride)
    y = jnp.dot(patch.astype(jnp.bfloat16), w_ref[...],
                preferred_element_type=jnp.float32) + b_ref[...]
    # Grouped squared norm on the bf16 MXU path (g is 0/1 -> exact in bf16),
    # f32 accumulation; sqrt + reciprocal on the EUP.
    sn = jnp.dot((y * y).astype(jnp.bfloat16), g_ref[...],
                 preferred_element_type=jnp.float32)
    o_ref[0] = (y * jnp.sqrt(sn) * pl.reciprocal(1.0 + sn, approx=True)
                ).astype(o_ref.dtype)


def _forward_direct(x, weight, bias, num_capsules, out_channels, kernel_size):
    B, C_in, D, H, W = x.shape
    k = kernel_size
    c_out = num_capsules * out_channels
    Do, Ho, Wo = D - k + 1, H - k + 1, W - k + 1
    R = D * H * W
    rows = ((R + 7) // 8) * 8                      # sublane-aligned row count
    K = k ** 3 * C_in

    # channels-last, flattened voxels, bf16 for DMA + MXU.
    x_cl = jnp.transpose(x, (0, 2, 3, 4, 1)).reshape(B, R, C_in)
    x_cl = jnp.pad(x_cl, ((0, 0), (0, rows - R), (0, 0))).astype(jnp.bfloat16)

    # (k^3*C_in, C_out) weights in (kd, kh, kw, c) row order (matches patch lanes).
    w_flat = jnp.transpose(weight, (2, 3, 4, 1, 0)).reshape(K, c_out)
    w_flat = w_flat.astype(jnp.bfloat16)
    b2 = bias.reshape(1, c_out).astype(jnp.float32)
    gmat = _group_sum_matrix(c_out, out_channels, jnp.bfloat16)

    flops = 2 * B * rows * c_out * (K + c_out)
    bytes_accessed = (B * rows * C_in * 2 + K * c_out * 2 + c_out * 4 +
                      c_out * c_out * 2 + B * rows * c_out * 2)
    # VMEM budget: double-buffered x/out blocks, resident w/b/g, plus the
    # in-kernel f32 patch-building intermediates.
    inter = rows * (4 * C_in + 6 * K + 4 * K // 3 + 4 * K // 9 + 14 * c_out)
    need = (2 * (rows * C_in * 2 + rows * c_out * 2) +
            2 * (K * c_out * 2 + c_out * c_out * 2 + c_out * 4) + inter)
    vmem_limit = int(min(max(2 * need, 32 << 20), _vmem_cap_bytes()))

    kernel = functools.partial(_direct_conv_kernel, k=k, w_stride=W,
                               hw_stride=H * W, rows=rows)
    out = pl.pallas_call(
        kernel,
        out_shape=jax.ShapeDtypeStruct((B, rows, c_out), jnp.bfloat16),
        grid=(B,),
        in_specs=[
            pl.BlockSpec((1, rows, C_in), lambda b: (b, 0, 0)),
            pl.BlockSpec((K, c_out), lambda b: (0, 0)),
            pl.BlockSpec((1, c_out), lambda b: (0, 0)),
            pl.BlockSpec((c_out, c_out), lambda b: (0, 0)),
        ],
        out_specs=pl.BlockSpec((1, rows, c_out), lambda b: (b, 0, 0)),
        compiler_params=pltpu.CompilerParams(
            dimension_semantics=("parallel",),
            vmem_limit_bytes=vmem_limit),
        cost_estimate=pl.CostEstimate(
            flops=flops, transcendentals=2 * B * rows * c_out,
            bytes_accessed=bytes_accessed),
    )(x_cl, w_flat, b2, gmat)

    # Crop padded / out-of-range voxels, back to the PyTorch output layout.
    out = out[:, :R, :].reshape(B, D, H, W, c_out)[:, :Do, :Ho, :Wo, :]
    out = out.reshape(B, Do, Ho, Wo, num_capsules, out_channels)
    out = jnp.transpose(out, (0, 4, 1, 2, 3, 5))
    out = out.reshape(B, num_capsules * Do * Ho * Wo, out_channels)
    return out.astype(jnp.float32)


# ----------------------------------------------------------------------------
# Fallback path: previously-verified im2col matmul (lowering-safety net only)
# ----------------------------------------------------------------------------
def _im2col_kernel(p_ref, w_ref, b_ref, g_ref, o_ref):
    y = jnp.dot(p_ref[...], w_ref[...], preferred_element_type=jnp.float32)
    y = y + b_ref[...]
    sn = jnp.dot((y * y).astype(jnp.bfloat16), g_ref[...],
                 preferred_element_type=jnp.float32)
    o_ref[...] = (y * jnp.sqrt(sn) * pl.reciprocal(1.0 + sn, approx=True)
                  ).astype(o_ref.dtype)


def _im2col_3d(x, k):
    B, C, D, H, W = x.shape
    Do, Ho, Wo = D - k + 1, H - k + 1, W - k + 1
    cols = []
    for kd in range(k):
        for kh in range(k):
            for kw in range(k):
                cols.append(x[:, :, kd:kd + Do, kh:kh + Ho, kw:kw + Wo])
    p = jnp.stack(cols, axis=2)                    # (B, C, k^3, Do, Ho, Wo)
    p = jnp.transpose(p, (0, 3, 4, 5, 1, 2))       # (B, Do, Ho, Wo, C, k^3)
    return p.reshape(B * Do * Ho * Wo, C * k ** 3), (Do, Ho, Wo)


def _forward_im2col(x, weight, bias, num_capsules, out_channels, kernel_size):
    # TODO(synk): fallback only -- still materializes the k^3 patch matrix in
    # HBM; the direct-conv path above removes that traffic entirely.
    B = x.shape[0]
    k = kernel_size
    c_out = num_capsules * out_channels
    patches, (Do, Ho, Wo) = _im2col_3d(x, k)
    M, K = patches.shape
    K_pad = ((K + 127) // 128) * 128               # pad contraction to 128-mult
    tm = min(1024, max(8, 8 * ((M + 15) // 16)))   # larger tiles, >=2 grid steps
    M_pad = ((M + tm - 1) // tm) * tm

    patches = jnp.pad(patches, ((0, M_pad - M), (0, K_pad - K)))
    patches = patches.astype(jnp.bfloat16)
    w2 = jnp.pad(weight.reshape(c_out, K).T, ((0, K_pad - K), (0, 0)))
    w2 = w2.astype(jnp.bfloat16)
    b2 = bias.reshape(1, c_out).astype(jnp.float32)
    gmat = _group_sum_matrix(c_out, out_channels, jnp.bfloat16)

    flops = 2 * M_pad * c_out * (K_pad + c_out)
    bytes_accessed = (M_pad * K_pad * 2 + K_pad * c_out * 2 +
                      c_out * c_out * 2 + c_out * 4 + M_pad * c_out * 2)
    out = pl.pallas_call(
        _im2col_kernel,
        out_shape=jax.ShapeDtypeStruct((M_pad, c_out), jnp.bfloat16),
        grid=(M_pad // tm,),
        in_specs=[
            pl.BlockSpec((tm, K_pad), lambda i: (i, 0)),
            pl.BlockSpec((K_pad, c_out), lambda i: (0, 0)),
            pl.BlockSpec((1, c_out), lambda i: (0, 0)),
            pl.BlockSpec((c_out, c_out), lambda i: (0, 0)),
        ],
        out_specs=pl.BlockSpec((tm, c_out), lambda i: (i, 0)),
        compiler_params=pltpu.CompilerParams(
            dimension_semantics=("parallel",),
            vmem_limit_bytes=int(min(48 << 20, _vmem_cap_bytes()))),
        cost_estimate=pl.CostEstimate(
            flops=flops, transcendentals=2 * M_pad * c_out,
            bytes_accessed=bytes_accessed),
    )(patches, w2, b2, gmat)

    out = out[:M].astype(jnp.float32)
    out = out.reshape(B, Do, Ho, Wo, num_capsules, out_channels)
    out = jnp.transpose(out, (0, 4, 1, 2, 3, 5))
    return out.reshape(B, num_capsules * Do * Ho * Wo, out_channels)


_forward_direct_jit = jax.jit(_forward_direct, static_argnums=(3, 4, 5))
_forward_im2col_jit = jax.jit(_forward_im2col, static_argnums=(3, 4, 5))


def primary_caps_forward(x, weight, bias, *, num_capsules, out_channels,
                         kernel_size):
    """x: (B, C_in, D, H, W), weight: (C_out, C_in, k, k, k), bias: (C_out,).

    Returns (B, num_capsules * D'^3, out_channels), matching the PyTorch module.
    No host sync here (async dispatch); callers block when they need the value.
    """
    try:
        return _forward_direct_jit(x, weight, bias, num_capsules, out_channels,
                                   kernel_size)
    except Exception:  # toolchain-dependent lowering: fall back to im2col path
        return _forward_im2col_jit(x, weight, bias, num_capsules, out_channels,
                                   kernel_size)


# ----------------------------------------------------------------------------
# Pure-JAX reference (matches the PyTorch module) for verification
# ----------------------------------------------------------------------------
def _reference(x, weight, bias, num_capsules, out_channels):
    y = jax.lax.conv_general_dilated(
        x, weight, window_strides=(1, 1, 1), padding="VALID",
        dimension_numbers=("NCDHW", "OIDHW", "NCDHW"))
    y = y + bias[None, :, None, None, None]
    B = x.shape[0]
    Do, Ho, Wo = y.shape[2:]
    u = y.reshape(B, num_capsules, out_channels, Do, Ho, Wo)
    u = jnp.transpose(u, (0, 1, 3, 4, 5, 2))
    u = u.reshape(B, num_capsules * Do * Ho * Wo, out_channels)
    sn = jnp.sum(u * u, axis=-1, keepdims=True)
    return u * jnp.sqrt(sn) / (1.0 + sn)


if __name__ == "__main__":
    # Small, module-consistent shapes: PyTorch defaults for num_capsules /
    # out_channels (32 / 4 -> C_out = 128, lane dense), shrunk C_in / spatial.
    B, C_IN, D = 2, 16, 6
    NUM_CAPS, OUT_CH, KSZ = 32, 4, 3
    C_OUT = NUM_CAPS * OUT_CH

    key = jax.random.PRNGKey(0)
    kx, kw_, kb = jax.random.split(key, 3)
    x = jax.random.normal(kx, (B, C_IN, D, D, D), dtype=jnp.float32)
    fan_in = C_IN * KSZ ** 3
    bound = 1.0 / (fan_in ** 0.5)
    weight = jax.random.uniform(kw_, (C_OUT, C_IN, KSZ, KSZ, KSZ),
                                minval=-bound, maxval=bound, dtype=jnp.float32)
    bias = jax.random.uniform(kb, (C_OUT,), minval=-bound, maxval=bound,
                              dtype=jnp.float32)

    out = primary_caps_forward(x, weight, bias, num_capsules=NUM_CAPS,
                               out_channels=OUT_CH, kernel_size=KSZ)
    out = jax.block_until_ready(out)

    ref = _reference(x, weight, bias, NUM_CAPS, OUT_CH)
    assert out.shape == (B, NUM_CAPS * (D - KSZ + 1) ** 3, OUT_CH), out.shape
    err = float(jnp.max(jnp.abs(out - ref)))
    # bf16 MXU inputs + bf16 group-sum/output + approx reciprocal -> loose tol.
    assert jnp.allclose(out, ref, atol=4e-2, rtol=4e-2), err
    print("KERNEL_OK")
</pallas_src>

<mosaic_0001>
module attributes {stable_mosaic.version = 11 : i64} {
  func.func @_direct_conv_kernel(%arg0: i32, %arg1: memref<1x216x16xbf16, #tpu.memory_space<vmem>>, %arg2: memref<432x128xbf16, #tpu.memory_space<vmem>>, %arg3: memref<1x128xf32, #tpu.memory_space<vmem>>, %arg4: memref<128x128xbf16, #tpu.memory_space<vmem>>, %arg5: memref<1x216x128xbf16, #tpu.memory_space<vmem>>) attributes {dimension_semantics = [#tpu.dimension_semantics<parallel>], iteration_bounds = array<i64: 2>, scalar_prefetch = 0 : i64, scratch_operands = 0 : i64, tpu.core_type = #tpu.core_type<tc>, window_params = [{transform_indices = @transform_0, window_bounds = array<i64: 1, 216, 16>}, {pipeline_mode = #tpu.pipeline_mode<synchronous>, transform_indices = @transform_1, window_bounds = array<i64: 432, 128>}, {pipeline_mode = #tpu.pipeline_mode<synchronous>, transform_indices = @transform_2, window_bounds = array<i64: 1, 128>}, {pipeline_mode = #tpu.pipeline_mode<synchronous>, transform_indices = @transform_3, window_bounds = array<i64: 128, 128>}, {transform_indices = @transform_4, window_bounds = array<i64: 1, 216, 128>}]} {
    %c0 = arith.constant 0 : index
    %c0_0 = arith.constant 0 : index
    %c0_1 = arith.constant 0 : index
    %0 = vector.load %arg1[%c0, %c0_0, %c0_1] : memref<1x216x16xbf16, #tpu.memory_space<vmem>>, vector<1x216x16xbf16>
    %1 = vector.shape_cast %0 : vector<1x216x16xbf16> to vector<216x16xbf16>
    %2 = arith.extf %1 : vector<216x16xbf16> to vector<216x16xf32>
    %c215_i32 = arith.constant 215 : i32
    %3 = tpu.dynamic_rotate %2 by %c215_i32 dim 0 : vector<216x16xf32>, i32 -> vector<216x16xf32>
    %c214_i32 = arith.constant 214 : i32
    %4 = tpu.dynamic_rotate %2 by %c214_i32 dim 0 : vector<216x16xf32>, i32 -> vector<216x16xf32>
    %5 = tpu.concatenate %2, %3, %4 in 1 : vector<216x16xf32>, vector<216x16xf32>, vector<216x16xf32> -> vector<216x48xf32>
    %c210_i32 = arith.constant 210 : i32
    %6 = tpu.dynamic_rotate %5 by %c210_i32 dim 0 : vector<216x48xf32>, i32 -> vector<216x48xf32>
    %c204_i32 = arith.constant 204 : i32
    %7 = tpu.dynamic_rotate %5 by %c204_i32 dim 0 : vector<216x48xf32>, i32 -> vector<216x48xf32>
    %8 = tpu.concatenate %5, %6, %7 in 1 : vector<216x48xf32>, vector<216x48xf32>, vector<216x48xf32> -> vector<216x144xf32>
    %c180_i32 = arith.constant 180 : i32
    %9 = tpu.dynamic_rotate %8 by %c180_i32 dim 0 : vector<216x144xf32>, i32 -> vector<216x144xf32>
    %c144_i32 = arith.constant 144 : i32
    %10 = tpu.dynamic_rotate %8 by %c144_i32 dim 0 : vector<216x144xf32>, i32 -> vector<216x144xf32>
    %11 = tpu.concatenate %8, %9, %10 in 1 : vector<216x144xf32>, vector<216x144xf32>, vector<216x144xf32> -> vector<216x432xf32>
    %12 = arith.truncf %11 : vector<216x432xf32> to vector<216x432xbf16>
    %c0_2 = arith.constant 0 : index
    %c0_3 = arith.constant 0 : index
    %13 = vector.load %arg2[%c0_2, %c0_3] : memref<432x128xbf16, #tpu.memory_space<vmem>>, vector<432x128xbf16>
    %cst = arith.constant dense<0.000000e+00> : vector<216x128xf32>
    %14 = tpu.matmul %12, %13, %cst {dimension_numbers = #tpu.dot_dimension_numbers<[1], [0], [0], [1], [0, 0, 1, 1], [], []>} : vector<216x432xbf16>, vector<432x128xbf16>, vector<216x128xf32> -> vector<216x128xf32>
    %c0_4 = arith.constant 0 : index
    %c0_5 = arith.constant 0 : index
    %15 = vector.load %arg3[%c0_4, %c0_5] : memref<1x128xf32, #tpu.memory_space<vmem>>, vector<1x128xf32>
    %16 = vector.broadcast %15 : vector<1x128xf32> to vector<216x128xf32>
    %17 = arith.addf %14, %16 : vector<216x128xf32>
    %18 = arith.mulf %17, %17 : vector<216x128xf32>
    %19 = arith.truncf %18 : vector<216x128xf32> to vector<216x128xbf16>
    %c0_6 = arith.constant 0 : index
    %c0_7 = arith.constant 0 : index
    %20 = vector.load %arg4[%c0_6, %c0_7] : memref<128x128xbf16, #tpu.memory_space<vmem>>, vector<128x128xbf16>
    %cst_8 = arith.constant dense<0.000000e+00> : vector<216x128xf32>
    %21 = tpu.matmul %19, %20, %cst_8 {dimension_numbers = #tpu.dot_dimension_numbers<[1], [0], [0], [1], [0, 0, 1, 1], [], []>} : vector<216x128xbf16>, vector<128x128xbf16>, vector<216x128xf32> -> vector<216x128xf32>
    %22 = math.sqrt %21 : vector<216x128xf32>
    %23 = arith.mulf %17, %22 : vector<216x128xf32>
    %cst_9 = arith.constant 1.000000e+00 : f32
    %24 = vector.broadcast %cst_9 : f32 to vector<216x128xf32>
    %25 = arith.addf %24, %21 : vector<216x128xf32>
    %26 = tpu.reciprocal %25 {approx = true} : vector<216x128xf32> -> vector<216x128xf32>
    %27 = arith.mulf %23, %26 : vector<216x128xf32>
    %28 = arith.truncf %27 : vector<216x128xf32> to vector<216x128xbf16>
    %c0_10 = arith.constant 0 : index
    %c0_11 = arith.constant 0 : index
    %c0_12 = arith.constant 0 : index
    %29 = vector.load %arg5[%c0_10, %c0_11, %c0_12] : memref<1x216x128xbf16, #tpu.memory_space<vmem>>, vector<1x216x128xbf16>
    %30 = vector.shape_cast %29 : vector<1x216x128xbf16> to vector<216x128xbf16>
    %31 = vector.shape_cast %28 : vector<216x128xbf16> to vector<1x216x128xbf16>
    tpu.vector_store %arg5[%c0_10, %c0_11, %c0_12], %31 {strides = array<i32>} : memref<1x216x128xbf16, #tpu.memory_space<vmem>>, vector<1x216x128xbf16>,
    return
  }
  func.func @transform_0(%arg0: i32) -> (i32, i32, i32) {
    %c0_i32 = arith.constant 0 : i32
    %c0_i32_0 = arith.constant 0 : i32
    %c0_i32_1 = arith.constant 0 : i32
    return %arg0, %c0_i32, %c0_i32_0 : i32, i32, i32
  }
  func.func @transform_1(%arg0: i32) -> (i32, i32) {
    %c0_i32 = arith.constant 0 : i32
    %c0_i32_0 = arith.constant 0 : i32
    %c0_i32_1 = arith.constant 0 : i32
    return %c0_i32, %c0_i32_0 : i32, i32
  }
  func.func @transform_2(%arg0: i32) -> (i32, i32) {
    %c0_i32 = arith.constant 0 : i32
    %c0_i32_0 = arith.constant 0 : i32
    %c0_i32_1 = arith.constant 0 : i32
    return %c0_i32, %c0_i32_0 : i32, i32
  }
  func.func @transform_3(%arg0: i32) -> (i32, i32) {
    %c0_i32 = arith.constant 0 : i32
    %c0_i32_0 = arith.constant 0 : i32
    %c0_i32_1 = arith.constant 0 : i32
    return %c0_i32, %c0_i32_0 : i32, i32
  }
  func.func @transform_4(%arg0: i32) -> (i32, i32, i32) {
    %c0_i32 = arith.constant 0 : i32
    %c0_i32_0 = arith.constant 0 : i32
    %c0_i32_1 = arith.constant 0 : i32
    return %arg0, %c0_i32, %c0_i32_0 : i32, i32, i32
  }
}

module attributes {stable_mosaic.version = 11 : i64} {
  func.func @_im2col_kernel(%arg0: i32, %arg1: memref<64x512xbf16, #tpu.memory_space<vmem>>, %arg2: memref<512x128xbf16, #tpu.memory_space<vmem>>, %arg3: memref<1x128xf32, #tpu.memory_space<vmem>>, %arg4: memref<128x128xbf16, #tpu.memory_space<vmem>>, %arg5: memref<64x128xbf16, #tpu.memory_space<vmem>>) attributes {dimension_semantics = [#tpu.dimension_semantics<parallel>], iteration_bounds = array<i64: 2>, scalar_prefetch = 0 : i64, scratch_operands = 0 : i64, tpu.core_type = #tpu.core_type<tc>, window_params = [{transform_indices = @transform_0, window_bounds = array<i64: 64, 512>}, {pipeline_mode = #tpu.pipeline_mode<synchronous>, transform_indices = @transform_1, window_bounds = array<i64: 512, 128>}, {pipeline_mode = #tpu.pipeline_mode<synchronous>, transform_indices = @transform_2, window_bounds = array<i64: 1, 128>}, {pipeline_mode = #tpu.pipeline_mode<synchronous>, transform_indices = @transform_3, window_bounds = array<i64: 128, 128>}, {transform_indices = @transform_4, window_bounds = array<i64: 64, 128>}]} {
    %c0 = arith.constant 0 : index
    %c0_0 = arith.constant 0 : index
    %0 = vector.load %arg1[%c0, %c0_0] : memref<64x512xbf16, #tpu.memory_space<vmem>>, vector<64x512xbf16>
    %c0_1 = arith.constant 0 : index
    %c0_2 = arith.constant 0 : index
    %1 = vector.load %arg2[%c0_1, %c0_2] : memref<512x128xbf16, #tpu.memory_space<vmem>>, vector<512x128xbf16>
    %cst = arith.constant dense<0.000000e+00> : vector<64x128xf32>
    %2 = tpu.matmul %0, %1, %cst {dimension_numbers = #tpu.dot_dimension_numbers<[1], [0], [0], [1], [0, 0, 1, 1], [], []>} : vector<64x512xbf16>, vector<512x128xbf16>, vector<64x128xf32> -> vector<64x128xf32>
    %c0_3 = arith.constant 0 : index
    %c0_4 = arith.constant 0 : index
    %3 = vector.load %arg3[%c0_3, %c0_4] : memref<1x128xf32, #tpu.memory_space<vmem>>, vector<1x128xf32>
    %4 = vector.broadcast %3 : vector<1x128xf32> to vector<64x128xf32>
    %5 = arith.addf %2, %4 : vector<64x128xf32>
    %6 = arith.mulf %5, %5 : vector<64x128xf32>
    %7 = arith.truncf %6 : vector<64x128xf32> to vector<64x128xbf16>
    %c0_5 = arith.constant 0 : index
    %c0_6 = arith.constant 0 : index
    %8 = vector.load %arg4[%c0_5, %c0_6] : memref<128x128xbf16, #tpu.memory_space<vmem>>, vector<128x128xbf16>
    %cst_7 = arith.constant dense<0.000000e+00> : vector<64x128xf32>
    %9 = tpu.matmul %7, %8, %cst_7 {dimension_numbers = #tpu.dot_dimension_numbers<[1], [0], [0], [1], [0, 0, 1, 1], [], []>} : vector<64x128xbf16>, vector<128x128xbf16>, vector<64x128xf32> -> vector<64x128xf32>
    %10 = math.sqrt %9 : vector<64x128xf32>
    %11 = arith.mulf %5, %10 : vector<64x128xf32>
    %cst_8 = arith.constant 1.000000e+00 : f32
    %12 = vector.broadcast %cst_8 : f32 to vector<64x128xf32>
    %13 = arith.addf %12, %9 : vector<64x128xf32>
    %14 = tpu.reciprocal %13 {approx = true} : vector<64x128xf32> -> vector<64x128xf32>
    %15 = arith.mulf %11, %14 : vector<64x128xf32>
    %16 = arith.truncf %15 : vector<64x128xf32> to vector<64x128xbf16>
    %c0_9 = arith.constant 0 : index
    %c0_10 = arith.constant 0 : index
    %17 = vector.load %arg5[%c0_9, %c0_10] : memref<64x128xbf16, #tpu.memory_space<vmem>>, vector<64x128xbf16>
    tpu.vector_store %arg5[%c0_9, %c0_10], %16 {strides = array<i32>} : memref<64x128xbf16, #tpu.memory_space<vmem>>, vector<64x128xbf16>,
    return
  }
  func.func @transform_0(%arg0: i32) -> (i32, i32) {
    %c0_i32 = arith.constant 0 : i32
    %c0_i32_0 = arith.constant 0 : i32
    return %arg0, %c0_i32 : i32, i32
  }
  func.func @transform_1(%arg0: i32) -> (i32, i32) {
    %c0_i32 = arith.constant 0 : i32
    %c0_i32_0 = arith.constant 0 : i32
    %c0_i32_1 = arith.constant 0 : i32
    return %c0_i32, %c0_i32_0 : i32, i32
  }
  func.func @transform_2(%arg0: i32) -> (i32, i32) {
    %c0_i32 = arith.constant 0 : i32
    %c0_i32_0 = arith.constant 0 : i32
    %c0_i32_1 = arith.constant 0 : i32
    return %c0_i32, %c0_i32_0 : i32, i32
  }
  func.func @transform_3(%arg0: i32) -> (i32, i32) {
    %c0_i32 = arith.constant 0 : i32
    %c0_i32_0 = arith.constant 0 : i32
    %c0_i32_1 = arith.constant 0 : i32
    return %c0_i32, %c0_i32_0 : i32, i32
  }
  func.func @transform_4(%arg0: i32) -> (i32, i32) {
    %c0_i32 = arith.constant 0 : i32
    %c0_i32_0 = arith.constant 0 : i32
    return %arg0, %c0_i32 : i32, i32
  }
}

</mosaic_0001>

<bundles_post_ra>
// kernel: _forward_direct.1
= control target key start
LH: loop header
LB: loop body
LE: loop exit
PB: predicated region body
PF: predicated region fallthrough
CT: control target
= control target key end

     0   :  { %9 = vsyncpa [#allocation3], 0  ;;  %s4218_s15 = smov 0   ;;  %s6280_s0 = inlined_call_operand.vmem [shape: bf16[2,216,16], index: 0, kind: input, shape index: {}]   ;;  %s6281_s1 = inlined_call_operand.vmem [shape: bf16[432,128], index: 1, kind: input, shape index: {}]   ;;  %s6282_s2 = inlined_call_operand.hbm [shape: f32[1,128], index: 2, kind: input, shape index: {}]   ;;  %s6283_s3 = inlined_call_operand.vmem [shape: bf16[128,128], index: 3, kind: input, shape index: {}]   ;;  %s6284_s4 = inlined_call_operand.vmem [shape: bf16[2,216,128], index: 4, kind: output, shape index: {}]  }
   0x1 LB: > { %s4224_s16 = sadd.s32 4294967295, %s4185_s15   ;;  %p3013_p0 = scmp.ge.s32.totalorder %s4185_s15, 1  ;;  %s4185_s15 = sphi %s4218_s15, %s15_s15  }
   0x2   : > { %p135_p1 = scmp.lt.s32.totalorder %s4185_s15, 3  ;;  %p6285_p3 = scmp.eq.s32.totalorder %s4224_s16, 0 }
   0x3   : > { %s4187_s18 = smov [#allocation2]   ;;  %s4147_s23 = scalar_lea.hbm %s6282_s2, 16 }
   0x4   : > { %p4228_p2 = pnand %p3013_p0, %p135_p1  ;;  %s151_s19 = sshll.u32 %s4187_s18, 4  ;;  %s152_s19 = int_to_ptr.vmem [resolvable:$true] %s151_s19 }
   0x5   : > { %p4148_p6 = scmp.ne.s32.totalorder %s6282_s2, %s4147_s23  ;;  %p4154_p10 = scmp.lt.u32.totalorder %s4147_s23, %s6282_s2 }
   0x6   : > { %s6328_s17 = scalar_select %p4228_p2, 1, 0 }
   0x7   : > { %p3454_p4 = pneg %p4228_p2 }
   0x9   : > { %p4237_p5 = pnand %p6285_p3, %p3454_p4 }
   0xb   : > { %p4149_p7 = pneg %p4237_p5 }
   0xd   : > { %p4150_p8 = pnand %p4149_p7, %p4148_p6 }
   0xf   : > { %p4151_p9 = pneg %p4150_p8 }
  0x11   : > { %p4156_p11 = pnand %p4154_p10, %p4151_p9 }
  0x13   : > { %4159 = shalt.err (!%p4156_p11)
}
  0x14   : > { %s4160_s28 = scalar_lea.vmem %s152_s19, 16  ;;  %s4167_s29 = scalar_lea.vmem %s152_s19, 32 }
  0x15   : > { %p4161_p12 = scmp.ne.s32.totalorder %s152_s19, %s4160_s28  ;;  %p4168_p1 = scmp.lt.s32.totalorder %s152_s19, %s152_s19 }
  0x16   : > { %p4169_p4 = scmp.lt.s32.totalorder %s4167_s29, %s4160_s28 }
  0x17   : > { %p4163_p13 = pnand %p4161_p12, %p4149_p7 }
  0x18   : > { %p4170_p3 = por %p4169_p4, %p4168_p1 }
  0x19   : > { %p4164_p0 = pneg %p4163_p13 }
  0x1b   : > { %p4171_p2 = pnand %p4170_p3, %p4164_p0 }
  0x1d   : > { %4174 = shalt.err (!%p4171_p2)
}
  0x1e   : > { %3457 = dma.hbm_to_vmem [thread:$0]  (!%p4237_p5), %s6282_s2, 16, %s152_s19, [#allocation3]  }
  0x1f   : > { %p6330_p6 = scmp.ne.s32.totalorder %s6328_s17, 0 }
  0x21   : > { %175 = sbr.rel (%p6330_p6) target bundleno = 1197 (0x4ad), region = 36 }
  0x28   : > { %p6331_p8 = scmp.eq.s32.totalorder %s4224_s16, 0 }
  0x2a   : > { %4180 = dma.done.wait (%p6331_p8), [#allocation3], 16   ;;  %p6332_p7 = pmov %p6331_p8 }
  0x2b   : > { %p201_p9 = scmp.lt.s32.totalorder %s4224_s16, 1  ;;  %v293_v0 = vlaneseq  ;;  %s4188_s10 = smov 16   ;;  %vm594_vm2 = vcmask 130048   ;;  %vm622_vm3 = vcmask 261120   ;;  %vm976_vm6 = vcmask 392192  }
  0x2c   : > { %4182 = vsyncadd (%p6332_p7), [#allocation3], 4294967280  ;;  %s4189_s11 = smov 32   ;;  %s4190_s12 = smov 48   ;;  %vm1004_vm7 = vcmask 785408  }
  0x2d   : > { %s6425_s16 = smov (!%p201_p9, %s4224_s16), 1  ;;  %v4267_v1 = vshrl.u32 %v293_v0, 7  ;;  %s4191_s13 = smov 96  }
  0x2e   : > { %s3449_s6 = smul.u32 108, %s6425_s16 }
  0x2f   : > { %vm295_vm0 = vcmp.lt.s32.totalorder %v4267_v1, 7  ;;  %vm350_vm1 = vcmp.lt.s32.totalorder %v4267_v1, 6  ;;  %vm732_vm4 = vcmp.lt.s32.totalorder %v4267_v1, 4  ;;  %vm677_vm5 = vcmp.lt.s32.totalorder %v4267_v1, 2 }
  0x30   : > { %s4275_s9 = scalar_lea.vmem %s6280_s0, %s3449_s6  ;;  %s6160_s27 = scalar_lea.vmem %s6284_s4, %s3449_s6 }
  0x31   : > { %v3246_v2 = vld [vmem:[%s4275_s9 + $0x20] sm:$0xff]   ;;  %v3247_v3 = vld [vmem:[%s4275_s9 + $0x28] sm:$0xff]   ;;  %v3244_v4 = vld [vmem:[%s4275_s9 + $0x10] sm:$0xff]  }
  0x32   : > { %v4282_v5 = vunpack.c.l.bf16 %v3246_v2  ;;  %v4284_v6 = vunpack.c.h.bf16 %v3246_v2  ;;  %v4286_v7 = vunpack.c.l.bf16 %v3247_v3  ;;  %v4288_v8 = vunpack.c.h.bf16 %v3247_v3  ;;  %v3245_v9 = vld [vmem:[%s4275_s9 + $0x18] sm:$0xff]   ;;  %v3248_v30 = vld [vmem:[%s4275_s9 + $0x30] sm:$0xff]   ;;  %v3250_v60 = vld [vmem:[%s4275_s9 + $0x40] sm:$0xff]  }
  0x33   : > { %v4291_v10 = vunpack.c.l.bf16 %v3244_v4  ;;  %v4293_v11 = vunpack.c.h.bf16 %v3244_v4  ;;  %v4295_v12 = vunpack.c.l.bf16 %v3245_v9  ;;  %v4297_v13 = vunpack.c.h.bf16 %v3245_v9  ;;  %v3249_v35 = vld [vmem:[%s4275_s9 + $0x38] sm:$0xff]   ;;  %v3251_v0 = vld [vmem:[%s4275_s9 + $0x48] sm:$0xff]  }
  0x34   : > { %v274_v14 = vrot.slane %v4282_v5, 1  ;;  %v275_v15 = vrot.slane %v4284_v6, 1  ;;  %v276_v16 = vrot.slane %v4286_v7, 1  ;;  %v331_v17 = vrot.slane %v4282_v5, 2 }
  0x35   : > { %v270_v18 = vrot.slane %v4291_v10, 1  ;;  %v271_v19 = vrot.slane %v4293_v11, 1  ;;  %v272_v20 = vrot.slane %v4295_v12, 1  ;;  %v327_v21 = vrot.slane %v4291_v10, 2 }
  0x36   : > { %v312_v22 = vsel %vm295_vm0, %v275_v15, %v276_v16  ;;  %v313_v23 = vsel %vm295_vm0, %v274_v14, %v275_v15  ;;  %v328_v24 = vrot.slane %v4293_v11, 2  ;;  %v329_v25 = vrot.slane %v4295_v12, 2 }
  0x37   : > { %v3484_v26 = vpack.i.bf16 %v312_v22, %v313_v23  ;;  %v316_v27 = vsel %vm295_vm0, %v271_v19, %v272_v20  ;;  %v317_v28 = vsel %vm295_vm0, %v270_v18, %v271_v19  ;;  %v273_v29 = vrot.slane %v4297_v13, 1 }
  0x38   : > { %v3474_v31 = vpack.i.bf16 %v316_v27, %v317_v28  ;;  %v371_v32 = vsel %vm350_vm1, %v328_v24, %v329_v25  ;;  %v372_v33 = vsel %vm350_vm1, %v327_v21, %v328_v24  ;;  %v332_v34 = vrot.slane %v4284_v6, 2 }
  0x39   : > { %3485 = vrot.lane.b32.xlu1 %v3484_v26, %s4188_s10  ;;  %v3489_v36 = vpack.i.bf16 %v371_v32, %v372_v33  ;;  %v314_v37 = vsel %vm295_vm0, %v273_v29, %v274_v14  ;;  %v315_v38 = vsel %vm295_vm0, %v272_v20, %v273_v29  ;;  %v333_v39 = vrot.slane %v4286_v7, 2  ;;  %v3252_v26 = vld [vmem:[%s4275_s9 + $0x50] sm:$0xff]   ;;  %v3253_v29 = vld [vmem:[%s4275_s9 + $0x58] sm:$0xff]  }
  0x3a   : > { %3475 = vrot.lane.b32.xlu0 %v3474_v31, %s4188_s10  ;;  %v3479_v40 = vpack.i.bf16 %v314_v37, %v315_v38  ;;  %v368_v41 = vsel %vm350_vm1, %v331_v17, %v332_v34  ;;  %v330_v42 = vrot.slane %v4297_v13, 2  ;;  %v4339_v43 = vunpack.c.l.bf16 %v3248_v30 }
  0x3b   : > { %v367_v44 = vsel %vm350_vm1, %v332_v34, %v333_v39  ;;  %v4343_v45 = vunpack.c.h.bf16 %v3248_v30  ;;  %v4345_v46 = vunpack.c.l.bf16 %v3249_v35  ;;  %v277_v47 = vrot.slane %v4288_v8, 1 }
  0x3c   : > { %v3499_v48 = vpack.i.bf16 %v367_v44, %v368_v41  ;;  %v369_v49 = vsel %vm350_vm1, %v330_v42, %v331_v17  ;;  %v370_v50 = vsel %vm350_vm1, %v329_v25, %v330_v42  ;;  %v278_v51 = vrot.slane %v4339_v43, 1 }
  0x3d   : > { %3490 = vrot.lane.b32.xlu1 %v3489_v36, %s4189_s11  ;;  %v3494_v52 = vpack.i.bf16 %v369_v49, %v370_v50  ;;  %v279_v53 = vrot.slane %v4343_v45, 1  ;;  %v280_v54 = vrot.slane %v4345_v46, 1  ;;  %v311_v55 = vsel %vm295_vm0, %v276_v16, %v277_v47 }
  0x3e   : > { %3480 = vrot.lane.b32.xlu0 %v3479_v40, %s4188_s10  ;;  %v310_v56 = vsel %vm295_vm0, %v277_v47, %v278_v51  ;;  %v335_v57 = vrot.slane %v4339_v43, 2  ;;  %v336_v58 = vrot.slane %v4343_v45, 2  ;;  %v337_v59 = vrot.slane %v4345_v46, 2  ;;  %v3254_v47 = vld [vmem:[%s4275_s9 + $0x60] sm:$0xff]  }
  0x3f   : > { %v308_v61 = vsel %vm295_vm0, %v279_v53, %v280_v54  ;;  %v309_v62 = vsel %vm295_vm0, %v278_v51, %v279_v53  ;;  %v334_v63 = vrot.slane %v4288_v8, 2  ;;  %v3504_v2 = vpack.i.bf16 %v310_v56, %v311_v55 }
  0x40   : > { %v4371_v3 = vunpack.c.h.bf16 %v3249_v35  ;;  %v3509_v4 = vpack.i.bf16 %v308_v61, %v309_v62  ;;  %v363_v9 = vsel %vm350_vm1, %v336_v58, %v337_v59  ;;  %v364_v14 = vsel %vm350_vm1, %v335_v57, %v336_v58 }
  0x41   : > { %3500 = vrot.lane.b32.xlu1 %v3499_v48, %s4189_s11  ;;  %v4378_v15 = vunpack.c.l.bf16 %v3250_v60  ;;  %v365_v16 = vsel %vm350_vm1, %v334_v63, %v335_v57  ;;  %v4385_v20 = vunpack.c.h.bf16 %v3250_v60  ;;  %v366_v22 = vsel %vm350_vm1, %v333_v39, %v334_v63  ;;  %v3127_v63 = vld [vmem:[%s4275_s9] sm:$0xff]  }
  0x42   : > { %3495 = vrot.lane.b32.xlu0 %v3494_v52, %s4189_s11  ;;  %v338_v17 = vrot.slane %v4371_v3, 2  ;;  %v281_v19 = vrot.slane %v4371_v3, 1  ;;  %v4391_v25 = vunpack.c.l.bf16 %v3251_v0  ;;  %v3519_v27 = vpack.i.bf16 %v363_v9, %v364_v14 }
  0x43   : > { %v339_v23 = vrot.slane %v4378_v15, 2  ;;  %v282_v24 = vrot.slane %v4378_v15, 1  ;;  %v4394_v28 = vunpack.c.h.bf16 %v3251_v0  ;;  %v340_v32 = vrot.slane %v4385_v20, 2 }
  0x44   : > { %v362_v31 = vsel %vm350_vm1, %v337_v59, %v338_v17  ;;  %v341_v33 = vrot.slane %v4391_v25, 2  ;;  %v3514_v34 = vpack.i.bf16 %v365_v16, %v366_v22  ;;  %v307_v36 = vsel %vm295_vm0, %v280_v54, %v281_v19 }
  0x45   : > { %3510 = vrot.lane.b32.xlu1 %v3509_v4, %s4188_s10  ;;  %v361_v30 = vsel %vm350_vm1, %v338_v17, %v339_v23  ;;  %v306_v35 = vsel %vm295_vm0, %v281_v19, %v282_v24  ;;  %v283_v37 = vrot.slane %v4385_v20, 1  ;;  %v284_v38 = vrot.slane %v4391_v25, 1 }
  0x46   : > { %3505 = vrot.lane.b32.xlu0 %v3504_v2, %s4188_s10  ;;  %v4411_v39 = vunpack.c.l.bf16 %v3252_v26  ;;  %v3529_v40 = vpack.i.bf16 %v361_v30, %v362_v31  ;;  %v342_v41 = vrot.slane %v4394_v28, 2  ;;  %v285_v42 = vrot.slane %v4394_v28, 1 }
  0x47   : > { %v4415_v44 = vunpack.c.h.bf16 %v3252_v26  ;;  %v3524_v48 = vpack.i.bf16 %v306_v35, %v307_v36  ;;  %v4421_v51 = vunpack.c.l.bf16 %v3253_v29  ;;  %v359_v52 = vsel %vm350_vm1, %v340_v32, %v341_v33  ;;  %v238_v35 = vld [vmem:[%s4275_s9 + $0x68] sm:$0xf] }
  0x48   : > { %v343_v49 = vrot.slane %v4411_v39, 2  ;;  %v286_v50 = vrot.slane %v4411_v39, 1  ;;  %v360_v53 = vsel %vm350_vm1, %v339_v23, %v340_v32  ;;  %v304_v56 = vsel %vm295_vm0, %v283_v37, %v284_v38  ;;  %v3243_v32 = vld [vmem:[%s4275_s9 + $0x8] sm:$0xff]  }
  0x49   : > { %3520 = vrot.lane.b32.xlu1 %v3519_v27, %s4189_s11  ;;  %v344_v54 = vrot.slane %v4415_v44, 2  ;;  %v287_v55 = vrot.slane %v4415_v44, 1  ;;  %v305_v57 = vsel %vm295_vm0, %v282_v24, %v283_v37  ;;  %v345_v58 = vrot.slane %v4421_v51, 2 }
  0x4a   : > { %3515 = vrot.lane.b32.xlu0 %v3514_v34, %s4189_s11  ;;  %v288_v59 = vrot.slane %v4421_v51, 1  ;;  %v4436_v60 = vunpack.c.h.bf16 %v3253_v29  ;;  %v3539_v61 = vpack.i.bf16 %v359_v52, %v360_v53  ;;  %v4439_v62 = vunpack.c.l.bf16 %v3254_v47 }
  0x4b   : > { %v3534_v0 = vpack.i.bf16 %v304_v56, %v305_v57  ;;  %v357_v2 = vsel %vm350_vm1, %v342_v41, %v343_v49  ;;  %v358_v4 = vsel %vm350_vm1, %v341_v33, %v342_v41  ;;  %v303_v9 = vsel %vm295_vm0, %v284_v38, %v285_v42 }
  0x4c   : > { %v302_v14 = vsel %vm295_vm0, %v285_v42, %v286_v50  ;;  %v355_v16 = vsel %vm350_vm1, %v344_v54, %v345_v58  ;;  %v356_v17 = vsel %vm350_vm1, %v343_v49, %v344_v54  ;;  %v301_v19 = vsel %vm295_vm0, %v286_v50, %v287_v55 }
  0x4d   : > { %3530 = vrot.lane.b32.xlu1 %v3529_v40, %s4189_s11  ;;  %v300_v22 = vsel %vm295_vm0, %v287_v55, %v288_v59  ;;  %v346_v23 = vrot.slane %v4436_v60, 2  ;;  %v289_v24 = vrot.slane %v4436_v60, 1  ;;  %v4461_v26 = vunpack.c.l.bf16 %v3127_v63 }
  0x4e   : > { %3525 = vrot.lane.b32.xlu0 %v3524_v48, %s4188_s10  ;;  %v3549_v27 = vpack.i.bf16 %v357_v2, %v358_v4  ;;  %v347_v29 = vrot.slane %v4439_v62, 2  ;;  %v290_v30 = vrot.slane %v4439_v62, 1  ;;  %v4466_v31 = vunpack.c.h.bf16 %v3127_v63 }
  0x4f   : > { %v3544_v33 = vpack.i.bf16 %v302_v14, %v303_v9  ;;  %v4470_v34 = vunpack.c.h.bf16 %v3254_v47  ;;  %v3559_v36 = vpack.i.bf16 %v355_v16, %v356_v17  ;;  %v3554_v37 = vpack.i.bf16 %v300_v22, %v301_v19 }
  0x50   : > { %v354_v38 = vsel %vm350_vm1, %v345_v58, %v346_v23  ;;  %v299_v40 = vsel %vm295_vm0, %v288_v59, %v289_v24  ;;  %v323_v41 = vrot.slane %v4461_v26, 2  ;;  %v266_v42 = vrot.slane %v4461_v26, 1 }
  0x51   : > { %3540 = vrot.lane.b32.xlu1 %v3539_v61, %s4189_s11  ;;  %v353_v48 = vsel %vm350_vm1, %v346_v23, %v347_v29  ;;  %v298_v47 = vsel %vm295_vm0, %v289_v24, %v290_v30  ;;  %v324_v49 = vrot.slane %v4466_v31, 2  ;;  %v267_v50 = vrot.slane %v4466_v31, 1 }
  0x52   : > { %3535 = vrot.lane.b32.xlu0 %v3534_v0, %s4188_s10  ;;  %v348_v52 = vrot.slane %v4470_v34, 2  ;;  %v291_v53 = vrot.slane %v4470_v34, 1  ;;  %v4489_v54 = vunpack.c.h.bf16 %v3243_v32  ;;  %v4491_v55 = vunpack.c.l.bf16 %v238_v35 }
  0x53   : > { %v4493_v56 = vunpack.c.l.bf16 %v3243_v32  ;;  %v3569_v57 = vpack.i.bf16 %v353_v48, %v354_v38  ;;  %v3564_v58 = vpack.i.bf16 %v298_v47, %v299_v40  ;;  %v376_v59 = vsel %vm350_vm1, %v323_v41, %v324_v49 }
  0x54   : > { %v321_v61 = vsel %vm295_vm0, %v266_v42, %v267_v50  ;;  %v352_v63 = vsel %vm350_vm1, %v347_v29, %v348_v52  ;;  %v297_v0 = vsel %vm295_vm0, %v290_v30, %v291_v53  ;;  %v269_v2 = vrot.slane %v4489_v54, 1 }
  0x55   : > { %3550 = vrot.lane.b32.xlu1 %v3549_v27, %s4189_s11  ;;  %v292_v4 = vrot.slane %v4491_v55, 1  ;;  %v268_v9 = vrot.slane %v4493_v56, 1  ;;  %v3579_v14 = vpack.i.bf16 %v376_v59, %v352_v63  ;;  %v3574_v16 = vpack.i.bf16 %v321_v61, %v297_v0 }
  0x56   : > { %3545 = vrot.lane.b32.xlu0 %v3544_v33, %s4188_s10  ;;  %v318_v19 = vsel %vm295_vm0, %v269_v2, %v270_v18  ;;  %v326_v22 = vrot.slane %v4489_v54, 2  ;;  %v349_v23 = vrot.slane %v4491_v55, 2  ;;  %v325_v29 = vrot.slane %v4493_v56, 2 }
  0x57   : > { %v296_v17 = vsel %vm295_vm0, %v291_v53, %v292_v4  ;;  %v319_v24 = vsel %vm295_vm0, %v268_v9, %v269_v2  ;;  %v320_v27 = vsel %vm295_vm0, %v267_v50, %v268_v9 }
  0x58   : > { %v3589_v30 = vpack.i.bf16 %v296_v17, %v318_v19  ;;  %v3584_v32 = vpack.i.bf16 %v319_v24, %v320_v27  ;;  %v351_v18 = vsel %vm350_vm1, %v348_v52, %v349_v23  ;;  %v373_v33 = vsel %vm350_vm1, %v326_v22, %v327_v21 }
  0x59   : > { %3560 = vrot.lane.b32.xlu1 %v3559_v36, %s4189_s11  ;;  %v374_v35 = vsel %vm350_vm1, %v325_v29, %v326_v22  ;;  %v375_v36 = vsel %vm350_vm1, %v324_v49, %v325_v29  ;;  %v377_v40 = vsel %vm350_vm1, %v349_v23, %v323_v41 }
  0x5a   : > { %3555 = vrot.lane.b32.xlu0 %v3554_v37, %s4188_s10  ;;  %v3599_v37 = vpack.i.bf16 %v351_v18, %v373_v33  ;;  %v3594_v38 = vpack.i.bf16 %v374_v35, %v375_v36 }
  0x5d   : > { %3570 = vrot.lane.b32.xlu1 %v3569_v57, %s4189_s11 }
  0x5e   : > { %3565 = vrot.lane.b32.xlu0 %v3564_v58, %s4188_s10 }
  0x61   : > { %3580 = vrot.lane.b32.xlu1 %v3579_v14, %s4189_s11 }
  0x62   : > { %3575 = vrot.lane.b32.xlu0 %v3574_v16, %s4188_s10 }
  0x65   : > { %3590 = vrot.lane.b32.xlu1 %v3589_v30, %s4188_s10 }
  0x66   : > { %3585 = vrot.lane.b32.xlu0 %v3584_v32, %s4188_s10 }
  0x69   : > { %3600 = vrot.lane.b32.xlu1 %v3599_v37, %s4189_s11 }
  0x6a   : > { %3595 = vrot.lane.b32.xlu0 %v3594_v38, %s4189_s11 }
  0x6d   : > { %565 = vrot.lane.b32.xlu1 %v377_v40, %s4189_s11 }
  0xab   : > { %v3486_v21 = vpop.permute.xlu1 %3485 }
  0xac   : > { %v3476_v48 = vpop.permute.xlu0 %3475  ;;  %v3488_v52 = vunpack.i.h.bf16 %v3486_v21  ;;  %v3487_v53 = vunpack.i.l.bf16 %v3486_v21 }
  0xad   : > { %v3478_v47 = vunpack.i.h.bf16 %v3476_v48  ;;  %v3477_v50 = vunpack.i.l.bf16 %v3476_v48 }
  0xae   : > { %v603_v17 = vsel %vm594_vm2, %v4282_v5, %v3487_v53 }
  0xaf   : > { %v3491_v49 = vpop.permute.xlu1 %3490  ;;  %v600_v61 = vsel %vm594_vm2, %v4293_v11, %v3478_v47  ;;  %v599_v41 = vsel %vm594_vm2, %v4291_v10, %v3477_v50  ;;  %v604_v10 = vsel %vm594_vm2, %v4284_v6, %v3488_v52 }
  0xb0   : > { %v3493_v57 = vunpack.i.h.bf16 %v3491_v49  ;;  %v3492_v58 = vunpack.i.l.bf16 %v3491_v49  ;;  %v3481_v59 = vpop.permute.xlu0 %3480 }
  0xb1   : > { %v3483_v63 = vunpack.i.h.bf16 %v3481_v59  ;;  %v3482_v0 = vunpack.i.l.bf16 %v3481_v59 }
  0xb2   : > { %v4551_v2 = vsel %vm622_vm3, %v599_v41, %v3492_v58  ;;  %v4554_v9 = vsel %vm622_vm3, %v600_v61, %v3493_v57 }
  0xb3   : > { %v3501_v14 = vpop.permute.xlu1 %3500  ;;  %v654_v16 = vrot.slane %v4551_v2, 6  ;;  %v655_v11 = vrot.slane %v4554_v9, 6  ;;  %v602_v24 = vsel %vm594_vm2, %v4297_v13, %v3483_v63  ;;  %v601_v27 = vsel %vm594_vm2, %v4295_v12, %v3482_v0 }
  0xb4   : > { %v3503_v19 = vunpack.i.h.bf16 %v3501_v14  ;;  %v3502_v22 = vunpack.i.l.bf16 %v3501_v14  ;;  %v3496_v23 = vpop.permute.xlu0 %3495  ;;  %v710_v6 = vrot.slane %v4554_v9, 4 }
  0xb5   : > { %v3498_v29 = vunpack.i.h.bf16 %v3496_v23  ;;  %v3497_v30 = vunpack.i.l.bf16 %v3496_v23  ;;  %v699_v5 = vsel %vm677_vm5, %v654_v16, %v655_v11 }
  0xb6   : > { %v4569_v32 = vsel %vm622_vm3, %v604_v10, %v3503_v19  ;;  %v4572_v18 = vsel %vm622_vm3, %v603_v17, %v3502_v22 }
  0xb7   : > { %v4580_v13 = vsel %vm622_vm3, %v601_v27, %v3497_v30  ;;  %v4583_v12 = vsel %vm622_vm3, %v602_v24, %v3498_v29  ;;  %v3511_v33 = vpop.permute.xlu1 %3510  ;;  %v658_v35 = vrot.slane %v4572_v18, 6  ;;  %v713_v36 = vrot.slane %v4572_v18, 4 }
  0xb8   : > { %v3513_v37 = vunpack.i.h.bf16 %v3511_v33  ;;  %v3512_v38 = vunpack.i.l.bf16 %v3511_v33  ;;  %v3506_v40 = vpop.permute.xlu0 %3505  ;;  %v656_v21 = vrot.slane %v4580_v13, 6  ;;  %v657_v48 = vrot.slane %v4583_v12, 6 }
  0xb9   : > { %v3508_v47 = vunpack.i.h.bf16 %v3506_v40  ;;  %v3507_v50 = vunpack.i.l.bf16 %v3506_v40  ;;  %v712_v49 = vrot.slane %v4583_v12, 4  ;;  %v714_v52 = vrot.slane %v4569_v32, 4 }
  0xba   : > { %v608_v53 = vsel %vm594_vm2, %v4343_v45, %v3513_v37  ;;  %v607_v57 = vsel %vm594_vm2, %v4339_v43, %v3512_v38  ;;  %v696_v58 = vsel %vm677_vm5, %v657_v48, %v658_v35  ;;  %v697_v59 = vsel %vm677_vm5, %v656_v21, %v657_v48 }
  0xbb   : > { %v606_v61 = vsel %vm594_vm2, %v4288_v8, %v3508_v47  ;;  %v605_v41 = vsel %vm594_vm2, %v4286_v7, %v3507_v50  ;;  %v3521_v63 = vpop.permute.xlu1 %3520  ;;  %v3609_v0 = vpack.i.bf16 %v696_v58, %v697_v59  ;;  %v698_v45 = vsel %vm677_vm5, %v655_v11, %v656_v21 }
  0xbc   : > { %v3523_v43 = vunpack.i.h.bf16 %v3521_v63  ;;  %v3522_v14 = vunpack.i.l.bf16 %v3521_v63  ;;  %v3516_v10 = vpop.permute.xlu0 %3515  ;;  %v3604_v17 = vpack.i.bf16 %v698_v45, %v699_v5  ;;  %v750_v19 = vsel %vm732_vm4, %v713_v36, %v714_v52 }
  0xbd   : > { %v3518_v22 = vunpack.i.h.bf16 %v3516_v10  ;;  %v3517_v23 = vunpack.i.l.bf16 %v3516_v10  ;;  %3610 = vrot.lane.b32.xlu1 %v3609_v0, %s4190_s12  ;;  %v751_v7 = vsel %vm732_vm4, %v712_v49, %v713_v36  ;;  %v711_v8 = vrot.slane %v4580_v13, 4 }
  0xbe   : > { %v4616_v11 = vsel %vm622_vm3, %v607_v57, %v3522_v14  ;;  %v4619_v24 = vsel %vm622_vm3, %v608_v53, %v3523_v43  ;;  %3605 = vrot.lane.b32.xlu0 %v3604_v17, %s4190_s12  ;;  %v3619_v27 = vpack.i.bf16 %v750_v19, %v751_v7 }
  0xbf   : > { %v4623_v29 = vsel %vm622_vm3, %v605_v41, %v3517_v23  ;;  %v4626_v30 = vsel %vm622_vm3, %v606_v61, %v3518_v22  ;;  %v3531_v5 = vpop.permute.xlu1 %3530  ;;  %v752_v33 = vsel %vm732_vm4, %v711_v8, %v712_v49  ;;  %v753_v36 = vsel %vm732_vm4, %v710_v6, %v711_v8 }
  0xc0   : > { %v3533_v37 = vunpack.i.h.bf16 %v3531_v5  ;;  %v3532_v38 = vunpack.i.l.bf16 %v3531_v5  ;;  %v3526_v40 = vpop.permute.xlu0 %3525  ;;  %v3614_v21 = vpack.i.bf16 %v752_v33, %v753_v36  ;;  %v660_v48 = vrot.slane %v4623_v29, 6 }
  0xc1   : > { %v3528_v47 = vunpack.i.h.bf16 %v3526_v40  ;;  %v3527_v50 = vunpack.i.l.bf16 %v3526_v40  ;;  %3620 = vrot.lane.b32.xlu1 %v3619_v27, %s4191_s13  ;;  %v661_v53 = vrot.slane %v4626_v30, 6  ;;  %v662_v49 = vrot.slane %v4616_v11, 6 }
  0xc2   : > { %3615 = vrot.lane.b32.xlu0 %v3614_v21, %s4191_s13  ;;  %v716_v57 = vrot.slane %v4626_v30, 4  ;;  %v717_v58 = vrot.slane %v4616_v11, 4  ;;  %v718_v59 = vrot.slane %v4619_v24, 4  ;;  %v659_v61 = vrot.slane %v4569_v32, 6 }
  0xc3   : > { %v610_v41 = vsel %vm594_vm2, %v4371_v3, %v3528_v47  ;;  %v609_v63 = vsel %vm594_vm2, %v4345_v46, %v3527_v50  ;;  %v3541_v0 = vpop.permute.xlu1 %3540  ;;  %v692_v45 = vsel %vm677_vm5, %v661_v53, %v662_v49  ;;  %v693_v43 = vsel %vm677_vm5, %v660_v48, %v661_v53 }
  0xc4   : > { %v4654_v14 = vsel %vm622_vm3, %v610_v41, %v3533_v37  ;;  %v4657_v10 = vsel %vm622_vm3, %v609_v63, %v3532_v38  ;;  %v3543_v17 = vunpack.i.h.bf16 %v3541_v0  ;;  %v3542_v3 = vunpack.i.l.bf16 %v3541_v0  ;;  %v3536_v19 = vpop.permute.xlu0 %3535 }
  0xc5   : > { %v3538_v22 = vunpack.i.h.bf16 %v3536_v19  ;;  %v3537_v46 = vunpack.i.l.bf16 %v3536_v19  ;;  %v3634_v23 = vpack.i.bf16 %v692_v45, %v693_v43  ;;  %v746_v7 = vsel %vm732_vm4, %v717_v58, %v718_v59 }
  0xc6   : > { %v747_v8 = vsel %vm732_vm4, %v716_v57, %v717_v58  ;;  %v719_v27 = vrot.slane %v4657_v10, 4  ;;  %v720_v5 = vrot.slane %v4654_v14, 4  ;;  %v4669_v33 = vsel %vm677_vm5, %v659_v61, %v660_v48 }
  0xc7   : > { %v612_v36 = vsel %vm594_vm2, %v4385_v20, %v3538_v22  ;;  %v611_v37 = vsel %vm594_vm2, %v4378_v15, %v3537_v46  ;;  %3635 = vrot.lane.b32.xlu1 %v3634_v23, %s4190_s12  ;;  %v3551_v38 = vpop.permute.xlu1 %3550  ;;  %v3644_v40 = vpack.i.bf16 %v746_v7, %v747_v8  ;;  %v4680_v21 = vsel %vm677_vm5, %v658_v35, %v659_v61 }
  0xc8   : > { %v4683_v47 = vsel %vm622_vm3, %v612_v36, %v3543_v17  ;;  %v4686_v48 = vsel %vm622_vm3, %v611_v37, %v3542_v3  ;;  %v3553_v20 = vunpack.i.h.bf16 %v3551_v38  ;;  %v3552_v50 = vunpack.i.l.bf16 %v3551_v38  ;;  %v3546_v53 = vpop.permute.xlu0 %3545 }
  0xc9   : > { %v3548_v15 = vunpack.i.h.bf16 %v3546_v53  ;;  %v3547_v58 = vunpack.i.l.bf16 %v3546_v53  ;;  %v744_v41 = vsel %vm732_vm4, %v719_v27, %v720_v5  ;;  %v745_v63 = vsel %vm732_vm4, %v718_v59, %v719_v27 }
  0xca   : > { %v721_v35 = vrot.slane %v4686_v48, 4  ;;  %v722_v61 = vrot.slane %v4683_v47, 4  ;;  %v3629_v0 = vpack.i.bf16 %v4669_v33, %v4680_v21  ;;  %v3654_v3 = vpack.i.bf16 %v744_v41, %v745_v63 }
  0xcb   : > { %v614_v45 = vsel %vm594_vm2, %v4394_v28, %v3548_v15  ;;  %v613_v43 = vsel %vm594_vm2, %v4391_v25, %v3547_v58  ;;  %3645 = vrot.lane.b32.xlu1 %v3644_v40, %s4191_s13  ;;  %v3561_v17 = vpop.permute.xlu1 %3560  ;;  %v715_v19 = vrot.slane %v4623_v29, 4 }
  0xcc   : > { %v4703_v59 = vsel %vm622_vm3, %v614_v45, %v3553_v20  ;;  %v4706_v22 = vsel %vm622_vm3, %v613_v43, %v3552_v50  ;;  %v3563_v46 = vunpack.i.h.bf16 %v3561_v17  ;;  %v3562_v23 = vunpack.i.l.bf16 %v3561_v17  ;;  %v3556_v7 = vpop.permute.xlu0 %3555 }
  0xcd   : > { %v3558_v8 = vunpack.i.h.bf16 %v3556_v7  ;;  %v3557_v28 = vunpack.i.l.bf16 %v3556_v7  ;;  %v742_v25 = vsel %vm732_vm4, %v721_v35, %v722_v61  ;;  %v743_v27 = vsel %vm732_vm4, %v720_v5, %v721_v35 }
  0xce   : > { %v3664_v36 = vpack.i.bf16 %v742_v25, %v743_v27  ;;  %v723_v37 = vrot.slane %v4706_v22, 4  ;;  %v724_v38 = vrot.slane %v4703_v59, 4  ;;  %v4723_v53 = vsel %vm732_vm4, %v715_v19, %v716_v57 }
  0xcf   : > { %v616_v40 = vsel %vm594_vm2, %v4415_v44, %v3558_v8  ;;  %v615_v20 = vsel %vm594_vm2, %v4411_v39, %v3557_v28  ;;  %v3571_v50 = vpop.permute.xlu1 %3570  ;;  %3655 = vrot.lane.b32.xlu1 %v3654_v3, %s4191_s13  ;;  %v4729_v5 = vsel %vm732_vm4, %v714_v52, %v715_v19 }
  0xd0   : > { %v4732_v44 = vsel %vm622_vm3, %v616_v40, %v3563_v46  ;;  %v4735_v39 = vsel %vm622_vm3, %v615_v20, %v3562_v23  ;;  %v3573_v15 = vunpack.i.h.bf16 %v3571_v50  ;;  %v3572_v58 = vunpack.i.l.bf16 %v3571_v50  ;;  %v3566_v41 = vpop.permute.xlu0 %3565 }
  0xd1   : > { %v3568_v63 = vunpack.i.h.bf16 %v3566_v41  ;;  %v3567_v35 = vunpack.i.l.bf16 %v3566_v41  ;;  %v740_v57 = vsel %vm732_vm4, %v723_v37, %v724_v38  ;;  %v741_v45 = vsel %vm732_vm4, %v722_v61, %v723_v37 }
  0xd2   : > { %v725_v52 = vrot.slane %v4735_v39, 4  ;;  %v726_v43 = vrot.slane %v4732_v44, 4  ;;  %v3639_v17 = vpack.i.bf16 %v4723_v53, %v4729_v5  ;;  %v3674_v23 = vpack.i.bf16 %v740_v57, %v741_v45 }
  0xd3   : > { %v618_v3 = vsel %vm594_vm2, %v4436_v60, %v3568_v63  ;;  %v617_v19 = vsel %vm594_vm2, %v4421_v51, %v3567_v35  ;;  %v3581_v46 = vpop.permute.xlu1 %3580  ;;  %3665 = vrot.lane.b32.xlu1 %v3664_v36, %s4191_s13  ;;  %v669_v5 = vrot.slane %v4703_v59, 6 }
  0xd4   : > { %v4751_v7 = vsel %vm622_vm3, %v618_v3, %v3573_v15  ;;  %v4754_v61 = vsel %vm622_vm3, %v617_v19, %v3572_v58  ;;  %v3583_v8 = vunpack.i.h.bf16 %v3581_v46  ;;  %v3582_v28 = vunpack.i.l.bf16 %v3581_v46  ;;  %v3576_v25 = vpop.permute.xlu0 %3575 }
  0xd5   : > { %v3578_v27 = vunpack.i.h.bf16 %v3576_v25  ;;  %v3577_v37 = vunpack.i.l.bf16 %v3576_v25  ;;  %v738_v60 = vsel %vm732_vm4, %v725_v52, %v726_v43  ;;  %v739_v51 = vsel %vm732_vm4, %v724_v38, %v725_v52 }
  0xd6   : > { %v727_v36 = vrot.slane %v4754_v61, 4  ;;  %v728_v40 = vrot.slane %v4751_v7, 4  ;;  %v3684_v58 = vpack.i.bf16 %v738_v60, %v739_v51 }
  0xd7   : > { %v595_v20 = vsel %vm594_vm2, %v4461_v26, %v3578_v27  ;;  %v619_v50 = vsel %vm594_vm2, %v4439_v62, %v3577_v37  ;;  %v3591_v15 = vpop.permute.xlu1 %3590  ;;  %3675 = vrot.lane.b32.xlu1 %v3674_v23, %s4191_s13 }
  0xd8   : > { %v4768_v41 = vsel %vm622_vm3, %v595_v20, %v3583_v8  ;;  %v4771_v63 = vsel %vm622_vm3, %v619_v50, %v3582_v28  ;;  %v3593_v38 = vunpack.i.h.bf16 %v3591_v15  ;;  %v3592_v35 = vunpack.i.l.bf16 %v3591_v15  ;;  %v3586_v57 = vpop.permute.xlu0 %3585 }
  0xd9   : > { %v3588_v45 = vunpack.i.h.bf16 %v3586_v57  ;;  %v3587_v52 = vunpack.i.l.bf16 %v3586_v57  ;;  %v736_v3 = vsel %vm732_vm4, %v727_v36, %v728_v40  ;;  %v737_v62 = vsel %vm732_vm4, %v726_v43, %v727_v36 }
  0xda   : > { %v620_v19 = vsel %vm594_vm2, %v4470_v34, %v3593_v38  ;;  %v598_v46 = vsel %vm594_vm2, %v4489_v54, %v3592_v35  ;;  %v3694_v8 = vpack.i.bf16 %v736_v3, %v737_v62  ;;  %v729_v37 = vrot.slane %v4771_v63, 4 }
  0xdb   : > { %v3601_v23 = vpop.permute.xlu1 %3600  ;;  %3685 = vrot.lane.b32.xlu1 %v3684_v58, %s4191_s13  ;;  %v597_v60 = vsel %vm594_vm2, %v4493_v56, %v3588_v45  ;;  %v596_v43 = vsel %vm594_vm2, %v4466_v31, %v3587_v52  ;;  %v674_v45 = vrot.slane %v4771_v63, 6 }
  0xdc   : > { %v3603_v28 = vunpack.i.h.bf16 %v3601_v23  ;;  %v3602_v25 = vunpack.i.l.bf16 %v3601_v23  ;;  %v3596_v27 = vpop.permute.xlu0 %3595  ;;  %v735_v38 = vsel %vm732_vm4, %v728_v40, %v729_v37 }
  0xdd   : > { %v3598_v51 = vunpack.i.h.bf16 %v3596_v27  ;;  %v3597_v34 = vunpack.i.l.bf16 %v3596_v27 }
  0xde   : > { %v4788_v36 = vsel %vm622_vm3, %v598_v46, %v3602_v25  ;;  %v4791_v54 = vsel %vm622_vm3, %v620_v19, %v3603_v28 }
  0xdf   : > { %v6289_v20 = vrot.slane %v4791_v54, 4  ;;  %3695 = vrot.lane.b32.xlu1 %v3694_v8, %s4191_s13  ;;  %v4796_v50 = vsel %vm622_vm3, %v596_v43, %v3597_v34  ;;  %v4799_v56 = vsel %vm622_vm3, %v597_v60, %v3598_v51  ;;  %v708_v31 = vrot.slane %v4788_v36, 4  ;;  %v4853_v34 = vpop.permute.xlu1 %565 }
  0xe0   : > { %v6287_v15 = vrot.slane %v4796_v50, 4  ;;  %v707_v58 = vrot.slane %v4799_v56, 4  ;;  %v6288_v35 = vrot.slane %v4791_v54, 6  ;;  %v651_v57 = vrot.slane %v4796_v50, 6 }
  0xe1   : > { %v652_v52 = vrot.slane %v4799_v56, 6  ;;  %v734_v62 = vsel %vm732_vm4, %v729_v37, %v6289_v20  ;;  %v653_v19 = vrot.slane %v4788_v36, 6  ;;  %v673_v8 = vrot.slane %v4751_v7, 6 }
  0xe2   : > { %v757_v3 = vsel %vm732_vm4, %v6287_v15, %v707_v58  ;;  %v756_v40 = vsel %vm732_vm4, %v707_v58, %v708_v31  ;;  %v679_v25 = vsel %vm677_vm5, %v674_v45, %v6288_v35 }
  0xe3   : > { %v3704_v46 = vpack.i.bf16 %v757_v3, %v735_v38  ;;  %v3714_v23 = vpack.i.bf16 %v734_v62, %v756_v40  ;;  %v4829_v28 = vsel %vm677_vm5, %v651_v57, %v652_v52  ;;  %v701_v27 = vsel %vm677_vm5, %v652_v52, %v653_v19 }
  0xe4   : > { %v4841_v37 = vsel %vm677_vm5, %v673_v8, %v674_v45  ;;  %v4847_v60 = vsel %vm677_vm5, %v653_v19, %v654_v16  ;;  %v3719_v51 = vpack.i.bf16 %v701_v27, %v679_v25 }
  0xe5   : > { %3705 = vrot.lane.b32.xlu1 %v3704_v46, %s4191_s13  ;;  %v3709_v43 = vpack.i.bf16 %v4841_v37, %v4829_v28  ;;  %v4005_v28 = vld [vmem:[%s6281_s1 + $0x88] sm:$0xff]  }
  0xe6   : > { %v4010_v37 = vld [vmem:[%s6281_s1 + $0x48] sm:$0xff]  }
  0xe9   : > { %3715 = vrot.lane.b32.xlu1 %v3714_v23, %s4191_s13 }
  0xed   : > { %3720 = vrot.lane.b32.xlu1 %v3719_v51, %s4190_s12 }
 0x12f   : > { %v3611_v58 = vpop.permute.xlu1 %3610 }
 0x130   : > { %v3606_v38 = vpop.permute.xlu0 %3605  ;;  %v3612_v45 = vunpack.i.l.bf16 %v3611_v58  ;;  %v3613_v16 = vunpack.i.h.bf16 %v3611_v58 }
 0x131   : > { %v3608_v52 = vunpack.i.h.bf16 %v3606_v38  ;;  %v3607_v3 = vunpack.i.l.bf16 %v3606_v38 }
 0x132   : > { %v983_v46 = vsel %vm976_vm6, %v4580_v13, %v3612_v45 }
 0x133   : > { %v3621_v62 = vpop.permute.xlu1 %3620  ;;  %v982_v51 = vsel %vm976_vm6, %v4554_v9, %v3608_v52  ;;  %v981_v38 = vsel %vm976_vm6, %v4551_v2, %v3607_v3  ;;  %v984_v52 = vsel %vm976_vm6, %v4583_v12, %v3613_v16  ;;  %v322_v3 = vsel %vm295_vm0, %v292_v4, %v266_v42 }
 0x134   : > { %v4855_v40 = vunpack.i.l.bf16 %v3621_v62  ;;  %v3616_v19 = vpop.permute.xlu0 %3615  ;;  %v4859_v23 = vunpack.i.h.bf16 %v3621_v62 }
 0x135   : > { %v4861_v25 = vunpack.i.h.bf16 %v3616_v19  ;;  %v4863_v27 = vunpack.i.l.bf16 %v3616_v19 }
 0x136   : > { %v4871_v58 = vsel %vm1004_vm7, %v983_v46, %v4855_v40  ;;  %v4894_v46 = vsel %vm1004_vm7, %v984_v52, %v4859_v23  ;;  %v667_v52 = vrot.slane %v4683_v47, 6 }
 0x137   : > { %6333 = vst [vmem:[#allocation5_spill] sm:$0xff] %v4871_v58  ;;  %v4875_v15 = vsel %vm1004_vm7, %v981_v38, %v4863_v27  ;;  %v4879_v13 = vsel %vm1004_vm7, %v982_v51, %v4861_v25  ;;  %v6296_v45 = vrot.slane %v4871_v58, 4  ;;  %v1043_v9 = vrot.slane %v4861_v25, 4 }
 0x138   : > { %6334 = vst [vmem:[#allocation6_spill] sm:$0xff] %v4875_v15  ;;  %6335 = vst [vmem:[#allocation7_spill] sm:$0xff] %v4879_v13  ;;  %v6290_v62 = vrot.slane %v4875_v15, 4  ;;  %v1042_v19 = vrot.slane %v4879_v13, 4  ;;  %v6343_v15 = vrot.slane %v4863_v27, 4  ;;  %v3989_v1 = vpack.i.bf16 %v4859_v23, %v4894_v46 }
 0x139   : > { %v3636_v51 = vpop.permute.xlu1 %3635 }
 0x13a   : > { %v1128_v26 = vsel %vm732_vm4, %v6290_v62, %v1042_v19  ;;  %v3638_v12 = vunpack.i.h.bf16 %v3636_v51  ;;  %v3637_v16 = vunpack.i.l.bf16 %v3636_v51  ;;  %v4906_v4 = vsel %vm732_vm4, %v1042_v19, %v6296_v45 }
 0x13b   : > { %v3624_v42 = vpack.i.bf16 %v1128_v26, %v322_v3  ;;  %v663_v26 = vrot.slane %v4619_v24, 6  ;;  %v664_v62 = vrot.slane %v4657_v10, 6 }
 0x13c   : > { %v988_v51 = vsel %vm976_vm6, %v4626_v30, %v3638_v12  ;;  %v987_v3 = vsel %vm976_vm6, %v4623_v29, %v3637_v16  ;;  %v665_v16 = vrot.slane %v4654_v14, 6 }
 0x13d   : > { %v3646_v35 = vpop.permute.xlu1 %3645  ;;  %3625 = vrot.lane.b32.xlu0 %v3624_v42, %s4188_s10  ;;  %v690_v21 = vsel %vm677_vm5, %v663_v26, %v664_v62 }
 0x13e   : > { %v4911_v38 = vunpack.i.h.bf16 %v3646_v35  ;;  %v4913_v20 = vunpack.i.l.bf16 %v3646_v35  ;;  %v689_v12 = vsel %vm677_vm5, %v664_v62, %v665_v16 }
 0x140   : > { %v4921_v19 = vsel %vm1004_vm7, %v987_v3, %v4913_v20  ;;  %v4927_v42 = vsel %vm1004_vm7, %v988_v51, %v4911_v38  ;;  %v666_v51 = vrot.slane %v4686_v48, 6 }
 0x141   : > { %3630 = vrot.lane.b32.xlu0 %v3629_v0, %s4190_s12  ;;  %v3734_v29 = vpack.i.bf16 %v4913_v20, %v4921_v19  ;;  %v6292_v30 = vrot.slane %v4921_v19, 4  ;;  %v6291_v35 = vrot.slane %v4927_v42, 4  ;;  %v691_v0 = vsel %vm677_vm5, %v662_v49, %v663_v26 }
 0x142   : > { %v3649_v3 = vpack.i.bf16 %v690_v21, %v691_v0  ;;  %v668_v49 = vrot.slane %v4706_v22, 6  ;;  %v687_v53 = vsel %vm677_vm5, %v666_v51, %v667_v52 }
 0x143   : > { %3735 = vrot.lane.b32.xlu1 %v3734_v29, %s4189_s11  ;;  %v4946_v33 = vsel %vm732_vm4, %v6292_v30, %v6291_v35  ;;  %v688_v29 = vsel %vm677_vm5, %v665_v16, %v666_v51  ;;  %v672_v16 = vrot.slane %v4754_v61, 6  ;;  %v6295_v30 = vrot.slane %v4768_v41, 4 }
 0x144   : > { %v3659_v26 = vpack.i.bf16 %v688_v29, %v689_v12  ;;  %v686_v35 = vsel %vm677_vm5, %v667_v52, %v668_v49  ;;  %v685_v0 = vsel %vm677_vm5, %v668_v49, %v669_v5  ;;  %v671_v12 = vrot.slane %v4732_v44, 6 }
 0x145   : > { %3640 = vrot.lane.b32.xlu0 %v3639_v17, %s4191_s13  ;;  %v670_v17 = vrot.slane %v4735_v39, 6  ;;  %v3669_v62 = vpack.i.bf16 %v686_v35, %v687_v53  ;;  %v6293_v35 = vrot.slane %v4768_v41, 6  ;;  %v681_v49 = vsel %vm677_vm5, %v672_v16, %v673_v8  ;;  %v4004_v8 = vld [vmem:[%s6281_s1 + $0x80] sm:$0xff]  }
 0x146   : > { %v682_v51 = vsel %vm677_vm5, %v671_v12, %v672_v16  ;;  %v4009_v16 = vld [vmem:[%s6281_s1 + $0x98] sm:$0xff]  }
 0x147   : > { %v684_v21 = vsel %vm677_vm5, %v669_v5, %v670_v17  ;;  %v6297_v5 = vmov 0  }
 0x148   : > { %v3679_v52 = vpack.i.bf16 %v684_v21, %v685_v0  ;;  %2118 = vmatprep.subr.bf16.mxu1 %v6297_v5  ;;  %v4006_v21 = vld [vmem:[%s6281_s1 + $0x90] sm:$0xff]  }
 0x149   : > { %3650 = vrot.lane.b32.xlu0 %v3649_v3, %s4190_s12  ;;  %v683_v3 = vsel %vm677_vm5, %v670_v17, %v671_v12  ;;  %v4008_v17 = vld [vmem:[%s6281_s1] sm:$0xff]   ;;  %2119 = vmatpush1.bf16.msra.mxu1 %v4004_v8  ;;  %v4014_v0 = vld [vmem:[%s6281_s1 + $0x10] sm:$0xff]   ;;  %v4016_v12 = vld [vmem:[%s6281_s1 + $0x58] sm:$0xff]  }
 0x14a   : > { %v3689_v29 = vpack.i.bf16 %v682_v51, %v683_v3  ;;  %2120 = vmatprep.subr.bf16.mxu1 %v6297_v5  ;;  %v4017_v51 = vld [vmem:[%s6281_s1 + $0x18] sm:$0xff]   ;;  %v4012_v3 = vld [vmem:[%s6281_s1 + $0xa0] sm:$0xff]  }
 0x14d   : > { %3660 = vrot.lane.b32.xlu0 %v3659_v26, %s4190_s12  ;;  %v703_v26 = vsel %vm677_vm5, %v6293_v35, %v651_v57  ;;  %v4007_v57 = vld [vmem:[%s6281_s1 + $0x40] sm:$0xff]   ;;  %2121 = vmatpush1.bf16.msra.mxu1 %v4005_v28 }
 0x14e   : > { %v3699_v53 = vpack.i.bf16 %v703_v26, %v681_v49  ;;  %3267 = vmatprep.subr.bf16.mxu0 %v4007_v57  ;;  %2122 = vmatprep.subr.bf16.mxu1 %v6297_v5  ;;  %v4015_v49 = vld [vmem:[%s6281_s1 + $0xa8] sm:$0xff]   ;;  %v4018_v26 = vld [vmem:[%s6281_s1 + $0xb0] sm:$0xff]  }
 0x14f   : > { %3268 = vmatpush3.bf16.msra.mxu0 %v4008_v17 }
 0x150   : > { %3269 = vmatprep.subr.bf16.mxu0 %v4010_v37  ;;  %v4019_v37 = vld [vmem:[%s6281_s1 + $0x60] sm:$0xff]  }
 0x151   : > { %3670 = vrot.lane.b32.xlu0 %v3669_v62, %s4190_s12  ;;  %v4013_v62 = vld [vmem:[%s6281_s1 + $0x50] sm:$0xff]   ;;  %2123 = vmatpush1.bf16.msra.mxu1 %v4006_v21 }
 0x152   : > { %2124 = vmatprep.subr.bf16.mxu1 %v6297_v5 }
 0x155   : > { %3680 = vrot.lane.b32.xlu0 %v3679_v52, %s4190_s12  ;;  %v5039_v52 = vpop.permute.xlu1 %3655  ;;  %2125 = vmatpush1.bf16.msra.mxu1 %v4009_v16 }
 0x156   : > { %2126 = vmatprep.subr.bf16.mxu1 %v6297_v5 }
 0x159   : > { %3690 = vrot.lane.b32.xlu0 %v3689_v29, %s4190_s12  ;;  %v5049_v29 = vpop.permute.xlu1 %3665  ;;  %2127 = vmatpush1.bf16.msra.mxu1 %v4012_v3  ;;  %v4022_v3 = vld [vmem:[%s6281_s1 + $0x68] sm:$0xff]  }
 0x15a   : > { %2128 = vmatprep.subr.bf16.mxu1 %v6297_v5 }
 0x15d   : > { %3700 = vrot.lane.b32.xlu0 %v3699_v53, %s4190_s12  ;;  %2129 = vmatpush1.bf16.msra.mxu1 %v4015_v49  ;;  %v5058_v53 = vpop.permute.xlu1 %3675  ;;  %v4023_v49 = vld [vmem:[%s6281_s1 + $0x28] sm:$0xff]  }
 0x15e   : > { %2130 = vmatprep.subr.bf16.mxu1 %v6297_v5 }
 0x161   : > { %3710 = vrot.lane.b32.xlu0 %v3709_v43, %s4190_s12  ;;  %v4011_v43 = vld [vmem:[%s6281_s1 + $0x8] sm:$0xff]   ;;  %2131 = vmatpush1.bf16.msra.mxu1 %v4018_v26  ;;  %v5062_v8 = vpop.permute.xlu1 %3685  ;;  %v4024_v26 = vld [vmem:[%s6281_s1 + $0xc0] sm:$0xff]  }
 0x162   : > { %3270 = vmatpush3.bf16.msra.mxu0 %v4011_v43  ;;  %2132 = vmatprep.subr.bf16.mxu1 %v6297_v5  ;;  %v4020_v43 = vld [vmem:[%s6281_s1 + $0x20] sm:$0xff]  }
 0x163   : > { %3271 = vmatprep.subr.bf16.mxu0 %v4013_v62  ;;  %v4021_v62 = vld [vmem:[%s6281_s1 + $0xb8] sm:$0xff]  }
 0x165   : > { %v5064_v57 = vpop.permute.xlu1 %3695  ;;  %2133 = vmatpush1.bf16.msra.mxu1 %v4021_v62 }
 0x166   : > { %3272 = vmatpush3.bf16.msra.mxu0 %v4014_v0  ;;  %2134 = vmatprep.subr.bf16.mxu1 %v6297_v5 }
 0x167   : > { %3273 = vmatprep.subr.bf16.mxu0 %v4016_v12 }
 0x169   : > { %v5066_v17 = vpop.permute.xlu1 %3705  ;;  %2135 = vmatpush1.bf16.msra.mxu1 %v4024_v26 }
 0x16a   : > { %3274 = vmatpush3.bf16.msra.mxu0 %v4017_v51  ;;  %v5080_v21 = vunpack.i.h.bf16 %v5066_v17  ;;  %v709_v51 = vrot.slane %v4551_v2, 4  ;;  %2136 = vmatprep.subr.bf16.mxu1 %v6297_v5 }
 0x16b   : > { %3275 = vmatprep.subr.bf16.mxu0 %v4019_v37 }
 0x16c   : > { %v755_v35 = vsel %vm732_vm4, %v708_v31, %v709_v51 }
 0x16e   : > { %3276 = vmatpush3.bf16.msra.mxu0 %v4020_v43 }
 0x16f   : > { %3277 = vmatprep.subr.bf16.mxu0 %v4022_v3 }
 0x172   : > { %3278 = vmatpush3.bf16.msra.mxu0 %v4023_v49  ;;  %v4026_v49 = vld [vmem:[%s6281_s1 + $0x30] sm:$0xff]  }
 0x1af   : > { %v5068_v28 = vpop.permute.xlu0 %3625 }
 0x1b0   : > { %v6294_v0 = vunpack.i.h.bf16 %v5068_v28  ;;  %v3627_v12 = vunpack.i.l.bf16 %v5068_v28 }
 0x1b2   : > { %v621_v16 = vsel %vm594_vm2, %v4491_v55, %v3627_v12  ;;  %v5101_v55 = vsel %vm594_vm2, %v5080_v21, %v6294_v0 }
 0x1b3   : > { %v5105_v2 = vsel %vm622_vm3, %v621_v16, %v4853_v34  ;;  %v3631_v37 = vpop.permute.xlu0 %3630  ;;  %v754_v34 = vsel %vm732_vm4, %v709_v51, %v710_v6  ;;  %v4025_v51 = vld [vmem:[%s6281_s1 + $0x70] sm:$0xff]  }
 0x1b4   : > { %v731_v43 = vrot.slane %v5105_v2, 4  ;;  %v3633_v62 = vunpack.i.h.bf16 %v3631_v37  ;;  %v3632_v12 = vunpack.i.l.bf16 %v3631_v37  ;;  %v6336_v37 = vrot.slane %v4791_v54, 4  ;;  %3279 = vmatprep.subr.bf16.mxu0 %v4025_v51 }
 0x1b5   : > { %v676_v5 = vrot.slane %v5105_v2, 6  ;;  %3280 = vmatpush3.bf16.msra.mxu0 %v4026_v49  ;;  %v6340_v51 = vrot.slane %v4855_v40, 4 }
 0x1b6   : > { %v733_v26 = vsel %vm732_vm4, %v6336_v37, %v731_v43  ;;  %v759_v31 = vsel %vm732_vm4, %v731_v43, %v6295_v30  ;;  %v4027_v37 = vld [vmem:[%s6281_s1 + $0xc8] sm:$0xff]   ;;  %v986_v45 = vsel %vm976_vm6, %v4569_v32, %v3633_v62  ;;  %v985_v6 = vsel %vm976_vm6, %v4572_v18, %v3632_v12  ;;  %v4028_v12 = vld [vmem:[%s6281_s1 + $0x78] sm:$0xff]  }
 0x1b7   : > { %v3641_v3 = vpop.permute.xlu0 %3640  ;;  %v3724_v43 = vpack.i.bf16 %v755_v35, %v733_v26  ;;  %v3744_v30 = vpack.i.bf16 %v759_v31, %v754_v34  ;;  %2137 = vmatpush1.bf16.msra.mxu1 %v4027_v37  ;;  %v6337_v34 = vmov 0   ;;  %v6339_v31 = vrot.slane %v4871_v58, 4  ;;  %v4029_v37 = vld [vmem:[%s6281_s1 + $0x38] sm:$0xff]   ;;  %3281 = vmatprep.subr.bf16.mxu0 %v4028_v12 }
 0x1b8   : > { %v5138_v0 = vunpack.i.h.bf16 %v3641_v3  ;;  %v5140_v16 = vunpack.i.l.bf16 %v3641_v3  ;;  %2138 = vmatprep.subr.bf16.mxu1 %v6337_v34  ;;  %v1127_v49 = vsel %vm732_vm4, %v1043_v9, %v6340_v51 }
 0x1b9   : > { %3725 = vrot.lane.b32.xlu0 %v3724_v43, %s4191_s13  ;;  %3745 = vrot.lane.b32.xlu1 %v3744_v30, %s4191_s13  ;;  %v4030_v43 = vld [vmem:[%s6281_s1 + $0xd0] sm:$0xff]   ;;  %v5195_v30 = vunpack.i.l.bf16 %v5039_v52 }
 0x1ba   : > { %v5149_v13 = vsel %vm1004_vm7, %v985_v6, %v5140_v16  ;;  %v5155_v35 = vsel %vm1004_vm7, %v986_v45, %v5138_v0  ;;  %v6338_v45 = vrot.slane %v4894_v46, 4  ;;  %3282 = vmatpush3.bf16.msra.mxu0 %v4029_v37 }
 0x1bb   : > { %v3651_v32 = vpop.permute.xlu0 %3650  ;;  %v3729_v18 = vpack.i.bf16 %v5138_v0, %v5155_v35  ;;  %2139 = vmatpush1.bf16.msra.mxu1 %v4030_v43 }
 0x1bc   : > { %v3653_v3 = vunpack.i.h.bf16 %v3651_v32  ;;  %v3652_v26 = vunpack.i.l.bf16 %v3651_v32  ;;  %v1124_v6 = vsel %vm732_vm4, %v6339_v31, %v6338_v45  ;;  %v6341_v32 = vrot.slane %v4768_v41, 6 }
 0x1bd   : > { %v6342_v45 = vrot.slane %v4791_v54, 6  ;;  %3730 = vrot.lane.b32.xlu0 %v3729_v18, %s4189_s11  ;;  %v3754_v58 = vpack.i.bf16 %v1124_v6, %v1127_v49  ;;  %v6304_v6 = vrot.slane %v5140_v16, 4 }
 0x1be   : > { %v704_v34 = vsel %vm677_vm5, %v676_v5, %v6341_v32  ;;  %v989_v51 = vsel %vm976_vm6, %v4616_v11, %v3652_v26  ;;  %v990_v62 = vsel %vm976_vm6, %v4619_v24, %v3653_v3  ;;  %v5204_v11 = vunpack.i.h.bf16 %v5039_v52 }
 0x1bf   : > { %v678_v31 = vsel %vm677_vm5, %v6342_v45, %v676_v5  ;;  %839 = vrot.lane.b32.xlu1 %v704_v34, %s4190_s12  ;;  %v3661_v32 = vpop.permute.xlu0 %3660  ;;  %v1129_v5 = vsel %vm732_vm4, %v6343_v15, %v1043_v9  ;;  %v1050_v34 = vrot.slane %v5155_v35, 4  ;;  %v5210_v24 = vsel %vm1004_vm7, %v989_v51, %v5195_v30 }
 0x1c0   : > { %v3663_v18 = vunpack.i.h.bf16 %v3661_v32  ;;  %v3662_v12 = vunpack.i.l.bf16 %v3661_v32  ;;  %v3739_v26 = vpack.i.bf16 %v678_v31, %v4847_v60  ;;  %6344 = vst [vmem:[#allocation8_spill] sm:$0xff] %v5210_v24  ;;  %v1048_v3 = vrot.slane %v5149_v13, 4 }
 0x1c1   : > { %v1047_v15 = vrot.slane %v4859_v23, 4  ;;  %v5219_v60 = vsel %vm1004_vm7, %v990_v62, %v5204_v11  ;;  %v5222_v52 = vunpack.i.h.bf16 %v5049_v29  ;;  %v3749_v43 = vpack.i.bf16 %v1129_v5, %v4906_v4 }
 0x1c2   : > { %3740 = vrot.lane.b32.xlu0 %v3739_v26, %s4190_s12  ;;  %6345 = vst [vmem:[#allocation9_spill] sm:$0xff] %v5219_v60  ;;  %v992_v9 = vsel %vm976_vm6, %v4654_v14, %v3663_v18  ;;  %v991_v49 = vsel %vm976_vm6, %v4657_v10, %v3662_v12  ;;  %v3769_v62 = vpack.i.bf16 %v5195_v30, %v5210_v24  ;;  %v5255_v32 = vunpack.i.h.bf16 %v5058_v53 }
 0x1c3   : > { %3755 = vrot.lane.b32.xlu1 %v3754_v58, %s4188_s10  ;;  %v3671_v37 = vpop.permute.xlu0 %3670  ;;  %v5230_v58 = vunpack.i.l.bf16 %v5049_v29  ;;  %v1120_v51 = vsel %vm732_vm4, %v1048_v3, %v1050_v34  ;;  %v1123_v14 = vsel %vm732_vm4, %v1047_v15, %v6304_v6  ;;  %v5252_v29 = vsel %vm1004_vm7, %v992_v9, %v5222_v52 }
 0x1c4   : > { %v3673_v45 = vunpack.i.h.bf16 %v3671_v37  ;;  %v3672_v31 = vunpack.i.l.bf16 %v3671_v37  ;;  %6348 = vst [vmem:[#allocation12_spill] sm:$0xff] %v5252_v29  ;;  %v1051_v26 = vrot.slane %v5138_v0, 4  ;;  %v5263_v37 = vunpack.i.l.bf16 %v5058_v53 }
 0x1c5   : > { %6346 = vst [vmem:[#allocation10_spill] sm:$0xff] %v5230_v58  ;;  %v5248_v4 = vsel %vm1004_vm7, %v991_v49, %v5230_v58  ;;  %v6349_v9 = vrot.slane %v4796_v50, 4  ;;  %v6350_v10 = vrot.slane %v4768_v41, 4  ;;  %v1056_v53 = vrot.slane %v5210_v24, 4 }
 0x1c6   : > { %3750 = vrot.lane.b32.xlu0 %v3749_v43, %s4188_s10  ;;  %6347 = vst [vmem:[#allocation11_spill] sm:$0xff] %v5248_v4  ;;  %v994_v5 = vsel %vm976_vm6, %v4683_v47, %v3673_v45  ;;  %v993_v18 = vsel %vm976_vm6, %v4686_v48, %v3672_v31  ;;  %v6351_v47 = vrot.slane %v4894_v46, 4  ;;  %v6305_v45 = vrot.slane %v4913_v20, 4 }
 0x1c7   : > { %3770 = vrot.lane.b32.xlu1 %v3769_v62, %s4189_s11  ;;  %v3681_v12 = vpop.permute.xlu0 %3680  ;;  %v3774_v62 = vpack.i.bf16 %v1120_v51, %v1123_v14  ;;  %v758_v6 = vsel %vm732_vm4, %v6350_v10, %v6349_v9  ;;  %v5279_v31 = vunpack.i.h.bf16 %v5062_v8  ;;  %v6353_v51 = vrot.slane %v4855_v40, 4 }
 0x1c8   : > { %v3683_v49 = vunpack.i.h.bf16 %v3681_v12  ;;  %v3682_v43 = vunpack.i.l.bf16 %v3681_v12  ;;  %v1122_v48 = vsel %vm732_vm4, %v6351_v47, %v1048_v3  ;;  %v5289_v3 = vsel %vm1004_vm7, %v993_v18, %v5263_v37 }
 0x1c9   : > { %6352 = vst [vmem:[#allocation13_spill] sm:$0xff] %v5279_v31  ;;  %v1125_v14 = vsel %vm732_vm4, %v6353_v51, %v1047_v15  ;;  %v5293_v10 = vsel %vm1004_vm7, %v994_v5, %v5255_v32  ;;  %v5296_v12 = vunpack.i.l.bf16 %v5062_v8  ;;  %v1119_v15 = vsel %vm732_vm4, %v1051_v26, %v6305_v45 }
 0x1ca   : > { %947 = vrot.lane.b32.xlu0 %v758_v6, %s4191_s13  ;;  %v996_v6 = vsel %vm976_vm6, %v4703_v59, %v3683_v49  ;;  %v3759_v51 = vpack.i.bf16 %v1125_v14, %v1122_v48  ;;  %v3789_v5 = vpack.i.bf16 %v5230_v58, %v5248_v4  ;;  %v3764_v8 = vpack.i.bf16 %v4911_v38, %v4927_v42 }
 0x1cb   : > { %3775 = vrot.lane.b32.xlu1 %v3774_v62, %s4188_s10  ;;  %6354 = vst [vmem:[#allocation14_spill] sm:$0xff] %v5296_v12  ;;  %v995_v62 = vsel %vm976_vm6, %v4706_v22, %v3682_v43  ;;  %v3691_v9 = vpop.permute.xlu0 %3690  ;;  %v5322_v43 = vsel %vm1004_vm7, %v996_v6, %v5279_v31  ;;  %v5325_v48 = vunpack.i.h.bf16 %v5064_v57  ;;  %v5328_v14 = vunpack.i.l.bf16 %v5064_v57 }
 0x1cc   : > { %v3693_v18 = vunpack.i.h.bf16 %v3691_v9  ;;  %v3692_v47 = vunpack.i.l.bf16 %v3691_v9  ;;  %v5318_v49 = vsel %vm1004_vm7, %v995_v62, %v5296_v12  ;;  %6356 = vst [vmem:[#allocation16_spill] sm:$0xff] %v5322_v43  ;;  %v6359_v62 = vrot.slane %v4921_v19, 4 }
 0x1cd   : > { %6355 = vst [vmem:[#allocation15_spill] sm:$0xff] %v5318_v49  ;;  %6357 = vst [vmem:[#allocation17_spill] sm:$0xff] %v5325_v48  ;;  %v6360_v59 = vrot.slane %v5140_v16, 4 }
 0x1ce   : > { %v997_v22 = vsel %vm976_vm6, %v4735_v39, %v3692_v47  ;;  %3760 = vrot.lane.b32.xlu0 %v3759_v51, %s4188_s10  ;;  %6358 = vst [vmem:[#allocation18_spill] sm:$0xff] %v5328_v14  ;;  %v998_v39 = vsel %vm976_vm6, %v4732_v44, %v3693_v18  ;;  %v3794_v47 = vpack.i.bf16 %v4946_v33, %v1119_v15  ;;  %v1058_v44 = vrot.slane %v5219_v60, 4 }
 0x1cf   : > { %3790 = vrot.lane.b32.xlu1 %v3789_v5, %s4189_s11  ;;  %v3701_v9 = vpop.permute.xlu0 %3700  ;;  %v1118_v6 = vsel %vm732_vm4, %v1050_v34, %v6359_v62  ;;  %v1121_v57 = vsel %vm732_vm4, %v6360_v59, %v1051_v26  ;;  %v5347_v33 = vsel %vm1004_vm7, %v997_v22, %v5328_v14  ;;  %v5352_v18 = vunpack.i.l.bf16 %v5066_v17  ;;  %v5364_v22 = vpop.permute.xlu1 %3715 }
 0x1d0   : > { %v3703_v51 = vunpack.i.h.bf16 %v3701_v9  ;;  %v3702_v5 = vunpack.i.l.bf16 %v3701_v9  ;;  %6361 = vst [vmem:[#allocation19_spill] sm:$0xff] %v5347_v33  ;;  %v5362_v59 = vsel %vm1004_vm7, %v998_v39, %v5325_v48  ;;  %v1055_v17 = vrot.slane %v4911_v38, 4 }
 0x1d1   : > { %6362 = vst [vmem:[#allocation20_spill] sm:$0xff] %v5352_v18  ;;  %6363 = vst [vmem:[#allocation21_spill] sm:$0xff] %v5362_v59  ;;  %v1057_v62 = vrot.slane %v5195_v30, 4  ;;  %v3809_v39 = vpack.i.bf16 %v5263_v37, %v5289_v3  ;;  %v3784_v15 = vpack.i.bf16 %v5204_v11, %v5219_v60  ;;  %v3829_v60 = vpack.i.bf16 %v5296_v12, %v5318_v49 }
 0x1d2   : > { %v977_v34 = vsel %vm976_vm6, %v4768_v41, %v3703_v51  ;;  %v999_v26 = vsel %vm976_vm6, %v4754_v61, %v3702_v5  ;;  %3765 = vrot.lane.b32.xlu0 %v3764_v8, %s4189_s11  ;;  %v5375_v61 = vunpack.i.h.bf16 %v5364_v22  ;;  %v1112_v51 = vsel %vm732_vm4, %v1056_v53, %v1058_v44 }
 0x1d3   : > { %3795 = vrot.lane.b32.xlu1 %v3794_v47, %s4188_s10  ;;  %v5366_v9 = vpop.permute.xlu0 %3710  ;;  %v5372_v41 = vsel %vm1004_vm7, %v977_v34, %v5080_v21  ;;  %v3779_v47 = vpack.i.bf16 %v1121_v57, %v1118_v6  ;;  %v5384_v5 = vsel %vm1004_vm7, %v999_v26, %v5352_v18  ;;  %v1115_v26 = vsel %vm732_vm4, %v1055_v17, %v1057_v62 }
 0x1d4   : > { %v3713_v8 = vunpack.i.h.bf16 %v5366_v9  ;;  %6364 = vst [vmem:[#allocation22_spill] sm:$0xff] %v5384_v5  ;;  %v3814_v24 = vpack.i.bf16 %v1112_v51, %v1115_v26  ;;  %v1062_v57 = vrot.slane %v5252_v29, 4  ;;  %v6367_v26 = vrot.slane %v5352_v18, 4 }
 0x1d6   : > { %v1000_v45 = vsel %vm976_vm6, %v4751_v7, %v3713_v8  ;;  %3780 = vrot.lane.b32.xlu0 %v3779_v47, %s4188_s10  ;;  %v6309_v7 = vrot.slane %v5384_v5, 4  ;;  %v1060_v47 = vrot.slane %v5248_v4, 4  ;;  %v1061_v4 = vrot.slane %v5230_v58, 4 }
 0x1d7   : > { %3810 = vrot.lane.b32.xlu1 %v3809_v39, %s4189_s11  ;;  %v5400_v34 = vsel %vm1004_vm7, %v1000_v45, %v5375_v61  ;;  %v6366_v39 = vrot.slane %v4927_v42, 4  ;;  %v1059_v45 = vrot.slane %v5204_v11, 4  ;;  %v1065_v58 = vrot.slane %v5263_v37, 4 }
 0x1d8   : > { %6365 = vst [vmem:[#allocation23_spill] sm:$0xff] %v5400_v34  ;;  %v6308_v8 = vrot.slane %v5400_v34, 4 }
 0x1d9   : > { %v1114_v6 = vsel %vm732_vm4, %v6366_v39, %v1056_v53  ;;  %v6368_v53 = vrot.slane %v5325_v48, 4 }
 0x1da   : > { %3785 = vrot.lane.b32.xlu0 %v3784_v15, %s4189_s11  ;;  %v5422_v51 = vsel %vm732_vm4, %v6309_v7, %v6308_v8  ;;  %v6369_v15 = vrot.slane %v4913_v20, 4  ;;  %v1064_v8 = vrot.slane %v5289_v3, 4 }
 0x1db   : > { %3815 = vrot.lane.b32.xlu1 %v3814_v24, %s4188_s10  ;;  %v5430_v39 = vsel %vm732_vm4, %v6368_v53, %v6367_v26  ;;  %v1108_v26 = vsel %vm732_vm4, %v1060_v47, %v1062_v57  ;;  %v3804_v53 = vpack.i.bf16 %v5222_v52, %v5252_v29 }
 0x1dc   : > { %v1117_v24 = vsel %vm732_vm4, %v6369_v15, %v1055_v17  ;;  %v1111_v17 = vsel %vm732_vm4, %v1059_v45, %v1061_v4 }
 0x1dd   : > { %v3799_v7 = vpack.i.bf16 %v1117_v24, %v1114_v6  ;;  %v3834_v15 = vpack.i.bf16 %v1108_v26, %v1111_v17  ;;  %v1110_v6 = vsel %vm732_vm4, %v1058_v44, %v1060_v47  ;;  %v1066_v24 = vrot.slane %v5293_v10, 4 }
 0x1de   : > { %v3849_v26 = vpack.i.bf16 %v5328_v14, %v5347_v33  ;;  %v1068_v17 = vrot.slane %v5318_v49, 4 }
 0x1df   : > { %3800 = vrot.lane.b32.xlu0 %v3799_v7, %s4188_s10  ;;  %3830 = vrot.lane.b32.xlu1 %v3829_v60, %s4189_s11  ;;  %v1113_v60 = vsel %vm732_vm4, %v1057_v62, %v1059_v45  ;;  %v1063_v7 = vrot.slane %v5222_v52, 4  ;;  %v1104_v44 = vsel %vm732_vm4, %v1064_v8, %v1066_v24  ;;  %v3824_v62 = vpack.i.bf16 %v5255_v32, %v5293_v10 }
 0x1e0   : > { %v3819_v29 = vpack.i.bf16 %v1113_v60, %v1110_v6  ;;  %v1067_v6 = vrot.slane %v5255_v32, 4  ;;  %v1069_v60 = vrot.slane %v5296_v12, 4 }
 0x1e1   : > { %v1107_v47 = vsel %vm732_vm4, %v1063_v7, %v1065_v58 }
 0x1e2   : > { %v3854_v45 = vpack.i.bf16 %v1104_v44, %v1107_v47  ;;  %v3869_v44 = vpack.i.bf16 %v5352_v18, %v5384_v5  ;;  %v1102_v47 = vsel %vm732_vm4, %v1066_v24, %v1068_v17 }
 0x1e3   : > { %3805 = vrot.lane.b32.xlu0 %v3804_v53, %s4189_s11  ;;  %3835 = vrot.lane.b32.xlu1 %v3834_v15, %s4188_s10  ;;  %v1106_v53 = vsel %vm732_vm4, %v1062_v57, %v1064_v8  ;;  %v1070_v15 = vrot.slane %v5322_v43, 4  ;;  %v1103_v8 = vsel %vm732_vm4, %v1067_v6, %v1069_v60 }
 0x1e5   : > { %v1100_v57 = vsel %vm732_vm4, %v1068_v17, %v1070_v15 }
 0x1e7   : > { %3820 = vrot.lane.b32.xlu0 %v3819_v29, %s4188_s10  ;;  %3850 = vrot.lane.b32.xlu1 %v3849_v26, %s4189_s11  ;;  %v1109_v29 = vsel %vm732_vm4, %v1061_v4, %v1063_v7  ;;  %v3844_v4 = vpack.i.bf16 %v5279_v31, %v5322_v43  ;;  %v3874_v7 = vpack.i.bf16 %v1100_v57, %v1103_v8  ;;  %v1073_v57 = vrot.slane %v5328_v14, 4 }
 0x1e8   : > { %v3839_v26 = vpack.i.bf16 %v1109_v29, %v1106_v53  ;;  %v1072_v53 = vrot.slane %v5347_v33, 4  ;;  %v1071_v29 = vrot.slane %v5279_v31, 4  ;;  %v6370_v8 = vrot.slane %v5384_v5, 4 }
 0x1ea   : > { %v1098_v24 = vsel %vm732_vm4, %v1070_v15, %v1072_v53  ;;  %v1101_v17 = vsel %vm732_vm4, %v1069_v60, %v1071_v29 }
 0x1eb   : > { %3825 = vrot.lane.b32.xlu0 %v3824_v62, %s4189_s11  ;;  %3855 = vrot.lane.b32.xlu1 %v3854_v45, %s4188_s10  ;;  %v1105_v62 = vsel %vm732_vm4, %v1065_v58, %v1067_v6  ;;  %v1074_v58 = vrot.slane %v5362_v59, 4  ;;  %v3884_v6 = vpack.i.bf16 %v5375_v61, %v5400_v34 }
 0x1ec   : > { %v3859_v45 = vpack.i.bf16 %v1105_v62, %v1102_v47  ;;  %v5521_v47 = vpop.permute.xlu1 %3720 }
 0x1ed   : > { %v1094_v15 = vsel %vm732_vm4, %v1074_v58, %v6370_v8  ;;  %v1096_v14 = vsel %vm732_vm4, %v1072_v53, %v1074_v58 }
 0x1ef   : > { %3840 = vrot.lane.b32.xlu0 %v3839_v26, %s4188_s10  ;;  %3870 = vrot.lane.b32.xlu1 %v3869_v44, %s4189_s11  ;;  %v3864_v26 = vpack.i.bf16 %v5325_v48, %v5362_v59  ;;  %v3879_v44 = vpack.i.bf16 %v1101_v17, %v1098_v24 }
 0x1f0   : > { %v3736_v62 = vpop.permute.xlu1 %3735 }
 0x1f1   : > { %v3737_v8 = vunpack.i.l.bf16 %v3736_v62 }
 0x1f3   : > { %3845 = vrot.lane.b32.xlu0 %v3844_v4, %s4189_s11  ;;  %3875 = vrot.lane.b32.xlu1 %v3874_v7, %s4188_s10  ;;  %v6371_v4 = vrot.slane %v5325_v48, 4 }
 0x1f5   : > { %v1097_v60 = vsel %vm732_vm4, %v1073_v57, %v6371_v4 }
 0x1f6   : > { %v3899_v7 = vpack.i.bf16 %v1097_v60, %v1094_v15  ;;  %v3712_v15 = vunpack.i.l.bf16 %v5366_v9 }
 0x1f7   : > { %3860 = vrot.lane.b32.xlu0 %v3859_v45, %s4188_s10  ;;  %v3722_v45 = vunpack.i.l.bf16 %v5521_v47 }
 0x1fb   : > { %3865 = vrot.lane.b32.xlu0 %v3864_v26, %s4189_s11 }
 0x1ff   : > { %3880 = vrot.lane.b32.xlu0 %v3879_v44, %s4188_s10  ;;  %v1001_v44 = vsel %vm976_vm6, %v4771_v63, %v3722_v45  ;;  %v978_v63 = vsel %vm976_vm6, %v4796_v50, %v3712_v15  ;;  %v1099_v45 = vsel %vm732_vm4, %v1071_v29, %v1073_v57  ;;  %v3723_v57 = vunpack.i.h.bf16 %v5521_v47 }
 0x200   : > { %v3894_v53 = vpack.i.bf16 %v1096_v14, %v1099_v45  ;;  %v6373_v47 = vrot.slane %v5352_v18, 4  ;;  %v6374_v14 = vunpack.i.h.bf16 %v5068_v28 }
 0x203   : > { %3885 = vrot.lane.b32.xlu0 %v3884_v6, %s4189_s11  ;;  %v3738_v6 = vunpack.i.h.bf16 %v3736_v62 }
 0x205   : > { %v1519_v62 = vsel %vm622_vm3, %v3737_v8, %v3738_v6 }
 0x207   : > { %3900 = vrot.lane.b32.xlu0 %v3899_v7, %s4188_s10 }
 0x22b   : > { %v5524_v26 = vpop.permute.xlu0 %3725  ;;  %v5526_v24 = vpop.permute.xlu1 %3745 }
 0x22c   : > { %v5529_v17 = vunpack.i.l.bf16 %v5524_v26 }
 0x22e   : > { %6372 = vst [vmem:[#allocation24_spill] sm:$0xff] %v5529_v17  ;;  %v5536_v4 = vsel %vm1004_vm7, %v1001_v44, %v5529_v17  ;;  %v5550_v44 = vunpack.i.l.bf16 %v5364_v22 }
 0x22f   : > { %v3731_v60 = vpop.permute.xlu0 %3730  ;;  %v3889_v5 = vpack.i.bf16 %v5529_v17, %v5536_v4  ;;  %v6375_v45 = vrot.slane %v5536_v4, 4 }
 0x230   : > { %v3733_v33 = vunpack.i.h.bf16 %v3731_v60  ;;  %v3732_v59 = vunpack.i.l.bf16 %v3731_v60  ;;  %v5561_v50 = vsel %vm1004_vm7, %v978_v63, %v5550_v44 }
 0x231   : > { %v840_v7 = vpop.permute.xlu1 %839  ;;  %3890 = vrot.lane.b32.xlu1 %v3889_v5, %s4189_s11  ;;  %v5555_v5 = vunpack.i.h.bf16 %v5526_v24 }
 0x232   : > { %v1518_v9 = vsel %vm622_vm3, %v3732_v59, %v3733_v33  ;;  %v6322_v33 = vrot.slane %v5375_v61, 4  ;;  %v1003_v18 = vsel %vm976_vm6, %v5105_v2, %v840_v7  ;;  %v1653_v2 = vpack.c.bf16 %v5561_v50, %v5372_v41 }
 0x233   : > { %v1656_v49 = vpack.c.bf16 %v1519_v62, %v1518_v9  ;;  %v6377_v7 = vrot.slane %v5561_v50, 4 }
 0x234   : > { %v3741_v48 = vpop.permute.xlu0 %3740 }
 0x235   : > { %v5552_v60 = vpop.permute.xlu1 %3755  ;;  %v3743_v58 = vunpack.i.h.bf16 %v3741_v48  ;;  %3048 = vmatprep.mubr.msk.bf16.mxu1 %vm976_vm6, %v1656_v49  ;;  %3895 = vrot.lane.b32.xlu1 %v3894_v53, %s4188_s10  ;;  %v3742_v53 = vunpack.i.l.bf16 %v3741_v48 }
 0x236   : > { %v3757_v63 = vunpack.i.l.bf16 %v5552_v60 }
 0x237   : > { %v1002_v29 = vsel %vm976_vm6, %v4791_v54, %v3743_v58  ;;  %v6376_v58 = vrot.slane %v5400_v34, 4 }
 0x238   : > { %v3751_v6 = vpop.permute.xlu0 %3750  ;;  %v5573_v49 = vsel %vm1004_vm7, %v1002_v29, %v5555_v5  ;;  %v1093_v29 = vsel %vm732_vm4, %v6373_v47, %v6322_v33 }
 0x239   : > { %v5569_v15 = vpop.permute.xlu1 %3770  ;;  %v3753_v9 = vunpack.i.h.bf16 %v3751_v6  ;;  %v3752_v62 = vunpack.i.l.bf16 %v3751_v6  ;;  %v3904_v54 = vpack.i.bf16 %v5555_v5, %v5573_v49  ;;  %v1090_v43 = vsel %vm732_vm4, %v6376_v58, %v6375_v45 }
 0x23a   : > { %v5628_v58 = vunpack.i.l.bf16 %v5526_v24 }
 0x23b   : > { %v1302_v22 = vsel %vm594_vm2, %v6374_v14, %v3753_v9  ;;  %v1303_v6 = vsel %vm594_vm2, %v3752_v62, %v3757_v63  ;;  %v1600_v48 = vsel %vm594_vm2, %v5550_v44, %v3752_v62  ;;  %3905 = vrot.lane.b32.xlu0 %v3904_v54, %s4189_s11  ;;  %v6378_v54 = vrot.slane %v5372_v41, 4 }
 0x23c   : > { %v5601_v28 = vpop.permute.xlu0 %947  ;;  %v1654_v63 = vpack.c.bf16 %v1600_v48, %v5101_v55  ;;  %v1626_v9 = vsel %vm622_vm3, %v1302_v22, %v3732_v59  ;;  %v1627_v62 = vsel %vm622_vm3, %v1303_v6, %v3737_v8  ;;  %v980_v59 = vsel %vm976_vm6, %v4788_v36, %v3742_v53 }
 0x23d   : > { %v5603_v14 = vpop.permute.xlu1 %3775  ;;  %v5610_v47 = vsel %vm1004_vm7, %v1003_v18, %v5601_v28  ;;  %v6321_v45 = vrot.slane %v5601_v28, 4  ;;  %v5621_v55 = vsel %vm732_vm4, %v6378_v54, %v6377_v7  ;;  %v1655_v8 = vpack.c.bf16 %v1627_v62, %v1626_v9 }
 0x23e   : > { %2006 = vmatprep.mubr.bf16.mxu0 %v1654_v63  ;;  %v3919_v18 = vpack.i.bf16 %v1093_v29, %v1090_v43  ;;  %v3909_v22 = vpack.i.bf16 %v5601_v28, %v5610_v47  ;;  %v3758_v6 = vunpack.i.h.bf16 %v5552_v60  ;;  %v6324_v48 = vrot.slane %v5610_v47, 4 }
 0x23f   : > { %2007 = vmatmul.mubr.bf16.vlgmr.msra.gmra.mrb[0].mxu0 %v1653_v2  ;;  %v6379_v7 = vrot.slane %v5080_v21, 4  ;;  %v5641_v43 = vunpack.i.h.bf16 %v5524_v26  ;;  %2151 = vmatmul.mubr.bf16.vlgmr.msra.gmra.mrb[0].mxu1 %v1655_v8  ;;  %v1081_v60 = vrot.slane %v5529_v17, 4  ;;  %v1082_v63 = vrot.slane %v5573_v49, 4 }
 0x240   : > { %3920 = vrot.lane.b32.xlu0 %v3919_v18, %s4188_s10  ;;  %v3761_v24 = vpop.permute.xlu0 %3760  ;;  %3910 = vrot.lane.b32.xlu1 %v3909_v22, %s4189_s11  ;;  %v5653_v26 = vsel %vm1004_vm7, %v980_v59, %v5628_v58  ;;  %v3773_v2 = vunpack.i.h.bf16 %v5569_v15  ;;  %v3772_v54 = vunpack.i.l.bf16 %v5569_v15  ;;  %v3777_v8 = vunpack.i.l.bf16 %v5603_v14 }
 0x241   : > { %v5638_v36 = vsel %vm732_vm4, %v6321_v45, %v6379_v7  ;;  %v5644_v53 = vpop.permute.xlu1 %3790  ;;  %v3762_v9 = vunpack.i.l.bf16 %v3761_v24  ;;  %v3763_v18 = vunpack.i.h.bf16 %v3761_v24  ;;  %v979_v7 = vsel %vm976_vm6, %v4799_v56, %v3723_v57 }
 0x242   : > { %v1601_v45 = vsel %vm594_vm2, %v5641_v43, %v3758_v6  ;;  %v1086_v59 = vsel %vm732_vm4, %v1082_v63, %v6324_v48  ;;  %v6380_v15 = vpack.i.bf16 %v5080_v21, %v5372_v41  ;;  %v5678_v33 = vsel %vm1004_vm7, %v979_v7, %v5641_v43 }
 0x243   : > { %v1602_v22 = vsel %vm594_vm2, %v5628_v58, %v3762_v9  ;;  %v1305_v29 = vsel %vm594_vm2, %v3762_v9, %v3777_v8  ;;  %v3929_v62 = vpack.i.bf16 %v5550_v44, %v5561_v50  ;;  %v6381_v9 = vpack.i.bf16 %v5422_v51, %v5430_v39 }
 0x244   : > { %3925 = vrot.lane.b32.xlu0 %v6380_v15, %s4189_s11  ;;  %v3766_v24 = vpop.permute.xlu0 %3765  ;;  %v1658_v57 = vpack.c.bf16 %v1602_v22, %v1601_v45  ;;  %v1657_v8 = vpack.c.bf16 %v5653_v26, %v5678_v33  ;;  %v6382_v15 = vrot.slane %v5555_v5, 4  ;;  %v1521_v7 = vsel %vm622_vm3, %v3772_v54, %v3773_v2 }
 0x245   : > { %v5674_v56 = vpop.permute.xlu1 %3795  ;;  %v3768_v17 = vunpack.i.h.bf16 %v3766_v24  ;;  %v3767_v48 = vunpack.i.l.bf16 %v3766_v24  ;;  %3915 = vrot.lane.b32.xlu1 %v6381_v9, %s4188_s10  ;;  %v1304_v22 = vsel %vm594_vm2, %v3758_v6, %v3763_v18  ;;  %v1701_v24 = vpack.c.bf16 %v5573_v49, %v5536_v4 }
 0x246   : > { %v1089_v45 = vsel %vm732_vm4, %v1081_v60, %v6382_v15  ;;  %2014 = vmatprep.mubr.bf16.mxu0 %v1658_v57  ;;  %v3778_v51 = vunpack.i.h.bf16 %v5603_v14  ;;  %v1629_v12 = vsel %vm622_vm3, %v1305_v29, %v3772_v54  ;;  %v6383_v18 = vrot.slane %v5536_v4, 4 }
 0x247   : > { %v3939_v34 = vpack.i.bf16 %v1089_v45, %v1086_v59  ;;  %v1520_v39 = vsel %vm622_vm3, %v3767_v48, %v3768_v17  ;;  %2015 = vmatmul.mubr.bf16.gmra.mrb[4].mxu0 %v1657_v8  ;;  %v1628_v9 = vsel %vm622_vm3, %v1304_v22, %v3767_v48  ;;  %v3944_v17 = vpack.i.bf16 %v5641_v43, %v5678_v33 }
 0x248   : > { %v1660_v31 = vpack.c.bf16 %v1521_v7, %v1520_v39  ;;  %v3781_v2 = vpop.permute.xlu0 %3780  ;;  %v1659_v6 = vpack.c.bf16 %v1629_v12, %v1628_v9  ;;  %v1088_v59 = vsel %vm732_vm4, %v6383_v18, %v1082_v63  ;;  %v6384_v48 = vrot.slane %v5375_v61, 4 }
 0x249   : > { %3940 = vrot.lane.b32.xlu0 %v3939_v34, %s4188_s10  ;;  %v5701_v15 = vpop.permute.xlu1 %3810  ;;  %v3782_v14 = vunpack.i.l.bf16 %v3781_v2  ;;  %3930 = vrot.lane.b32.xlu1 %v3929_v62, %s4189_s11  ;;  %v3793_v29 = vunpack.i.h.bf16 %v5644_v53  ;;  %v3792_v12 = vunpack.i.l.bf16 %v5644_v53  ;;  %v3797_v54 = vunpack.i.l.bf16 %v5674_v56 }
 0x24a   : > { %v1091_v34 = vsel %vm732_vm4, %v6384_v48, %v1081_v60  ;;  %v3783_v57 = vunpack.i.h.bf16 %v3781_v2  ;;  %3049 = vmatprep.mubr.msk.bf16.mxu1 %vm976_vm6, %v1660_v31  ;;  %v1603_v62 = vsel %vm594_vm2, %v4863_v27, %v3778_v51  ;;  %v6385_v31 = vld [vmem:[#allocation6_spill] sm:$0xff]  ;;  %v6386_v48 = vld [vmem:[#allocation7_spill] sm:$0xff] }
 0x24b   : > { %2159 = vmatmul.mubr.bf16.gmra.mrb[4].mxu1 %v1659_v6  ;;  %v3934_v63 = vpack.i.bf16 %v1088_v59, %v1091_v34  ;;  %v1604_v8 = vsel %vm594_vm2, %v4861_v25, %v3782_v14  ;;  %v1307_v45 = vsel %vm594_vm2, %v3782_v14, %v3797_v54  ;;  %v3964_v9 = vpack.i.bf16 %v4863_v27, %v6385_v31 }
 0x24c   : > { %v3786_v60 = vpop.permute.xlu0 %3785  ;;  %v1662_v53 = vpack.c.bf16 %v1604_v8, %v1603_v62  ;;  %v1523_v2 = vsel %vm622_vm3, %v3792_v12, %v3793_v29  ;;  %v1038_v6 = vrot.slane %v5653_v26, 4  ;;  %v1306_v18 = vsel %vm594_vm2, %v3778_v51, %v3783_v57 }
 0x24d   : > { %3945 = vrot.lane.b32.xlu0 %v3944_v17, %s4189_s11  ;;  %v5724_v7 = vpop.permute.xlu1 %3815  ;;  %v3788_v22 = vunpack.i.h.bf16 %v3786_v60  ;;  %v3787_v39 = vunpack.i.l.bf16 %v3786_v60  ;;  %3935 = vrot.lane.b32.xlu1 %v3934_v63, %s4188_s10  ;;  %v3949_v59 = vpack.i.bf16 %v5628_v58, %v5653_v26  ;;  %v3798_v14 = vunpack.i.h.bf16 %v5674_v56 }
 0x24e   : > { %2022 = vmatprep.mubr.bf16.mxu0 %v1662_v53  ;;  %v6387_v34 = vpack.c.bf16 %v6386_v48, %v6385_v31  ;;  %v1631_v29 = vsel %vm622_vm3, %v1307_v45, %v3792_v12  ;;  %v6388_v51 = vpack.i.bf16 %v5638_v36, %v5621_v55  ;;  %v6389_v8 = vrot.slane %v5601_v28, 4 }
 0x24f   : > { %v1522_v17 = vsel %vm622_vm3, %v3787_v39, %v3788_v22  ;;  %v1630_v54 = vsel %vm622_vm3, %v1306_v18, %v3787_v39  ;;  %v6390_v60 = vrot.slane %v5555_v5, 4  ;;  %v6391_v22 = vrot.slane %v5372_v41, 4 }
 0x250   : > { %2023 = vmatmul.mubr.bf16.gmra.mrb[8].mxu0 %v6387_v34  ;;  %v1664_v63 = vpack.c.bf16 %v1523_v2, %v1522_v17  ;;  %v1663_v56 = vpack.c.bf16 %v1631_v29, %v1630_v54  ;;  %v6392_v12 = vrot.slane %v5610_v47, 4  ;;  %v1035_v55 = vrot.slane %v5550_v44, 4 }
 0x251   : > { %3960 = vrot.lane.b32.xlu0 %v6388_v51, %s4188_s10  ;;  %v3801_v57 = vpop.permute.xlu0 %3800  ;;  %v5745_v62 = vpop.permute.xlu1 %3830  ;;  %v1087_v53 = vsel %vm732_vm4, %v6390_v60, %v6389_v8  ;;  %v1037_v36 = vrot.slane %v5641_v43, 4  ;;  %v1036_v39 = vrot.slane %v5678_v33, 4  ;;  %3950 = vrot.lane.b32.xlu1 %v3949_v59, %s4189_s11  ;;  %v3813_v18 = vunpack.i.h.bf16 %v5701_v15 }
 0x252   : > { %v1138_v45 = vsel %vm732_vm4, %v6392_v12, %v6391_v22  ;;  %v3802_v2 = vunpack.i.l.bf16 %v3801_v57  ;;  %v3812_v17 = vunpack.i.l.bf16 %v5701_v15  ;;  %v3817_v41 = vunpack.i.l.bf16 %v5724_v7  ;;  %3050 = vmatprep.mubr.msk.bf16.mxu1 %vm976_vm6, %v1664_v63 }
 0x253   : > { %v3803_v34 = vunpack.i.h.bf16 %v3801_v57  ;;  %2167 = vmatmul.mubr.bf16.gmra.mrb[8].mxu1 %v1663_v56  ;;  %v3954_v54 = vpack.i.bf16 %v1138_v45, %v1087_v53  ;;  %v1605_v44 = vsel %vm594_vm2, %v4855_v40, %v3798_v14  ;;  %v1132_v59 = vsel %vm732_vm4, %v1036_v39, %v1038_v6 }
 0x254   : > { %v1606_v33 = vsel %vm594_vm2, %v4859_v23, %v3802_v2  ;;  %v1309_v15 = vsel %vm594_vm2, %v3802_v2, %v3817_v41  ;;  %v1135_v8 = vsel %vm732_vm4, %v1035_v55, %v1037_v36  ;;  %v1525_v60 = vsel %vm622_vm3, %v3812_v17, %v3813_v18  ;;  %v6393_v2 = vld [vmem:[#allocation5_spill] sm:$0xff] }
 0x255   : > { %3965 = vrot.lane.b32.xlu0 %v3964_v9, %s4189_s11  ;;  %v3806_v29 = vpop.permute.xlu0 %3805  ;;  %v5777_v51 = vpop.permute.xlu1 %3835  ;;  %v1666_v63 = vpack.c.bf16 %v1606_v33, %v1605_v44  ;;  %3955 = vrot.lane.b32.xlu1 %v3954_v54, %s4188_s10  ;;  %v1308_v53 = vsel %vm594_vm2, %v3798_v14, %v3803_v34  ;;  %v3979_v22 = vpack.i.bf16 %v1135_v8, %v1132_v59  ;;  %v3818_v12 = vunpack.i.h.bf16 %v5724_v7 }
 0x256   : > { %v3808_v57 = vunpack.i.h.bf16 %v3806_v29  ;;  %v3807_v56 = vunpack.i.l.bf16 %v3806_v29  ;;  %v3969_v9 = vpack.i.bf16 %v4861_v25, %v6386_v48  ;;  %v6394_v41 = vpack.c.bf16 %v4894_v46, %v6393_v2  ;;  %v4032_v46 = vld [vmem:[%s6283_s3 + $0x8] sm:$0xff]  }
 0x257   : > { %2030 = vmatprep.mubr.bf16.mxu0 %v1666_v63  ;;  %v1633_v44 = vsel %vm622_vm3, %v1309_v15, %v3812_v17  ;;  %v6395_v25 = vrot.slane %v5561_v50, 4  ;;  %v1039_v48 = vrot.slane %v5628_v58, 4  ;;  %v3984_v17 = vpack.i.bf16 %v4855_v40, %v6393_v2 }
 0x258   : > { %v1524_v45 = vsel %vm622_vm3, %v3807_v56, %v3808_v57  ;;  %2031 = vmatmul.mubr.bf16.gmra.mrb[12].mxu0 %v6394_v41  ;;  %v1632_v54 = vsel %vm622_vm3, %v1308_v53, %v3807_v56  ;;  %v6396_v15 = vrot.slane %v5080_v21, 4  ;;  %v3833_v63 = vunpack.i.h.bf16 %v5745_v62 }
 0x259   : > { %v1668_v18 = vpack.c.bf16 %v1525_v60, %v1524_v45  ;;  %3980 = vrot.lane.b32.xlu0 %v3979_v22, %s4188_s10  ;;  %v3821_v14 = vpop.permute.xlu0 %3820  ;;  %v5796_v34 = vpop.permute.xlu1 %3850  ;;  %v1667_v33 = vpack.c.bf16 %v1633_v44, %v1632_v54  ;;  %v1134_v7 = vsel %vm732_vm4, %v6395_v25, %v1036_v39  ;;  %3970 = vrot.lane.b32.xlu1 %v3969_v9, %s4189_s11  ;;  %v3832_v50 = vunpack.i.l.bf16 %v5745_v62 }
 0x25a   : > { %v3822_v59 = vunpack.i.l.bf16 %v3821_v14  ;;  %v1137_v29 = vsel %vm732_vm4, %v6396_v15, %v1035_v55  ;;  %v3837_v57 = vunpack.i.l.bf16 %v5777_v51  ;;  %v3823_v39 = vunpack.i.h.bf16 %v3821_v14 }
 0x25b   : > { %3051 = vmatprep.mubr.msk.bf16.mxu1 %vm976_vm6, %v1668_v18  ;;  %v3974_v58 = vpack.i.bf16 %v1134_v7, %v1137_v29  ;;  %v1607_v56 = vsel %vm594_vm2, %v5140_v16, %v3818_v12  ;;  %v6397_v21 = vrot.slane %v6385_v31, 4  ;;  %v1527_v31 = vsel %vm622_vm3, %v3832_v50, %v3833_v63 }
 0x25c   : > { %2175 = vmatmul.mubr.bf16.gmra.mrb[12].mxu1 %v1667_v33  ;;  %v1608_v40 = vsel %vm594_vm2, %v5138_v0, %v3822_v59  ;;  %v1311_v55 = vsel %vm594_vm2, %v3822_v59, %v3837_v57  ;;  %v6398_v0 = vrot.slane %v4863_v27, 4  ;;  %v3838_v2 = vunpack.i.h.bf16 %v5777_v51 }
 0x25d   : > { %v1130_v62 = vsel %vm732_vm4, %v1038_v6, %v6397_v21  ;;  %3985 = vrot.lane.b32.xlu0 %v3984_v17, %s4189_s11  ;;  %v3826_v8 = vpop.permute.xlu0 %3825  ;;  %v5826_v60 = vpop.permute.xlu1 %3855  ;;  %v1670_v53 = vpack.c.bf16 %v1608_v40, %v1607_v56  ;;  %3975 = vrot.lane.b32.xlu1 %v3974_v58, %s4188_s10  ;;  %v1310_v6 = vsel %vm594_vm2, %v3818_v12, %v3823_v39  ;;  %v3852_v7 = vunpack.i.l.bf16 %v5796_v34 }
 0x25e   : > { %v3828_v22 = vunpack.i.h.bf16 %v3826_v8  ;;  %v3827_v9 = vunpack.i.l.bf16 %v3826_v8  ;;  %v1131_v26 = vsel %vm732_vm4, %v1039_v48, %v6398_v0  ;;  %v6399_v54 = vpack.c.bf16 %v5155_v35, %v5149_v13 }
 0x25f   : > { %2038 = vmatprep.mubr.bf16.mxu0 %v1670_v53  ;;  %v3994_v45 = vpack.i.bf16 %v1131_v26, %v1130_v62  ;;  %v1635_v27 = vsel %vm622_vm3, %v1311_v55, %v3832_v50  ;;  %v1133_v12 = vsel %vm732_vm4, %v1037_v36, %v1039_v48  ;;  %v3853_v35 = vunpack.i.h.bf16 %v5796_v34  ;;  %v4033_v53 = vld [vmem:[%s6283_s3 + $0x10] sm:$0xff]  }
 0x260   : > { %v1526_v41 = vsel %vm622_vm3, %v3827_v9, %v3828_v22  ;;  %2039 = vmatmul.mubr.bf16.gmra.mrb[16].mxu0 %v6399_v54  ;;  %v1634_v44 = vsel %vm622_vm3, %v1310_v6, %v3827_v9  ;;  %v3857_v59 = vunpack.i.l.bf16 %v5826_v60  ;;  %v1609_v43 = vsel %vm594_vm2, %v4913_v20, %v3838_v2  ;;  %v4031_v20 = vld [vmem:[%s6283_s3] sm:$0xff]  }
 0x261   : > { %v1672_v18 = vpack.c.bf16 %v1527_v31, %v1526_v41  ;;  %3995 = vrot.lane.b32.xlu0 %v3994_v45, %s4188_s10  ;;  %v3841_v14 = vpop.permute.xlu0 %3840  ;;  %v1671_v51 = vpack.c.bf16 %v1635_v27, %v1634_v44  ;;  %v5847_v25 = vpop.permute.xlu1 %3870  ;;  %1296 = vrot.lane.b32.xlu1 %v1133_v12, %s4188_s10  ;;  %v1529_v50 = vsel %vm622_vm3, %v3852_v7, %v3853_v35  ;;  %v6402_v44 = vld [vmem:[#allocation8_spill] sm:$0xff]  ;;  %v6404_v35 = vld [vmem:[#allocation10_spill] sm:$0xff] }
 0x262   : > { %v3842_v33 = vunpack.i.l.bf16 %v3841_v14  ;;  %v3843_v17 = vunpack.i.h.bf16 %v3841_v14  ;;  %v3999_v23 = vpack.i.bf16 %v5140_v16, %v5149_v13  ;;  %v6400_v56 = vpack.c.bf16 %v4927_v42, %v4921_v19  ;;  %3389 = vmatprep.subr.bf16.mxu0 %v4031_v20  ;;  %3433 = vmatprep.subr.bf16.mxu1 %v4031_v20 }
 0x263   : > { %3052 = vmatprep.mubr.msk.bf16.mxu1 %vm976_vm6, %v1672_v18  ;;  %3390 = vmatpush3.bf16.msra.mxu0 %v4031_v20  ;;  %v3873_v8 = vunpack.i.h.bf16 %v5847_v25 }
 0x264   : > { %2183 = vmatmul.mubr.bf16.gmra.mrb[16].mxu1 %v1671_v51  ;;  %v1610_v36 = vsel %vm594_vm2, %v4911_v38, %v3842_v33  ;;  %v1313_v48 = vsel %vm594_vm2, %v3842_v33, %v3857_v59  ;;  %v1312_v57 = vsel %vm594_vm2, %v3838_v2, %v3843_v17  ;;  %v3858_v38 = vunpack.i.h.bf16 %v5826_v60  ;;  %3391 = vmatprep.subr.bf16.mxu0 %v4032_v46 }
 0x265   : > { %v3846_v15 = vpop.permute.xlu0 %3845  ;;  %v1674_v29 = vpack.c.bf16 %v1610_v36, %v1609_v43  ;;  %3990 = vrot.lane.b32.xlu1 %v3989_v1, %s4189_s11  ;;  %v5874_v58 = vpop.permute.xlu1 %3875  ;;  %v1637_v16 = vsel %vm622_vm3, %v1313_v48, %v3852_v7  ;;  %v3872_v60 = vunpack.i.l.bf16 %v5847_v25  ;;  %3441 = vmatpush3.bf16.msra.mxu1 %v4031_v20  ;;  %v6405_v1 = vld [vmem:[#allocation12_spill] sm:$0xff]  ;;  %v6406_v43 = vld [vmem:[#allocation11_spill] sm:$0xff] }
 0x266   : > { %v3848_v34 = vunpack.i.h.bf16 %v3846_v15  ;;  %v3847_v63 = vunpack.i.l.bf16 %v3846_v15  ;;  %v3877_v19 = vunpack.i.l.bf16 %v5874_v58  ;;  %v1611_v22 = vsel %vm594_vm2, %v5195_v30, %v3858_v38  ;;  %3434 = vmatprep.subr.bf16.mxu1 %v4032_v46  ;;  %v4034_v48 = vld [vmem:[%s6283_s3 + $0x18] sm:$0xff]   ;;  %v4035_v15 = vld [vmem:[%s6283_s3 + $0x20] sm:$0xff]  }
 0x267   : > { %2046 = vmatprep.mubr.bf16.mxu0 %v1674_v29  ;;  %3392 = vmatpush3.bf16.msra.mxu0 %v4032_v46  ;;  %v1531_v2 = vsel %vm622_vm3, %v3872_v60, %v3873_v8  ;;  %v3878_v30 = vunpack.i.h.bf16 %v5874_v58  ;;  %v6407_v36 = vpack.c.bf16 %v6405_v1, %v6406_v43 }
 0x268   : > { %v1528_v39 = vsel %vm622_vm3, %v3847_v63, %v3848_v34  ;;  %2047 = vmatmul.mubr.bf16.gmra.mrb[20].mxu0 %v6400_v56  ;;  %v1636_v13 = vsel %vm622_vm3, %v1312_v57, %v3847_v63  ;;  %3393 = vmatprep.subr.bf16.mxu0 %v4033_v53 }
 0x269   : > { %v1676_v40 = vpack.c.bf16 %v1529_v50, %v1528_v39  ;;  %v3861_v21 = vpop.permute.xlu0 %3860  ;;  %v1675_v62 = vpack.c.bf16 %v1637_v16, %v1636_v13  ;;  %4000 = vrot.lane.b32.xlu1 %v3999_v23, %s4189_s11  ;;  %3442 = vmatpush3.bf16.msra.mxu1 %v4032_v46  ;;  %v1613_v7 = vsel %vm594_vm2, %v6404_v35, %v3878_v30  ;;  %v4037_v46 = vld [vmem:[%s6283_s3 + $0x30] sm:$0xff]  }
 0x26a   : > { %v3862_v55 = vunpack.i.l.bf16 %v3861_v21  ;;  %v3863_v42 = vunpack.i.h.bf16 %v3861_v21  ;;  %3435 = vmatprep.subr.bf16.mxu1 %v4033_v53 }
 0x26b   : > { %3053 = vmatprep.mubr.msk.bf16.mxu1 %vm976_vm6, %v1676_v40  ;;  %3394 = vmatpush3.bf16.msra.mxu0 %v4033_v53 }
 0x26c   : > { %2191 = vmatmul.mubr.bf16.gmra.mrb[20].mxu1 %v1675_v62  ;;  %v1612_v9 = vsel %vm594_vm2, %v5204_v11, %v3862_v55  ;;  %v1315_v0 = vsel %vm594_vm2, %v3862_v55, %v3877_v19  ;;  %v1314_v41 = vsel %vm594_vm2, %v3858_v38, %v3863_v42  ;;  %v6401_v11 = vld [vmem:[#allocation9_spill] sm:$0xff]  ;;  %3395 = vmatprep.subr.bf16.mxu0 %v4034_v48  ;;  %v4038_v38 = vld [vmem:[%s6283_s3 + $0x38] sm:$0xff]  }
 0x26d   : > { %v3866_v26 = vpop.permute.xlu0 %3865  ;;  %v1678_v31 = vpack.c.bf16 %v1612_v9, %v1611_v22  ;;  %v6403_v27 = vpack.c.bf16 %v6401_v11, %v6402_v44  ;;  %v1639_v14 = vsel %vm622_vm3, %v1315_v0, %v3872_v60  ;;  %3443 = vmatpush3.bf16.msra.mxu1 %v4033_v53 }
 0x26e   : > { %v3868_v6 = vunpack.i.h.bf16 %v3866_v26  ;;  %v3867_v45 = vunpack.i.l.bf16 %v3866_v26  ;;  %3436 = vmatprep.subr.bf16.mxu1 %v4034_v48  ;;  %v6408_v26 = vpack.c.bf16 %v5293_v10, %v5289_v3  ;;  %v6409_v10 = vld [vmem:[#allocation13_spill] sm:$0xff] }
 0x26f   : > { %2054 = vmatprep.mubr.bf16.mxu0 %v1678_v31  ;;  %3396 = vmatpush3.bf16.msra.mxu0 %v4034_v48 }
 0x270   : > { %v1530_v54 = vsel %vm622_vm3, %v3867_v45, %v3868_v6  ;;  %2055 = vmatmul.mubr.bf16.gmra.mrb[24].mxu0 %v6403_v27  ;;  %v1638_v18 = vsel %vm622_vm3, %v1314_v41, %v3867_v45  ;;  %3397 = vmatprep.subr.bf16.mxu0 %v4035_v15 }
 0x271   : > { %v1680_v12 = vpack.c.bf16 %v1531_v2, %v1530_v54  ;;  %v3881_v51 = vpop.permute.xlu0 %3880  ;;  %v1679_v33 = vpack.c.bf16 %v1639_v14, %v1638_v18  ;;  %3444 = vmatpush3.bf16.msra.mxu1 %v4034_v48 }
 0x272   : > { %v3882_v25 = vunpack.i.l.bf16 %v3881_v51  ;;  %3437 = vmatprep.subr.bf16.mxu1 %v4035_v15  ;;  %v3883_v39 = vunpack.i.h.bf16 %v3881_v51 }
 0x273   : > { %3054 = vmatprep.mubr.msk.bf16.mxu1 %vm976_vm6, %v1680_v12  ;;  %3398 = vmatpush3.bf16.msra.mxu0 %v4035_v15 }
 0x274   : > { %2199 = vmatmul.mubr.bf16.gmra.mrb[24].mxu1 %v1679_v33  ;;  %v1614_v59 = vsel %vm594_vm2, %v5222_v52, %v3882_v25  ;;  %v4036_v52 = vld [vmem:[%s6283_s3 + $0x28] sm:$0xff]   ;;  %v1316_v55 = vsel %vm594_vm2, %v3878_v30, %v3883_v39 }
 0x275   : > { %v1682_v17 = vpack.c.bf16 %v1614_v59, %v1613_v7  ;;  %v3886_v29 = vpop.permute.xlu0 %3885  ;;  %3445 = vmatpush3.bf16.msra.mxu1 %v4035_v15  ;;  %3399 = vmatprep.subr.bf16.mxu0 %v4036_v52  ;;  %v6410_v59 = vld [vmem:[#allocation14_spill] sm:$0xff] }
 0x276   : > { %3438 = vmatprep.subr.bf16.mxu1 %v4036_v52  ;;  %v3888_v34 = vunpack.i.h.bf16 %v3886_v29  ;;  %v3887_v63 = vunpack.i.l.bf16 %v3886_v29 }
 0x277   : > { %2062 = vmatprep.mubr.bf16.mxu0 %v1682_v17  ;;  %3400 = vmatpush3.bf16.msra.mxu0 %v4036_v52 }
 0x278   : > { %2063 = vmatmul.mubr.bf16.gmra.mrb[28].mxu0 %v6407_v36  ;;  %v1532_v58 = vsel %vm622_vm3, %v3887_v63, %v3888_v34  ;;  %3401 = vmatprep.subr.bf16.mxu0 %v4037_v46  ;;  %v1640_v53 = vsel %vm622_vm3, %v1316_v55, %v3887_v63 }
 0x279   : > { %3446 = vmatpush3.bf16.msra.mxu1 %v4036_v52  ;;  %v3901_v50 = vpop.permute.xlu0 %3900 }
 0x27a   : > { %v3902_v56 = vunpack.i.l.bf16 %v3901_v50  ;;  %3439 = vmatprep.subr.bf16.mxu1 %v4037_v46  ;;  %v3903_v44 = vunpack.i.h.bf16 %v3901_v50 }
 0x27b   : > { %3402 = vmatpush3.bf16.msra.mxu0 %v4037_v46 }
 0x27c   : > { %3403 = vmatprep.subr.bf16.mxu0 %v4038_v38  ;;  %v1616_v19 = vsel %vm594_vm2, %v5255_v32, %v3902_v56 }
 0x27d   : > { %3447 = vmatpush3.bf16.msra.mxu1 %v4037_v46  ;;  %v6412_v46 = vld [vmem:[#allocation15_spill] sm:$0xff] }
 0x27e   : > { %3440 = vmatprep.subr.bf16.mxu1 %v4038_v38 }
 0x27f   : > { %3404 = vmatpush3.bf16.msra.mxu0 %v4038_v38 }
 0x281   : > { %3448 = vmatpush3.bf16.msra.mxu1 %v4038_v38 }
 0x2a3   : > { %v3891_v57 = vpop.permute.xlu1 %3890 }
 0x2a4   : > { %v3893_v23 = vunpack.i.h.bf16 %v3891_v57  ;;  %v3892_v20 = vunpack.i.l.bf16 %v3891_v57 }
 0x2a6   : > { %v1533_v13 = vsel %vm622_vm3, %v3892_v20, %v3893_v23 }
 0x2a7   : > { %v1684_v16 = vpack.c.bf16 %v1533_v13, %v1532_v58  ;;  %v3896_v40 = vpop.permute.xlu1 %3895 }
 0x2a8   : > { %v3898_v21 = vunpack.i.h.bf16 %v3896_v40  ;;  %v3897_v62 = vunpack.i.l.bf16 %v3896_v40  ;;  %v6414_v40 = vld [vmem:[#allocation17_spill] sm:$0xff] }
 0x2a9   : > { %3055 = vmatprep.mubr.msk.bf16.mxu1 %vm976_vm6, %v1684_v16 }
 0x2aa   : > { %v1317_v8 = vsel %vm594_vm2, %v3882_v25, %v3897_v62  ;;  %v1615_v60 = vsel %vm594_vm2, %v5263_v37, %v3898_v21  ;;  %v1318_v3 = vsel %vm594_vm2, %v3898_v21, %v3903_v44 }
 0x2ab   : > { %v1686_v42 = vpack.c.bf16 %v1616_v19, %v1615_v60  ;;  %v1641_v22 = vsel %vm622_vm3, %v1317_v8, %v3892_v20  ;;  %v6411_v20 = vld [vmem:[#allocation16_spill] sm:$0xff]  ;;  %v6415_v19 = vld [vmem:[#allocation18_spill] sm:$0xff] }
 0x2ac   : > { %v1683_v9 = vpack.c.bf16 %v1641_v22, %v1640_v53  ;;  %v6413_v38 = vpack.c.bf16 %v6411_v20, %v6412_v46 }
 0x2ad   : > { %v3906_v0 = vpop.permute.xlu0 %3905  ;;  %2070 = vmatprep.mubr.bf16.mxu0 %v1686_v42 }
 0x2ae   : > { %2071 = vmatmul.mubr.bf16.gmra.mrb[32].mxu0 %v6408_v26  ;;  %2207 = vmatmul.mubr.bf16.gmra.mrb[28].mxu1 %v1683_v9  ;;  %v3908_v37 = vunpack.i.h.bf16 %v3906_v0  ;;  %v3907_v31 = vunpack.i.l.bf16 %v3906_v0 }
 0x2b0   : > { %v1534_v30 = vsel %vm622_vm3, %v3907_v31, %v3908_v37  ;;  %v1642_v36 = vsel %vm622_vm3, %v1318_v3, %v3907_v31 }
 0x2b2   : > { %v3921_v6 = vpop.permute.xlu0 %3920  ;;  %v3911_v32 = vpop.permute.xlu1 %3910 }
 0x2b3   : > { %v3913_v45 = vunpack.i.h.bf16 %v3911_v32  ;;  %v3912_v2 = vunpack.i.l.bf16 %v3911_v32  ;;  %v3922_v41 = vunpack.i.l.bf16 %v3921_v6  ;;  %v3923_v63 = vunpack.i.h.bf16 %v3921_v6 }
 0x2b5   : > { %v1535_v54 = vsel %vm622_vm3, %v3912_v2, %v3913_v45  ;;  %v1618_v51 = vsel %vm594_vm2, %v6409_v10, %v3922_v41 }
 0x2b6   : > { %v3926_v11 = vpop.permute.xlu0 %3925  ;;  %v1688_v27 = vpack.c.bf16 %v1535_v54, %v1534_v30  ;;  %v6416_v30 = vld [vmem:[#allocation21_spill] sm:$0xff]  ;;  %v6417_v54 = vld [vmem:[#allocation19_spill] sm:$0xff] }
 0x2b7   : > { %v3916_v18 = vpop.permute.xlu1 %3915  ;;  %v3928_v33 = vunpack.i.h.bf16 %v3926_v11  ;;  %v3927_v25 = vunpack.i.l.bf16 %v3926_v11  ;;  %v6418_v11 = vpack.c.bf16 %v6416_v30, %v6417_v54 }
 0x2b8   : > { %v3918_v14 = vunpack.i.h.bf16 %v3916_v18  ;;  %v3917_v12 = vunpack.i.l.bf16 %v3916_v18  ;;  %3056 = vmatprep.mubr.msk.bf16.mxu1 %vm976_vm6, %v1688_v27 }
 0x2b9   : > { %v1536_v50 = vsel %vm622_vm3, %v3927_v25, %v3928_v33 }
 0x2ba   : > { %v1319_v35 = vsel %vm594_vm2, %v3902_v56, %v3917_v12  ;;  %v1617_v17 = vsel %vm594_vm2, %v6410_v59, %v3918_v14  ;;  %v1320_v56 = vsel %vm594_vm2, %v3918_v14, %v3923_v63 }
 0x2bb   : > { %v3941_v7 = vpop.permute.xlu0 %3940  ;;  %v3931_v1 = vpop.permute.xlu1 %3930  ;;  %v1690_v43 = vpack.c.bf16 %v1618_v51, %v1617_v17  ;;  %v1643_v48 = vsel %vm622_vm3, %v1319_v35, %v3912_v2  ;;  %v1644_v9 = vsel %vm622_vm3, %v1320_v56, %v3927_v25  ;;  %v6419_v35 = vld [vmem:[#allocation20_spill] sm:$0xff] }
 0x2bc   : > { %v3933_v15 = vunpack.i.h.bf16 %v3931_v1  ;;  %v3932_v52 = vunpack.i.l.bf16 %v3931_v1  ;;  %v1687_v29 = vpack.c.bf16 %v1643_v48, %v1642_v36  ;;  %v3942_v34 = vunpack.i.l.bf16 %v3941_v7 }
 0x2bd   : > { %2078 = vmatprep.mubr.bf16.mxu0 %v1690_v43  ;;  %v3943_v32 = vunpack.i.h.bf16 %v3941_v7 }
 0x2be   : > { %v1537_v57 = vsel %vm622_vm3, %v3932_v52, %v3933_v15  ;;  %2215 = vmatmul.mubr.bf16.gmra.mrb[32].mxu1 %v1687_v29  ;;  %2079 = vmatmul.mubr.bf16.gmra.mrb[36].mxu0 %v6413_v38  ;;  %v1620_v21 = vsel %vm594_vm2, %v6414_v40, %v3942_v34 }
 0x2bf   : > { %v3946_v23 = vpop.permute.xlu0 %3945  ;;  %v1692_v39 = vpack.c.bf16 %v1537_v57, %v1536_v50  ;;  %v3936_v58 = vpop.permute.xlu1 %3935  ;;  %v6420_v50 = vld [vmem:[#allocation23_spill] sm:$0xff]  ;;  %v6421_v57 = vld [vmem:[#allocation22_spill] sm:$0xff] }
 0x2c0   : > { %v3938_v13 = vunpack.i.h.bf16 %v3936_v58  ;;  %v3937_v16 = vunpack.i.l.bf16 %v3936_v58  ;;  %v3948_v62 = vunpack.i.h.bf16 %v3946_v23  ;;  %v3947_v55 = vunpack.i.l.bf16 %v3946_v23 }
 0x2c1   : > { %3057 = vmatprep.mubr.msk.bf16.mxu1 %vm976_vm6, %v1692_v39  ;;  %v6422_v23 = vpack.c.bf16 %v6420_v50, %v6421_v57 }
 0x2c2   : > { %v1321_v8 = vsel %vm594_vm2, %v3922_v41, %v3937_v16  ;;  %v1619_v42 = vsel %vm594_vm2, %v6415_v19, %v3938_v13  ;;  %v1538_v45 = vsel %vm622_vm3, %v3947_v55, %v3948_v62  ;;  %v1322_v18 = vsel %vm594_vm2, %v3938_v13, %v3943_v32  ;;  %v6423_v16 = vld [vmem:[#allocation24_spill] sm:$0xff] }
 0x2c3   : > { %v3961_v60 = vpop.permute.xlu0 %3960  ;;  %v3951_v53 = vpop.permute.xlu1 %3950  ;;  %v1694_v22 = vpack.c.bf16 %v1620_v21, %v1619_v42  ;;  %v1645_v0 = vsel %vm622_vm3, %v1321_v8, %v3932_v52  ;;  %v1646_v1 = vsel %vm622_vm3, %v1322_v18, %v3947_v55 }
 0x2c4   : > { %v3953_v26 = vunpack.i.h.bf16 %v3951_v53  ;;  %v3952_v37 = vunpack.i.l.bf16 %v3951_v53  ;;  %v1691_v31 = vpack.c.bf16 %v1645_v0, %v1644_v9  ;;  %v3962_v6 = vunpack.i.l.bf16 %v3961_v60 }
 0x2c5   : > { %2086 = vmatprep.mubr.bf16.mxu0 %v1694_v22  ;;  %v3963_v52 = vunpack.i.h.bf16 %v3961_v60 }
 0x2c6   : > { %v1539_v2 = vsel %vm622_vm3, %v3952_v37, %v3953_v26  ;;  %2087 = vmatmul.mubr.bf16.gmra.mrb[40].mxu0 %v6418_v11  ;;  %2223 = vmatmul.mubr.bf16.gmra.mrb[36].mxu1 %v1691_v31  ;;  %v1622_v3 = vsel %vm594_vm2, %v5375_v61, %v3962_v6 }
 0x2c7   : > { %v3966_v41 = vpop.permute.xlu0 %3965  ;;  %v1696_v44 = vpack.c.bf16 %v1539_v2, %v1538_v45  ;;  %v3956_v27 = vpop.permute.xlu1 %3955 }
 0x2c8   : > { %v3958_v14 = vunpack.i.h.bf16 %v3956_v27  ;;  %v3957_v12 = vunpack.i.l.bf16 %v3956_v27  ;;  %v3968_v10 = vunpack.i.h.bf16 %v3966_v41  ;;  %v3967_v51 = vunpack.i.l.bf16 %v3966_v41 }
 0x2c9   : > { %3058 = vmatprep.mubr.msk.bf16.mxu1 %vm976_vm6, %v1696_v44  ;;  %v1705_v44 = vpack.c.bf16 %v5610_v47, %v5610_v47 }
 0x2ca   : > { %v1323_v33 = vsel %vm594_vm2, %v3942_v34, %v3957_v12  ;;  %v1621_v7 = vsel %vm594_vm2, %v6419_v35, %v3958_v14  ;;  %v1540_v61 = vsel %vm622_vm3, %v3967_v51, %v3968_v10  ;;  %v1324_v38 = vsel %vm594_vm2, %v3958_v14, %v3963_v52 }
 0x2cb   : > { %v3981_v25 = vpop.permute.xlu0 %3980  ;;  %v3971_v59 = vpop.permute.xlu1 %3970  ;;  %v1698_v17 = vpack.c.bf16 %v1622_v3, %v1621_v7  ;;  %v1647_v43 = vsel %vm622_vm3, %v1323_v33, %v3952_v37  ;;  %v1648_v60 = vsel %vm622_vm3, %v1324_v38, %v3967_v51  ;;  %v6011_v33 = vld [vmem:[#allocation2] ss:$0 sm:$0xff] }
 0x2cc   : > { %v3973_v36 = vunpack.i.h.bf16 %v3971_v59  ;;  %v3972_v48 = vunpack.i.l.bf16 %v3971_v59  ;;  %v1695_v15 = vpack.c.bf16 %v1647_v43, %v1646_v1  ;;  %v3982_v29 = vunpack.i.l.bf16 %v3981_v25 }
 0x2cd   : > { %2094 = vmatprep.mubr.bf16.mxu0 %v1698_v17  ;;  %v3983_v53 = vunpack.i.h.bf16 %v3981_v25 }
 0x2ce   : > { %v1541_v34 = vsel %vm622_vm3, %v3972_v48, %v3973_v36  ;;  %2095 = vmatmul.mubr.bf16.gmra.mrb[44].mxu0 %v6422_v23  ;;  %2231 = vmatmul.mubr.bf16.gmra.mrb[40].mxu1 %v1695_v15  ;;  %v1624_v21 = vsel %vm594_vm2, %v5555_v5, %v3982_v29 }
 0x2cf   : > { %v3986_v63 = vpop.permute.xlu0 %3985  ;;  %v1700_v20 = vpack.c.bf16 %v1541_v34, %v1540_v61  ;;  %v3976_v46 = vpop.permute.xlu1 %3975 }
 0x2d0   : > { %v3978_v39 = vunpack.i.h.bf16 %v3976_v46  ;;  %v3977_v58 = vunpack.i.l.bf16 %v3976_v46  ;;  %v3988_v9 = vunpack.i.h.bf16 %v3986_v63  ;;  %v3987_v0 = vunpack.i.l.bf16 %v3986_v63 }
 0x2d1   : > { %3059 = vmatprep.mubr.msk.bf16.mxu1 %vm976_vm6, %v1700_v20 }
 0x2d2   : > { %v1325_v56 = vsel %vm594_vm2, %v3962_v6, %v3977_v58  ;;  %v1623_v40 = vsel %vm594_vm2, %v6423_v16, %v3978_v39  ;;  %v1326_v26 = vsel %vm594_vm2, %v3978_v39, %v3983_v53  ;;  %v1542_v45 = vsel %vm622_vm3, %v3987_v0, %v3988_v9 }
 0x2d3   : > { %v3996_v13 = vpop.permute.xlu0 %3995  ;;  %v1297_v55 = vpop.permute.xlu1 %1296  ;;  %v1702_v8 = vpack.c.bf16 %v1624_v21, %v1623_v40  ;;  %v1649_v19 = vsel %vm622_vm3, %v1325_v56, %v3972_v48  ;;  %v1650_v2 = vsel %vm622_vm3, %v1326_v26, %v3987_v0 }
 0x2d4   : > { %v3997_v62 = vunpack.i.l.bf16 %v3996_v13  ;;  %v1699_v42 = vpack.c.bf16 %v1649_v19, %v1648_v60  ;;  %v1327_v32 = vsel %vm594_vm2, %v3982_v29, %v1297_v55  ;;  %v3998_v30 = vunpack.i.h.bf16 %v3996_v13 }
 0x2d5   : > { %2102 = vmatprep.mubr.bf16.mxu0 %v1702_v8 }
 0x2d6   : > { %v1625_v22 = vsel %vm594_vm2, %v5601_v28, %v3997_v62  ;;  %2103 = vmatmul.mubr.bf16.gmra.mrb[48].mxu0 %v1701_v24  ;;  %2239 = vmatmul.mubr.bf16.gmra.mrb[44].mxu1 %v1699_v42  ;;  %v1328_v14 = vsel %vm594_vm2, %v3997_v62, %v3998_v30 }
 0x2d7   : > { %v1706_v5 = vpack.c.bf16 %v1625_v22, %v1625_v22  ;;  %v3991_v37 = vpop.permute.xlu1 %3990 }
 0x2d8   : > { %v3993_v31 = vunpack.i.h.bf16 %v3991_v37  ;;  %v3992_v6 = vunpack.i.l.bf16 %v3991_v37 }
 0x2d9   : > { %2110 = vmatprep.mubr.bf16.mxu0 %v1706_v5 }
 0x2da   : > { %v1543_v28 = vsel %vm622_vm3, %v3992_v6, %v3993_v31  ;;  %v1651_v41 = vsel %vm622_vm3, %v1327_v32, %v3992_v6 }
 0x2db   : > { %v1704_v4 = vpack.c.bf16 %v1543_v28, %v1542_v45  ;;  %v4001_v49 = vpop.permute.xlu1 %4000  ;;  %v1703_v24 = vpack.c.bf16 %v1651_v41, %v1650_v2 }
 0x2dc   : > { %v4003_v54 = vunpack.i.h.bf16 %v4001_v49  ;;  %v4002_v11 = vunpack.i.l.bf16 %v4001_v49 }
 0x2dd   : > { %3060 = vmatprep.mubr.msk.bf16.mxu1 %vm976_vm6, %v1704_v4 }
 0x2de   : > { %v1544_v27 = vsel %vm622_vm3, %v4002_v11, %v4003_v54  ;;  %2111 = vmatmul.mubr.bf16.gmra.mrb[52].mxu0 %v1705_v44  ;;  %2247 = vmatmul.mubr.bf16.gmra.mrb[48].mxu1 %v1703_v24  ;;  %v1652_v12 = vsel %vm622_vm3, %v1328_v14, %v4002_v11 }
 0x2df   : > { %v1708_v18 = vpack.c.bf16 %v1544_v27, %v1544_v27  ;;  %v1707_v3 = vpack.c.bf16 %v1652_v12, %v1652_v12 }
 0x2e1   : > { %3061 = vmatprep.mubr.msk.bf16.mxu1 %vm976_vm6, %v1708_v18 }
 0x2e6   : > { %2255 = vmatmul.mubr.bf16.gmra.mrb[52].mxu1 %v1707_v3 }
 0x312   : > { %v3283_v10 = vpop.f32.mrb[0].mxu0  ;;  %v2152_v51 = vpop.f32.mrb[0].mxu1 }
 0x313   : > { %v3284_v47 = vpop.f32.mrb[1].mxu0  ;;  %v2154_v35 = vpop.f32.mrb[1].mxu1 }
 0x314   : > { %v3285_v25 = vadd.f32 %v3284_v47, %v3283_v10  ;;  %v3286_v7 = vpop.f32.mrb[2].mxu0  ;;  %v2155_v59 = vpop.f32.mrb[2].mxu1 }
 0x315   : > { %v3287_v17 = vpop.f32.mrb[3].mxu0  ;;  %v2157_v36 = vpop.f32.mrb[3].mxu1 }
 0x316   : > { %v2009_v1 = vadd.f32 %v3285_v25, %v6011_v33  ;;  %v3288_v43 = vadd.f32 %v3287_v17, %v3286_v7 }
 0x318   : > { %v6014_v48 = vadd.f32 %v2152_v51, %v2009_v1  ;;  %v2012_v15 = vadd.f32 %v3288_v43, %v6011_v33 }
 0x31a   : > { %v6017_v52 = vadd.f32 %v2155_v59, %v2012_v15  ;;  %v3289_v61 = vpop.f32.mrb[4].mxu0  ;;  %v2262_v50 = vmul.f32 %v6014_v48, %v6014_v48 }
 0x31b   : > { %v3290_v29 = vpop.f32.mrb[5].mxu0 }
 0x31c   : > { %v3291_v34 = vadd.f32 %v3290_v29, %v3289_v61  ;;  %v3292_v63 = vpop.f32.mrb[6].mxu0  ;;  %v2263_v57 = vmul.f32 %v6017_v52, %v6017_v52 }
 0x31d   : > { %v3293_v23 = vpop.f32.mrb[7].mxu0 }
 0x31e   : > { %v3294_v20 = vadd.f32 %v3293_v23, %v3292_v63  ;;  %v2017_v46 = vadd.f32 %v3291_v34, %v6011_v33  ;;  %v2160_v38 = vpop.f32.mrb[4].mxu1  ;;  %v2289_v39 = vpack.c.bf16 %v2263_v57, %v2262_v50 }
 0x31f   : > { %v2162_v58 = vpop.f32.mrb[5].mxu1 }
 0x320   : > { %v6024_v56 = vadd.f32 %v2160_v38, %v2017_v46  ;;  %v2020_v13 = vadd.f32 %v3294_v20, %v6011_v33  ;;  %v2163_v16 = vpop.f32.mrb[6].mxu1  ;;  %3405 = vmatprep.mubr.bf16.mxu0 %v2289_v39 }
 0x321   : > { %v2165_v40 = vpop.f32.mrb[7].mxu1 }
 0x322   : > { %v6027_v21 = vadd.f32 %v2163_v16, %v2020_v13  ;;  %v2264_v8 = vmul.f32 %v6024_v56, %v6024_v56 }
 0x323   : > { %v3295_v62 = vpop.f32.mrb[8].mxu0 }
 0x324   : > { %v3296_v55 = vpop.f32.mrb[9].mxu0  ;;  %v2265_v60 = vmul.f32 %v6027_v21, %v6027_v21 }
 0x325   : > { %v3297_v19 = vadd.f32 %v3296_v55, %v3295_v62  ;;  %v3298_v42 = vpop.f32.mrb[10].mxu0 }
 0x326   : > { %v3299_v53 = vpop.f32.mrb[11].mxu0  ;;  %v2290_v22 = vpack.c.bf16 %v2265_v60, %v2264_v8  ;;  %v2168_v5 = vpop.f32.mrb[8].mxu1 }
 0x327   : > { %v3300_v9 = vadd.f32 %v3299_v53, %v3298_v42  ;;  %v2025_v0 = vadd.f32 %v3297_v19, %v6011_v33  ;;  %v2170_v26 = vpop.f32.mrb[9].mxu1 }
 0x328   : > { %v2171_v6 = vpop.f32.mrb[10].mxu1  ;;  %3406 = vmatmul.mubr.bf16.vlgmr.msra.gmra.mrb[56].mxu0 %v2290_v22 }
 0x329   : > { %v6034_v37 = vadd.f32 %v2168_v5, %v2025_v0  ;;  %v2028_v31 = vadd.f32 %v3300_v9, %v6011_v33  ;;  %v2173_v32 = vpop.f32.mrb[11].mxu1 }
 0x32b   : > { %v6037_v45 = vadd.f32 %v2171_v6, %v2028_v31  ;;  %v3301_v28 = vpop.f32.mrb[12].mxu0  ;;  %v2266_v41 = vmul.f32 %v6034_v37, %v6034_v37 }
 0x32c   : > { %v3302_v2 = vpop.f32.mrb[13].mxu0 }
 0x32d   : > { %v2267_v4 = vmul.f32 %v6037_v45, %v6037_v45  ;;  %v3303_v49 = vadd.f32 %v3302_v2, %v3301_v28  ;;  %v3304_v24 = vpop.f32.mrb[14].mxu0 }
 0x32e   : > { %v3305_v30 = vpop.f32.mrb[15].mxu0 }
 0x32f   : > { %v3306_v54 = vadd.f32 %v3305_v30, %v3304_v24  ;;  %v2033_v11 = vadd.f32 %v3303_v49, %v6011_v33  ;;  %v2176_v44 = vpop.f32.mrb[12].mxu1  ;;  %v2291_v27 = vpack.c.bf16 %v2267_v4, %v2266_v41 }
 0x330   : > { %v2178_v18 = vpop.f32.mrb[13].mxu1 }
 0x331   : > { %v6044_v14 = vadd.f32 %v2176_v44, %v2033_v11  ;;  %v2036_v12 = vadd.f32 %v3306_v54, %v6011_v33  ;;  %v2179_v3 = vpop.f32.mrb[14].mxu1  ;;  %3409 = vmatprep.mubr.bf16.mxu0 %v2291_v27 }
 0x332   : > { %v2181_v10 = vpop.f32.mrb[15].mxu1 }
 0x333   : > { %v6047_v51 = vadd.f32 %v2179_v3, %v2036_v12  ;;  %v3307_v47 = vpop.f32.mrb[16].mxu0  ;;  %v2268_v35 = vmul.f32 %v6044_v14, %v6044_v14 }
 0x334   : > { %v3308_v25 = vpop.f32.mrb[17].mxu0 }
 0x335   : > { %v2269_v7 = vmul.f32 %v6047_v51, %v6047_v51  ;;  %v3309_v59 = vadd.f32 %v3308_v25, %v3307_v47  ;;  %v3310_v17 = vpop.f32.mrb[18].mxu0 }
 0x336   : > { %v3311_v1 = vpop.f32.mrb[19].mxu0 }
 0x337   : > { %v3312_v43 = vadd.f32 %v3311_v1, %v3310_v17  ;;  %v2041_v36 = vadd.f32 %v3309_v59, %v6011_v33  ;;  %v2184_v15 = vpop.f32.mrb[16].mxu1  ;;  %v2292_v61 = vpack.c.bf16 %v2269_v7, %v2268_v35 }
 0x338   : > { %v2186_v29 = vpop.f32.mrb[17].mxu1 }
 0x339   : > { %v6054_v34 = vadd.f32 %v2184_v15, %v2041_v36  ;;  %v2044_v63 = vadd.f32 %v3312_v43, %v6011_v33  ;;  %v2187_v50 = vpop.f32.mrb[18].mxu1  ;;  %3410 = vmatmul.mubr.bf16.gmra.mrb[60].mxu0 %v2292_v61 }
 0x33a   : > { %v2189_v57 = vpop.f32.mrb[19].mxu1 }
 0x33b   : > { %v6057_v23 = vadd.f32 %v2187_v50, %v2044_v63  ;;  %v3313_v20 = vpop.f32.mrb[20].mxu0  ;;  %v2270_v38 = vmul.f32 %v6054_v34, %v6054_v34 }
 0x33c   : > { %v3314_v46 = vpop.f32.mrb[21].mxu0 }
 0x33d   : > { %v2271_v39 = vmul.f32 %v6057_v23, %v6057_v23  ;;  %v3315_v58 = vadd.f32 %v3314_v46, %v3313_v20  ;;  %v3316_v13 = vpop.f32.mrb[22].mxu0 }
 0x33e   : > { %v3317_v16 = vpop.f32.mrb[23].mxu0 }
 0x33f   : > { %v3318_v40 = vadd.f32 %v3317_v16, %v3316_v13  ;;  %v2049_v62 = vadd.f32 %v3315_v58, %v6011_v33  ;;  %v2192_v55 = vpop.f32.mrb[20].mxu1  ;;  %v2293_v8 = vpack.c.bf16 %v2271_v39, %v2270_v38 }
 0x340   : > { %v2194_v60 = vpop.f32.mrb[21].mxu1 }
 0x341   : > { %v6064_v19 = vadd.f32 %v2192_v55, %v2049_v62  ;;  %v2052_v42 = vadd.f32 %v3318_v40, %v6011_v33  ;;  %v2195_v53 = vpop.f32.mrb[22].mxu1  ;;  %3413 = vmatprep.mubr.bf16.mxu0 %v2293_v8 }
 0x342   : > { %v2197_v22 = vpop.f32.mrb[23].mxu1 }
 0x343   : > { %v6067_v9 = vadd.f32 %v2195_v53, %v2052_v42  ;;  %v3319_v0 = vpop.f32.mrb[24].mxu0  ;;  %v2272_v26 = vmul.f32 %v6064_v19, %v6064_v19 }
 0x344   : > { %v3320_v5 = vpop.f32.mrb[25].mxu0 }
 0x345   : > { %v2273_v31 = vmul.f32 %v6067_v9, %v6067_v9  ;;  %v3321_v6 = vadd.f32 %v3320_v5, %v3319_v0  ;;  %v3322_v32 = vpop.f32.mrb[26].mxu0 }
 0x346   : > { %v3323_v28 = vpop.f32.mrb[27].mxu0 }
 0x347   : > { %v3324_v2 = vadd.f32 %v3323_v28, %v3322_v32  ;;  %v2057_v41 = vadd.f32 %v3321_v6, %v6011_v33  ;;  %v2200_v4 = vpop.f32.mrb[24].mxu1  ;;  %v2294_v49 = vpack.c.bf16 %v2273_v31, %v2272_v26 }
 0x348   : > { %v2202_v24 = vpop.f32.mrb[25].mxu1 }
 0x349   : > { %v6074_v30 = vadd.f32 %v2200_v4, %v2057_v41  ;;  %v2060_v54 = vadd.f32 %v3324_v2, %v6011_v33  ;;  %v2203_v11 = vpop.f32.mrb[26].mxu1  ;;  %3414 = vmatmul.mubr.bf16.gmra.mrb[64].mxu0 %v2294_v49 }
 0x34a   : > { %v2205_v44 = vpop.f32.mrb[27].mxu1 }
 0x34b   : > { %v6077_v27 = vadd.f32 %v2203_v11, %v2060_v54  ;;  %v3325_v18 = vpop.f32.mrb[28].mxu0  ;;  %v2274_v3 = vmul.f32 %v6074_v30, %v6074_v30 }
 0x34c   : > { %v3326_v12 = vpop.f32.mrb[29].mxu0 }
 0x34d   : > { %v2275_v10 = vmul.f32 %v6077_v27, %v6077_v27  ;;  %v3327_v47 = vadd.f32 %v3326_v12, %v3325_v18  ;;  %v3328_v25 = vpop.f32.mrb[30].mxu0 }
 0x34e   : > { %v3329_v35 = vpop.f32.mrb[31].mxu0 }
 0x34f   : > { %v3330_v7 = vadd.f32 %v3329_v35, %v3328_v25  ;;  %v2295_v59 = vpack.c.bf16 %v2275_v10, %v2274_v3  ;;  %v2065_v17 = vadd.f32 %v3327_v47, %v6011_v33 }
 0x351   : > { %3417 = vmatprep.mubr.bf16.mxu0 %v2295_v59  ;;  %v2068_v29 = vadd.f32 %v3330_v7, %v6011_v33 }
 0x381   : > { %v3331_v1 = vpop.f32.mrb[32].mxu0  ;;  %v2208_v43 = vpop.f32.mrb[28].mxu1 }
 0x382   : > { %v6084_v36 = vadd.f32 %v2208_v43, %v2065_v17  ;;  %v3332_v15 = vpop.f32.mrb[33].mxu0  ;;  %v2210_v61 = vpop.f32.mrb[29].mxu1 }
 0x383   : > { %v3333_v63 = vadd.f32 %v3332_v15, %v3331_v1  ;;  %v3334_v50 = vpop.f32.mrb[34].mxu0  ;;  %v2211_v57 = vpop.f32.mrb[30].mxu1 }
 0x384   : > { %v6087_v20 = vadd.f32 %v2211_v57, %v2068_v29  ;;  %v3335_v46 = vpop.f32.mrb[35].mxu0  ;;  %v2213_v38 = vpop.f32.mrb[31].mxu1  ;;  %v2276_v58 = vmul.f32 %v6084_v36, %v6084_v36 }
 0x385   : > { %v3336_v39 = vadd.f32 %v3335_v46, %v3334_v50  ;;  %v2073_v40 = vadd.f32 %v3333_v63, %v6011_v33 }
 0x386   : > { %v2277_v13 = vmul.f32 %v6087_v20, %v6087_v20 }
 0x387   : > { %v2076_v53 = vadd.f32 %v3336_v39, %v6011_v33 }
 0x388   : > { %v2296_v16 = vpack.c.bf16 %v2277_v13, %v2276_v58 }
 0x38a   : > { %3418 = vmatmul.mubr.bf16.gmra.mrb[68].mxu0 %v2296_v16 }
 0x391   : > { %v3337_v62 = vpop.f32.mrb[36].mxu0  ;;  %v2216_v55 = vpop.f32.mrb[32].mxu1 }
 0x392   : > { %v6094_v8 = vadd.f32 %v2216_v55, %v2073_v40  ;;  %v3338_v60 = vpop.f32.mrb[37].mxu0  ;;  %v2218_v42 = vpop.f32.mrb[33].mxu1 }
 0x393   : > { %v3339_v22 = vadd.f32 %v3338_v60, %v3337_v62  ;;  %v3340_v0 = vpop.f32.mrb[38].mxu0  ;;  %v2219_v5 = vpop.f32.mrb[34].mxu1 }
 0x394   : > { %v6097_v26 = vadd.f32 %v2219_v5, %v2076_v53  ;;  %v3341_v31 = vpop.f32.mrb[39].mxu0  ;;  %v2221_v6 = vpop.f32.mrb[35].mxu1  ;;  %v2278_v28 = vmul.f32 %v6094_v8, %v6094_v8 }
 0x395   : > { %v3342_v32 = vadd.f32 %v3341_v31, %v3340_v0  ;;  %v2081_v41 = vadd.f32 %v3339_v22, %v6011_v33 }
 0x396   : > { %v2279_v2 = vmul.f32 %v6097_v26, %v6097_v26 }
 0x397   : > { %v2084_v18 = vadd.f32 %v3342_v32, %v6011_v33 }
 0x398   : > { %v2297_v4 = vpack.c.bf16 %v2279_v2, %v2278_v28 }
 0x399   : > { %v3343_v49 = vpop.f32.mrb[40].mxu0  ;;  %v2224_v24 = vpop.f32.mrb[36].mxu1 }
 0x39a   : > { %v6104_v54 = vadd.f32 %v2224_v24, %v2081_v41  ;;  %v3344_v11 = vpop.f32.mrb[41].mxu0  ;;  %v2226_v44 = vpop.f32.mrb[37].mxu1  ;;  %3421 = vmatprep.mubr.bf16.mxu0 %v2297_v4 }
 0x39b   : > { %v3345_v12 = vadd.f32 %v3344_v11, %v3343_v49  ;;  %v3346_v3 = vpop.f32.mrb[42].mxu0  ;;  %v2227_v10 = vpop.f32.mrb[38].mxu1 }
 0x39c   : > { %v6107_v47 = vadd.f32 %v2227_v10, %v2084_v18  ;;  %v3347_v25 = vpop.f32.mrb[43].mxu0  ;;  %v2229_v35 = vpop.f32.mrb[39].mxu1  ;;  %v2280_v59 = vmul.f32 %v6104_v54, %v6104_v54 }
 0x39d   : > { %v3348_v7 = vadd.f32 %v3347_v25, %v3346_v3  ;;  %v2089_v1 = vadd.f32 %v3345_v12, %v6011_v33 }
 0x39e   : > { %v2281_v17 = vmul.f32 %v6107_v47, %v6107_v47 }
 0x39f   : > { %v2092_v57 = vadd.f32 %v3348_v7, %v6011_v33 }
 0x3a0   : > { %v2298_v43 = vpack.c.bf16 %v2281_v17, %v2280_v59 }
 0x3a1   : > { %v3349_v15 = vpop.f32.mrb[44].mxu0  ;;  %v2232_v61 = vpop.f32.mrb[40].mxu1 }
 0x3a2   : > { %v6114_v29 = vadd.f32 %v2232_v61, %v2089_v1  ;;  %v3350_v63 = vpop.f32.mrb[45].mxu0  ;;  %v2234_v50 = vpop.f32.mrb[41].mxu1  ;;  %3422 = vmatmul.mubr.bf16.gmra.mrb[72].mxu0 %v2298_v43 }
 0x3a3   : > { %v3351_v46 = vadd.f32 %v3350_v63, %v3349_v15  ;;  %v3352_v38 = vpop.f32.mrb[46].mxu0  ;;  %v2235_v39 = vpop.f32.mrb[42].mxu1 }
 0x3a4   : > { %v6117_v58 = vadd.f32 %v2235_v39, %v2092_v57  ;;  %v3353_v13 = vpop.f32.mrb[47].mxu0  ;;  %v2237_v16 = vpop.f32.mrb[43].mxu1  ;;  %v2282_v62 = vmul.f32 %v6114_v29, %v6114_v29 }
 0x3a5   : > { %v3354_v40 = vadd.f32 %v3353_v13, %v3352_v38  ;;  %v2097_v60 = vadd.f32 %v3351_v46, %v6011_v33 }
 0x3a6   : > { %v2283_v55 = vmul.f32 %v6117_v58, %v6117_v58 }
 0x3a7   : > { %v2100_v6 = vadd.f32 %v3354_v40, %v6011_v33 }
 0x3a8   : > { %v2299_v42 = vpack.c.bf16 %v2283_v55, %v2282_v62 }
 0x3a9   : > { %v3355_v53 = vpop.f32.mrb[48].mxu0  ;;  %v2240_v22 = vpop.f32.mrb[44].mxu1 }
 0x3aa   : > { %v6124_v0 = vadd.f32 %v2240_v22, %v2097_v60  ;;  %v3356_v5 = vpop.f32.mrb[49].mxu0  ;;  %v2242_v31 = vpop.f32.mrb[45].mxu1  ;;  %3425 = vmatprep.mubr.bf16.mxu1 %v2299_v42 }
 0x3ab   : > { %v3357_v32 = vadd.f32 %v3356_v5, %v3355_v53  ;;  %v3358_v28 = vpop.f32.mrb[50].mxu0  ;;  %v2243_v2 = vpop.f32.mrb[46].mxu1 }
 0x3ac   : > { %v6127_v41 = vadd.f32 %v2243_v2, %v2100_v6  ;;  %v3359_v4 = vpop.f32.mrb[51].mxu0  ;;  %v2245_v49 = vpop.f32.mrb[47].mxu1  ;;  %v2284_v11 = vmul.f32 %v6124_v0, %v6124_v0 }
 0x3ad   : > { %v3360_v24 = vadd.f32 %v3359_v4, %v3358_v28  ;;  %v2105_v12 = vadd.f32 %v3357_v32, %v6011_v33 }
 0x3ae   : > { %v2285_v44 = vmul.f32 %v6127_v41, %v6127_v41 }
 0x3af   : > { %v2108_v59 = vadd.f32 %v3360_v24, %v6011_v33 }
 0x3b0   : > { %v2300_v18 = vpack.c.bf16 %v2285_v44, %v2284_v11 }
 0x3b1   : > { %v3361_v3 = vpop.f32.mrb[52].mxu0  ;;  %v2248_v10 = vpop.f32.mrb[48].mxu1 }
 0x3b2   : > { %v6134_v25 = vadd.f32 %v2248_v10, %v2105_v12  ;;  %v3362_v35 = vpop.f32.mrb[53].mxu0  ;;  %v2250_v7 = vpop.f32.mrb[49].mxu1  ;;  %3426 = vmatmul.mubr.bf16.vlgmr.msra.gmra.mrb[56].mxu1 %v2300_v18 }
 0x3b3   : > { %v3363_v17 = vadd.f32 %v3362_v35, %v3361_v3  ;;  %v3364_v1 = vpop.f32.mrb[54].mxu0  ;;  %v2251_v43 = vpop.f32.mrb[50].mxu1 }
 0x3b4   : > { %v6137_v15 = vadd.f32 %v2251_v43, %v2108_v59  ;;  %v3365_v61 = vpop.f32.mrb[55].mxu0  ;;  %v2253_v63 = vpop.f32.mrb[51].mxu1  ;;  %v2286_v50 = vmul.f32 %v6134_v25, %v6134_v25 }
 0x3b5   : > { %v2113_v46 = vadd.f32 %v3363_v17, %v6011_v33 }
 0x3b6   : > { %v2287_v57 = vmul.f32 %v6137_v15, %v6137_v15 }
 0x3b8   : > { %v2301_v38 = vpack.c.bf16 %v2287_v57, %v2286_v50 }
 0x3b9   : > { %v2256_v39 = vpop.f32.mrb[52].mxu1 }
 0x3ba   : > { %v6144_v13 = vadd.f32 %v2256_v39, %v2113_v46  ;;  %v2258_v16 = vpop.f32.mrb[53].mxu1  ;;  %3429 = vmatprep.mubr.bf16.mxu1 %v2301_v38 }
 0x3bb   : > { %v2259_v40 = vpop.f32.mrb[54].mxu1 }
 0x3bc   : > { %v2288_v62 = vmul.f32 %v6144_v13, %v6144_v13  ;;  %v2260_v55 = vpop.f32.mrb[55].mxu1 }
 0x3be   : > { %v2302_v60 = vpack.c.bf16 %v2288_v62, %v2288_v62 }
 0x3c0   : > { %3430 = vmatmul.mubr.bf16.gmra.mrb[60].mxu1 %v2302_v60 }
 0x3fb   : > { %v3407_v42 = vpop.f32.mrb[56].mxu0 }
 0x3fc   : > { %4039 = vrsqrt.f32 %v3407_v42  ;;  %v2401_v53 = vpop.f32.mrb[57].mxu0  ;;  %v2729_v5 = vadd.f32 1.0, %v3407_v42  ;;  %vm2527_vm8 = vcmp.eq.f32.partialorder %v3407_v42, inf  ;;  %vm2529_vm9 = vcmp.eq.f32.partialorder %v3407_v42, 0.0 }
 0x3fd   : > { %4041 = vrsqrt.f32 %v2401_v53  ;;  %v3408_v22 = vpop.f32.mrb[58].mxu0  ;;  %v2727_v6 = vadd.f32 1.0, %v2401_v53  ;;  %v2530_v24 = vand.u32 2147483648, %v3407_v42  ;;  %vm2513_vm10 = vcmp.eq.f32.partialorder %v2401_v53, inf }
 0x3fe   : > { %4043 = vrsqrt.f32 %v3408_v22  ;;  %v2404_v33 = vpop.f32.mrb[59].mxu0  ;;  %v2730_v31 = vadd.f32 1.0, %v3408_v22  ;;  %v2516_v18 = vand.u32 2147483648, %v2401_v53  ;;  %vm2534_vm11 = vcmp.eq.f32.partialorder %v3408_v22, inf }
 0x3ff   : > { %4045 = vrsqrt.f32 %v2404_v33  ;;  %v2728_v32 = vadd.f32 1.0, %v2404_v33  ;;  %v2537_v35 = vand.u32 2147483648, %v3408_v22  ;;  %vm2515_vm12 = vcmp.eq.f32.partialorder %v2401_v53, 0.0 }
 0x400   : > { %4047 = vrcp.f32 %v2729_v5  ;;  %vm2536_vm13 = vcmp.eq.f32.partialorder %v3408_v22, 0.0  ;;  %vm2520_vm14 = vcmp.eq.f32.partialorder %v2404_v33, inf  ;;  %vm2522_vm15 = vcmp.eq.f32.partialorder %v2404_v33, 0.0 }
 0x401   : > { %4049 = vrcp.f32 %v2730_v31 }
 0x402   : > { %4051 = vrcp.f32 %v2727_v6 }
 0x403   : > { %4053 = vrcp.f32 %v2728_v32 }
 0x406   : > { %v4040_v28 = vpop.eup %4039 }
 0x407   : > { %v4042_v2 = vpop.eup %4041  ;;  %v2526_v4 = vmul.f32 %v4040_v28, %v3407_v42 }
 0x408   : > { %v4044_v49 = vpop.eup %4043  ;;  %v2512_v11 = vmul.f32 %v4042_v2, %v2401_v53 }
 0x409   : > { %v2528_v44 = vsel %vm2527_vm8, %v3407_v42, %v2526_v4  ;;  %v2533_v12 = vmul.f32 %v4044_v49, %v3408_v22  ;;  %v4046_v1 = vpop.eup %4045 }
 0x40a   : > { %v2531_v3 = vsel %vm2529_vm9, %v2530_v24, %v2528_v44  ;;  %v2514_v10 = vsel %vm2513_vm10, %v2401_v53, %v2512_v11  ;;  %v4048_v50 = vpop.eup %4047  ;;  %v2519_v46 = vmul.f32 %v4046_v1, %v2404_v33 }
 0x40b   : > { %v2702_v7 = vmul.f32 %v2531_v3, %v6024_v56  ;;  %v2535_v59 = vsel %vm2534_vm11, %v3408_v22, %v2533_v12  ;;  %v2517_v43 = vsel %vm2515_vm12, %v2516_v18, %v2514_v10  ;;  %v4050_v39 = vpop.eup %4049  ;;  %v2523_v56 = vand.u32 2147483648, %v2404_v33 }
 0x40c   : > { %v3411_v17 = vpop.f32.mrb[60].mxu0  ;;  %v2538_v61 = vsel %vm2536_vm13, %v2537_v35, %v2535_v59  ;;  %v2700_v62 = vmul.f32 %v2517_v43, %v6014_v48  ;;  %v2521_v60 = vsel %vm2520_vm14, %v2404_v33, %v2519_v46  ;;  %v4052_v42 = vpop.eup %4051 }
 0x40d   : > { %4055 = vrsqrt.f32 %v3411_v17  ;;  %v2417_v63 = vpop.f32.mrb[61].mxu0  ;;  %v2703_v57 = vmul.f32 %v2538_v61, %v6027_v21  ;;  %v2783_v40 = vmul.f32 %v4048_v50, %v2702_v7  ;;  %v2524_v21 = vsel %vm2522_vm15, %v2523_v56, %v2521_v60  ;;  %v4054_v5 = vpop.eup %4053 }
 0x40e   : > { %v6150_v38 = vpop.f32.mrb[62].mxu0  ;;  %4057 = vrsqrt.f32 %v2417_v63  ;;  %v2701_v22 = vmul.f32 %v2524_v21, %v6017_v52  ;;  %v2733_v31 = vadd.f32 1.0, %v3411_v17  ;;  %v2781_v48 = vmul.f32 %v4052_v42, %v2700_v62 }
 0x40f   : > { %v6152_v16 = vpop.f32.mrb[63].mxu0  ;;  %v2784_v55 = vmul.f32 %v4050_v39, %v2703_v57  ;;  %4059 = vrsqrt.f32 %v6150_v38  ;;  %v2734_v6 = vadd.f32 1.0, %v6150_v38  ;;  %v2731_v32 = vadd.f32 1.0, %v2417_v63 }
 0x410   : > { %v2782_v33 = vmul.f32 %v4054_v5, %v2701_v22  ;;  %4061 = vrsqrt.f32 %v6152_v16  ;;  %v2732_v2 = vadd.f32 1.0, %v6152_v16  ;;  %vm2555_vm0 = vcmp.eq.f32.partialorder %v3411_v17, inf }
 0x411   : > { %v3186_v53 = vpack.c.bf16 %v2784_v55, %v2783_v40  ;;  %4063 = vrcp.f32 %v2733_v31  ;;  %v2558_v11 = vand.u32 2147483648, %v3411_v17  ;;  %vm2557_vm1 = vcmp.eq.f32.partialorder %v3411_v17, 0.0 }
 0x412   : > { %v3181_v28 = vpack.c.bf16 %v2782_v33, %v2781_v48  ;;  %4065 = vrcp.f32 %v2734_v6  ;;  %vm2541_vm2 = vcmp.eq.f32.partialorder %v2417_v63, inf  ;;  %v2544_v10 = vand.u32 2147483648, %v2417_v63 }
 0x413   : > { %3255 = vst [vmem:[%s6160_s27 + $0x8] sm:$0xff] %v3186_v53   ;;  %4067 = vrcp.f32 %v2731_v32  ;;  %vm2543_vm3 = vcmp.eq.f32.partialorder %v2417_v63, 0.0  ;;  %vm2562_vm4 = vcmp.eq.f32.partialorder %v6150_v38, inf  ;;  %vm2564_vm5 = vcmp.eq.f32.partialorder %v6150_v38, 0.0 }
 0x414   : > { %3182 = vst [vmem:[%s6160_s27] sm:$0xff] %v3181_v28   ;;  %4069 = vrcp.f32 %v2732_v2  ;;  %vm2548_vm6 = vcmp.eq.f32.partialorder %v6152_v16, inf  ;;  %v2551_v56 = vand.u32 2147483648, %v6152_v16  ;;  %vm2550_vm7 = vcmp.eq.f32.partialorder %v6152_v16, 0.0 }
 0x417   : > { %v4056_v4 = vpop.eup %4055 }
 0x418   : > { %v2554_v49 = vmul.f32 %v4056_v4, %v3411_v17  ;;  %v4058_v52 = vpop.eup %4057 }
 0x419   : > { %v2540_v44 = vmul.f32 %v4058_v52, %v2417_v63  ;;  %v4060_v18 = vpop.eup %4059 }
 0x41a   : > { %v2556_v24 = vsel %vm2555_vm0, %v3411_v17, %v2554_v49  ;;  %v2561_v7 = vmul.f32 %v4060_v18, %v6150_v38  ;;  %v4062_v1 = vpop.eup %4061  ;;  %v2565_v17 = vand.u32 2147483648, %v6150_v38 }
 0x41b   : > { %v2559_v12 = vsel %vm2557_vm1, %v2558_v11, %v2556_v24  ;;  %v2542_v3 = vsel %vm2541_vm2, %v2417_v63, %v2540_v44  ;;  %v2547_v63 = vmul.f32 %v4062_v1, %v6152_v16  ;;  %v4064_v40 = vpop.eup %4063 }
 0x41c   : > { %v3415_v35 = vpop.f32.mrb[64].mxu0  ;;  %v2545_v43 = vsel %vm2543_vm3, %v2544_v10, %v2542_v3  ;;  %v2706_v50 = vmul.f32 %v2559_v12, %v6044_v14  ;;  %v2563_v57 = vsel %vm2562_vm4, %v6150_v38, %v2561_v7  ;;  %v4066_v38 = vpop.eup %4065 }
 0x41d   : > { %4071 = vrsqrt.f32 %v3415_v35  ;;  %v6170_v59 = vpop.f32.mrb[65].mxu0  ;;  %v2566_v39 = vsel %vm2564_vm5, %v2565_v17, %v2563_v57  ;;  %v2704_v62 = vmul.f32 %v2545_v43, %v6034_v37  ;;  %v2549_v14 = vsel %vm2548_vm6, %v6152_v16, %v2547_v63  ;;  %v4068_v21 = vpop.eup %4067 }
 0x41e   : > { %v3416_v61 = vpop.f32.mrb[66].mxu0  ;;  %4073 = vrsqrt.f32 %v6170_v59  ;;  %v2707_v55 = vmul.f32 %v2566_v39, %v6047_v51  ;;  %v2552_v60 = vsel %vm2550_vm7, %v2551_v56, %v2549_v14  ;;  %v2787_v42 = vmul.f32 %v4064_v40, %v2706_v50  ;;  %v4070_v31 = vpop.eup %4069 }
 0x41f   : > { %v6179_v46 = vpop.f32.mrb[67].mxu0  ;;  %4075 = vrsqrt.f32 %v3416_v61  ;;  %v2705_v22 = vmul.f32 %v2552_v60, %v6037_v45  ;;  %v2737_v5 = vadd.f32 1.0, %v3415_v35  ;;  %v2738_v48 = vadd.f32 1.0, %v3416_v61 }
 0x420   : > { %v2788_v53 = vmul.f32 %v4066_v38, %v2707_v55  ;;  %v2785_v37 = vmul.f32 %v4068_v21, %v2704_v62  ;;  %4077 = vrsqrt.f32 %v6179_v46  ;;  %v2735_v16 = vadd.f32 1.0, %v6170_v59 }
 0x421   : > { %v2786_v51 = vmul.f32 %v4070_v31, %v2705_v22  ;;  %4079 = vrcp.f32 %v2737_v5  ;;  %v2736_v28 = vadd.f32 1.0, %v6179_v46  ;;  %vm2583_vm8 = vcmp.eq.f32.partialorder %v3415_v35, inf }
 0x422   : > { %v3196_v33 = vpack.c.bf16 %v2788_v53, %v2787_v42  ;;  %4081 = vrcp.f32 %v2738_v48  ;;  %v2586_v49 = vand.u32 2147483648, %v3415_v35  ;;  %vm2585_vm9 = vcmp.eq.f32.partialorder %v3415_v35, 0.0 }
 0x423   : > { %v3191_v32 = vpack.c.bf16 %v2786_v51, %v2785_v37  ;;  %4083 = vrcp.f32 %v2735_v16  ;;  %vm2569_vm10 = vcmp.eq.f32.partialorder %v6170_v59, inf  ;;  %v2572_v18 = vand.u32 2147483648, %v6170_v59 }
 0x424   : > { %3257 = vst [vmem:[%s6160_s27 + $0x18] sm:$0xff] %v3196_v33   ;;  %4085 = vrcp.f32 %v2736_v28  ;;  %vm2571_vm11 = vcmp.eq.f32.partialorder %v6170_v59, 0.0  ;;  %vm2590_vm12 = vcmp.eq.f32.partialorder %v3416_v61, inf  ;;  %v2593_v3 = vand.u32 2147483648, %v3416_v61 }
 0x425   : > { %3256 = vst [vmem:[%s6160_s27 + $0x10] sm:$0xff] %v3191_v32   ;;  %vm2592_vm13 = vcmp.eq.f32.partialorder %v3416_v61, 0.0  ;;  %vm2576_vm14 = vcmp.eq.f32.partialorder %v6179_v46, inf  ;;  %v2579_v63 = vand.u32 2147483648, %v6179_v46  ;;  %vm2578_vm15 = vcmp.eq.f32.partialorder %v6179_v46, 0.0 }
 0x427   : > { %v4072_v6 = vpop.eup %4071 }
 0x428   : > { %v2582_v2 = vmul.f32 %v4072_v6, %v3415_v35  ;;  %v4074_v45 = vpop.eup %4073 }
 0x429   : > { %v2568_v52 = vmul.f32 %v4074_v45, %v6170_v59  ;;  %v4076_v24 = vpop.eup %4075 }
 0x42a   : > { %v2584_v4 = vsel %vm2583_vm8, %v3415_v35, %v2582_v2  ;;  %v2589_v12 = vmul.f32 %v4076_v24, %v3416_v61  ;;  %v4078_v10 = vpop.eup %4077 }
 0x42b   : > { %v2587_v11 = vsel %vm2585_vm9, %v2586_v49, %v2584_v4  ;;  %v2570_v44 = vsel %vm2569_vm10, %v6170_v59, %v2568_v52  ;;  %v2575_v17 = vmul.f32 %v4078_v10, %v6179_v46  ;;  %v4080_v50 = vpop.eup %4079 }
 0x42c   : > { %v2710_v7 = vmul.f32 %v2587_v11, %v6064_v19  ;;  %v2573_v1 = vsel %vm2571_vm11, %v2572_v18, %v2570_v44  ;;  %v2591_v43 = vsel %vm2590_vm12, %v3416_v61, %v2589_v12  ;;  %v4082_v59 = vpop.eup %4081 }
 0x42d   : > { %v2594_v35 = vsel %vm2592_vm13, %v2593_v3, %v2591_v43  ;;  %v2708_v39 = vmul.f32 %v2573_v1, %v6054_v34  ;;  %v2577_v19 = vsel %vm2576_vm14, %v6179_v46, %v2575_v17  ;;  %v4084_v62 = vpop.eup %4083 }
 0x42e   : > { %v2711_v57 = vmul.f32 %v2594_v35, %v6067_v9  ;;  %v2791_v61 = vmul.f32 %v4080_v50, %v2710_v7  ;;  %v2580_v40 = vsel %vm2578_vm15, %v2579_v63, %v2577_v19  ;;  %v4086_v9 = vpop.eup %4085 }
 0x42f   : > { %v2709_v55 = vmul.f32 %v2580_v40, %v6057_v23  ;;  %v2789_v38 = vmul.f32 %v4084_v62, %v2708_v39 }
 0x430   : > { %v2792_v56 = vmul.f32 %v4082_v59, %v2711_v57 }
 0x431   : > { %v2790_v60 = vmul.f32 %v4086_v9, %v2709_v55 }
 0x432   : > { %v3206_v14 = vpack.c.bf16 %v2792_v56, %v2791_v61 }
 0x433   : > { %v3201_v21 = vpack.c.bf16 %v2790_v60, %v2789_v38 }
 0x434   : > { %3259 = vst [vmem:[%s6160_s27 + $0x28] sm:$0xff] %v3206_v14  }
 0x435   : > { %3258 = vst [vmem:[%s6160_s27 + $0x20] sm:$0xff] %v3201_v21  }
 0x45d   : > { %v3419_v42 = vpop.f32.mrb[68].mxu0 }
 0x45e   : > { %4087 = vrsqrt.f32 %v3419_v42  ;;  %v2449_v34 = vpop.f32.mrb[69].mxu0  ;;  %v2741_v22 = vadd.f32 1.0, %v3419_v42  ;;  %vm2611_vm0 = vcmp.eq.f32.partialorder %v3419_v42, inf  ;;  %vm2613_vm1 = vcmp.eq.f32.partialorder %v3419_v42, 0.0 }
 0x45f   : > { %4089 = vrsqrt.f32 %v2449_v34  ;;  %v3420_v53 = vpop.f32.mrb[70].mxu0  ;;  %v2739_v31 = vadd.f32 1.0, %v2449_v34  ;;  %v2614_v16 = vand.u32 2147483648, %v3419_v42  ;;  %vm2597_vm2 = vcmp.eq.f32.partialorder %v2449_v34, inf }
 0x460   : > { %4091 = vrsqrt.f32 %v3420_v53  ;;  %v2452_v46 = vpop.f32.mrb[71].mxu0  ;;  %v2742_v5 = vadd.f32 1.0, %v3420_v53  ;;  %v2600_v28 = vand.u32 2147483648, %v2449_v34  ;;  %vm2618_vm3 = vcmp.eq.f32.partialorder %v3420_v53, inf }
 0x461   : > { %4093 = vrsqrt.f32 %v2452_v46  ;;  %v2740_v23 = vadd.f32 1.0, %v2452_v46  ;;  %v2621_v49 = vand.u32 2147483648, %v3420_v53  ;;  %vm2599_vm4 = vcmp.eq.f32.partialorder %v2449_v34, 0.0 }
 0x462   : > { %4095 = vrcp.f32 %v2741_v22  ;;  %vm2620_vm5 = vcmp.eq.f32.partialorder %v3420_v53, 0.0  ;;  %vm2604_vm6 = vcmp.eq.f32.partialorder %v2452_v46, inf  ;;  %vm2606_vm7 = vcmp.eq.f32.partialorder %v2452_v46, 0.0 }
 0x463   : > { %4097 = vrcp.f32 %v2742_v5  ;;  %v2607_v1 = vand.u32 2147483648, %v2452_v46 }
 0x464   : > { %4099 = vrcp.f32 %v2739_v31 }
 0x465   : > { %4101 = vrcp.f32 %v2740_v23 }
 0x468   : > { %v4088_v48 = vpop.eup %4087 }
 0x469   : > { %v4090_v37 = vpop.eup %4089  ;;  %v2610_v33 = vmul.f32 %v4088_v48, %v3419_v42 }
 0x46a   : > { %v4092_v51 = vpop.eup %4091  ;;  %v2596_v6 = vmul.f32 %v4090_v37, %v2449_v34 }
 0x46b   : > { %v2612_v32 = vsel %vm2611_vm0, %v3419_v42, %v2610_v33  ;;  %v2617_v2 = vmul.f32 %v4092_v51, %v3420_v53  ;;  %v4094_v11 = vpop.eup %4093 }
 0x46c   : > { %v2615_v45 = vsel %vm2613_vm1, %v2614_v16, %v2612_v32  ;;  %v2598_v4 = vsel %vm2597_vm2, %v2449_v34, %v2596_v6  ;;  %v4096_v12 = vpop.eup %4095  ;;  %v2603_v10 = vmul.f32 %v4094_v11, %v2452_v46 }
 0x46d   : > { %v2714_v52 = vmul.f32 %v2615_v45, %v6084_v36  ;;  %v2619_v24 = vsel %vm2618_vm3, %v3420_v53, %v2617_v2  ;;  %v2601_v44 = vsel %vm2599_vm4, %v2600_v28, %v2598_v4  ;;  %v4098_v7 = vpop.eup %4097 }
 0x46e   : > { %v2622_v18 = vsel %vm2620_vm5, %v2621_v49, %v2619_v24  ;;  %v2712_v35 = vmul.f32 %v2601_v44, %v6074_v30  ;;  %v2605_v36 = vsel %vm2604_vm6, %v2452_v46, %v2603_v10  ;;  %v4100_v57 = vpop.eup %4099 }
 0x46f   : > { %v2715_v3 = vmul.f32 %v2622_v18, %v6087_v20  ;;  %v2795_v43 = vmul.f32 %v4096_v12, %v2714_v52  ;;  %v2608_v50 = vsel %vm2606_vm7, %v2607_v1, %v2605_v36  ;;  %v4102_v39 = vpop.eup %4101 }
 0x470   : > { %v2713_v59 = vmul.f32 %v2608_v50, %v6077_v27  ;;  %v2793_v20 = vmul.f32 %v4100_v57, %v2712_v35 }
 0x471   : > { %v2796_v17 = vmul.f32 %v4098_v7, %v2715_v3 }
 0x472   : > { %v2794_v61 = vmul.f32 %v4102_v39, %v2713_v59 }
 0x473   : > { %v3216_v63 = vpack.c.bf16 %v2796_v17, %v2795_v43 }
 0x474   : > { %v3211_v62 = vpack.c.bf16 %v2794_v61, %v2793_v20 }
 0x475   : > { %v3423_v19 = vpop.f32.mrb[72].mxu0  ;;  %3261 = vst [vmem:[%s6160_s27 + $0x38] sm:$0xff] %v3216_v63  }
 0x476   : > { %4103 = vrsqrt.f32 %v3423_v19  ;;  %v2465_v56 = vpop.f32.mrb[73].mxu0  ;;  %3260 = vst [vmem:[%s6160_s27 + $0x30] sm:$0xff] %v3211_v62   ;;  %v2745_v30 = vadd.f32 1.0, %v3423_v19  ;;  %vm2639_vm8 = vcmp.eq.f32.partialorder %v3423_v19, inf  ;;  %v2642_v53 = vand.u32 2147483648, %v3423_v19 }
 0x477   : > { %4105 = vrsqrt.f32 %v2465_v56  ;;  %v3424_v40 = vpop.f32.mrb[74].mxu0  ;;  %v2743_v14 = vadd.f32 1.0, %v2465_v56  ;;  %vm2625_vm9 = vcmp.eq.f32.partialorder %v2465_v56, inf  ;;  %vm2641_vm10 = vcmp.eq.f32.partialorder %v3423_v19, 0.0 }
 0x478   : > { %v2468_v55 = vpop.f32.mrb[75].mxu0  ;;  %4107 = vrsqrt.f32 %v3424_v40  ;;  %v2746_v9 = vadd.f32 1.0, %v3424_v40  ;;  %v2628_v31 = vand.u32 2147483648, %v2465_v56  ;;  %vm2627_vm11 = vcmp.eq.f32.partialorder %v2465_v56, 0.0 }
 0x479   : > { %4109 = vrsqrt.f32 %v2468_v55  ;;  %v2744_v38 = vadd.f32 1.0, %v2468_v55  ;;  %vm2646_vm12 = vcmp.eq.f32.partialorder %v3424_v40, inf  ;;  %vm2648_vm13 = vcmp.eq.f32.partialorder %v3424_v40, 0.0 }
 0x47a   : > { %4111 = vrcp.f32 %v2745_v30  ;;  %v2649_v16 = vand.u32 2147483648, %v3424_v40  ;;  %vm2632_vm14 = vcmp.eq.f32.partialorder %v2468_v55, inf  ;;  %v2635_v49 = vand.u32 2147483648, %v2468_v55 }
 0x47b   : > { %4113 = vrcp.f32 %v2746_v9  ;;  %vm2634_vm15 = vcmp.eq.f32.partialorder %v2468_v55, 0.0 }
 0x47c   : > { %4115 = vrcp.f32 %v2743_v14 }
 0x47d   : > { %4117 = vrcp.f32 %v2744_v38 }
 0x480   : > { %v4104_v60 = vpop.eup %4103 }
 0x481   : > { %v4106_v27 = vpop.eup %4105  ;;  %v2638_v21 = vmul.f32 %v4104_v60, %v3423_v19 }
 0x482   : > { %v2624_v42 = vmul.f32 %v4106_v27, %v2465_v56  ;;  %v4108_v22 = vpop.eup %4107 }
 0x483   : > { %v2640_v34 = vsel %vm2639_vm8, %v3423_v19, %v2638_v21  ;;  %v2645_v48 = vmul.f32 %v4108_v22, %v3424_v40  ;;  %v4110_v33 = vpop.eup %4109 }
 0x484   : > { %v2626_v46 = vsel %vm2625_vm9, %v2465_v56, %v2624_v42  ;;  %v2643_v5 = vsel %vm2641_vm10, %v2642_v53, %v2640_v34  ;;  %v2631_v2 = vmul.f32 %v4110_v33, %v2468_v55  ;;  %v4112_v52 = vpop.eup %4111 }
 0x485   : > { %v6215_v23 = vpop.f32.mrb[56].mxu1  ;;  %v2629_v51 = vsel %vm2627_vm11, %v2628_v31, %v2626_v46  ;;  %v2718_v32 = vmul.f32 %v2643_v5, %v6104_v54  ;;  %v2647_v28 = vsel %vm2646_vm12, %v3424_v40, %v2645_v48  ;;  %v4114_v18 = vpop.eup %4113 }
 0x486   : > { %4119 = vrsqrt.f32 %v6215_v23  ;;  %v6218_v37 = vpop.f32.mrb[57].mxu1  ;;  %v2650_v4 = vsel %vm2648_vm13, %v2649_v16, %v2647_v28  ;;  %v2716_v24 = vmul.f32 %v2629_v51, %v6094_v8  ;;  %v2633_v44 = vsel %vm2632_vm14, %v2468_v55, %v2631_v2  ;;  %v4116_v54 = vpop.eup %4115 }
 0x487   : > { %v6220_v6 = vpop.f32.mrb[58].mxu1  ;;  %4121 = vrsqrt.f32 %v6218_v37  ;;  %v2719_v11 = vmul.f32 %v2650_v4, %v6107_v47  ;;  %v2636_v12 = vsel %vm2634_vm15, %v2635_v49, %v2633_v44  ;;  %v2799_v3 = vmul.f32 %v4112_v52, %v2718_v32  ;;  %v4118_v43 = vpop.eup %4117 }
 0x488   : > { %v6224_v45 = vpop.f32.mrb[59].mxu1  ;;  %4123 = vrsqrt.f32 %v6220_v6  ;;  %v2717_v7 = vmul.f32 %v2636_v12, %v6097_v26  ;;  %v2749_v1 = vadd.f32 1.0, %v6215_v23  ;;  %v2750_v8 = vadd.f32 1.0, %v6220_v6 }
 0x489   : > { %v2800_v10 = vmul.f32 %v4114_v18, %v2719_v11  ;;  %4125 = vrsqrt.f32 %v6224_v45  ;;  %v2797_v47 = vmul.f32 %v4116_v54, %v2716_v24  ;;  %v2747_v36 = vadd.f32 1.0, %v6218_v37 }
 0x48a   : > { %v2798_v17 = vmul.f32 %v4118_v43, %v2717_v7  ;;  %v2748_v50 = vadd.f32 1.0, %v6224_v45  ;;  %4127 = vrcp.f32 %v2749_v1  ;;  %vm2667_vm0 = vcmp.eq.f32.partialorder %v6215_v23, inf }
 0x48b   : > { %v3226_v35 = vpack.c.bf16 %v2800_v10, %v2799_v3  ;;  %4129 = vrcp.f32 %v2750_v8  ;;  %v2670_v19 = vand.u32 2147483648, %v6215_v23  ;;  %vm2669_vm1 = vcmp.eq.f32.partialorder %v6215_v23, 0.0 }
 0x48c   : > { %v3221_v63 = vpack.c.bf16 %v2798_v17, %v2797_v47  ;;  %4131 = vrcp.f32 %v2747_v36  ;;  %vm2653_vm2 = vcmp.eq.f32.partialorder %v6218_v37, inf  ;;  %v2656_v56 = vand.u32 2147483648, %v6218_v37 }
 0x48d   : > { %3263 = vst [vmem:[%s6160_s27 + $0x48] sm:$0xff] %v3226_v35   ;;  %4133 = vrcp.f32 %v2748_v50  ;;  %vm2655_vm3 = vcmp.eq.f32.partialorder %v6218_v37, 0.0  ;;  %vm2674_vm4 = vcmp.eq.f32.partialorder %v6220_v6, inf  ;;  %vm2676_vm5 = vcmp.eq.f32.partialorder %v6220_v6, 0.0 }
 0x48e   : > { %3262 = vst [vmem:[%s6160_s27 + $0x40] sm:$0xff] %v3221_v63   ;;  %v2677_v42 = vand.u32 2147483648, %v6220_v6  ;;  %vm2660_vm6 = vcmp.eq.f32.partialorder %v6224_v45, inf  ;;  %vm2662_vm7 = vcmp.eq.f32.partialorder %v6224_v45, 0.0  ;;  %v2663_v31 = vand.u32 2147483648, %v6224_v45 }
 0x490   : > { %v4120_v57 = vpop.eup %4119 }
 0x491   : > { %v2666_v26 = vmul.f32 %v4120_v57, %v6215_v23  ;;  %v4122_v59 = vpop.eup %4121 }
 0x492   : > { %v2652_v20 = vmul.f32 %v4122_v59, %v6218_v37  ;;  %v4124_v62 = vpop.eup %4123 }
 0x493   : > { %v2668_v39 = vsel %vm2667_vm0, %v6215_v23, %v2666_v26  ;;  %v3431_v61 = vpop.f32.mrb[60].mxu1  ;;  %v2673_v38 = vmul.f32 %v4124_v62, %v6220_v6  ;;  %v4126_v21 = vpop.eup %4125 }
 0x494   : > { %4135 = vrsqrt.f32 %v3431_v61  ;;  %v6245_v40 = vpop.f32.mrb[61].mxu1  ;;  %v2671_v55 = vsel %vm2669_vm1, %v2670_v19, %v2668_v39  ;;  %v2654_v30 = vsel %vm2653_vm2, %v6218_v37, %v2652_v20  ;;  %v2753_v60 = vadd.f32 1.0, %v3431_v61  ;;  %v4128_v23 = vpop.eup %4127 }
 0x495   : > { %v3432_v9 = vpop.f32.mrb[62].mxu1  ;;  %v2657_v14 = vsel %vm2655_vm3, %v2656_v56, %v2654_v30  ;;  %4137 = vrsqrt.f32 %v6245_v40  ;;  %v2722_v34 = vmul.f32 %v2671_v55, %v6124_v0  ;;  %v2675_v53 = vsel %vm2674_vm4, %v6220_v6, %v2673_v38  ;;  %v4130_v33 = vpop.eup %4129 }
 0x496   : > { %v2500_v27 = vpop.f32.mrb[63].mxu1  ;;  %v2659_v46 = vmul.f32 %v4126_v21, %v6224_v45  ;;  %v2720_v22 = vmul.f32 %v2657_v14, %v6114_v29  ;;  %v2678_v5 = vsel %vm2676_vm5, %v2677_v42, %v2675_v53  ;;  %v2751_v0 = vadd.f32 1.0, %v6245_v40  ;;  %v4132_v6 = vpop.eup %4131 }
 0x497   : > { %4139 = vrsqrt.f32 %v2500_v27  ;;  %v2723_v48 = vmul.f32 %v2678_v5, %v6127_v41  ;;  %v2752_v16 = vadd.f32 1.0, %v2500_v27  ;;  %v2803_v32 = vmul.f32 %v4128_v23, %v2722_v34  ;;  %v4134_v2 = vpop.eup %4133 }
 0x498   : > { %v2661_v37 = vsel %vm2660_vm6, %v6224_v45, %v2659_v46  ;;  %4141 = vrcp.f32 %v2753_v60  ;;  %v2801_v49 = vmul.f32 %v4132_v6, %v2720_v22  ;;  %vm2695_vm8 = vcmp.eq.f32.partialorder %v3431_v61, inf }
 0x499   : > { %v2664_v51 = vsel %vm2662_vm7, %v2663_v31, %v2661_v37  ;;  %v2804_v28 = vmul.f32 %v4130_v33, %v2723_v48  ;;  %4143 = vrcp.f32 %v2751_v0  ;;  %v2698_v44 = vand.u32 2147483648, %v3431_v61 }
 0x49a   : > { %v2721_v29 = vmul.f32 %v2664_v51, %v6117_v58  ;;  %4145 = vrcp.f32 %v2752_v16  ;;  %vm2697_vm9 = vcmp.eq.f32.partialorder %v3431_v61, 0.0  ;;  %vm2681_vm10 = vcmp.eq.f32.partialorder %v6245_v40, inf }
 0x49b   : > { %v3236_v52 = vpack.c.bf16 %v2804_v28, %v2803_v32  ;;  %v2684_v54 = vand.u32 2147483648, %v6245_v40  ;;  %vm2683_vm11 = vcmp.eq.f32.partialorder %v6245_v40, 0.0  ;;  %vm2688_vm12 = vcmp.eq.f32.partialorder %v2500_v27, inf }
 0x49c   : > { %v2802_v41 = vmul.f32 %v4134_v2, %v2721_v29  ;;  %v2691_v35 = vand.u32 2147483648, %v2500_v27  ;;  %vm2690_vm13 = vcmp.eq.f32.partialorder %v2500_v27, 0.0 }
 0x49d   : > { %3265 = vst [vmem:[%s6160_s27 + $0x58] sm:$0xff] %v3236_v52  }
 0x49e   : > { %v4136_v4 = vpop.eup %4135  ;;  %v3231_v11 = vpack.c.bf16 %v2802_v41, %v2801_v49 }
 0x49f   : > { %v2694_v45 = vmul.f32 %v4136_v4, %v3431_v61  ;;  %v4138_v24 = vpop.eup %4137 }
 0x4a0   : > { %v2680_v12 = vmul.f32 %v4138_v24, %v6245_v40  ;;  %3264 = vst [vmem:[%s6160_s27 + $0x50] sm:$0xff] %v3231_v11  }
 0x4a1   : > { %v2696_v18 = vsel %vm2695_vm8, %v3431_v61, %v2694_v45  ;;  %v4140_v3 = vpop.eup %4139 }
 0x4a2   : > { %v2699_v58 = vsel %vm2697_vm9, %v2698_v44, %v2696_v18  ;;  %v2682_v7 = vsel %vm2681_vm10, %v6245_v40, %v2680_v12  ;;  %v4142_v1 = vpop.eup %4141  ;;  %v2687_v8 = vmul.f32 %v4140_v3, %v2500_v27 }
 0x4a3   : > { %v2726_v10 = vmul.f32 %v2699_v58, %v6144_v13  ;;  %v2685_v43 = vsel %vm2683_vm11, %v2684_v54, %v2682_v7  ;;  %v4144_v63 = vpop.eup %4143 }
 0x4a4   : > { %v2724_v17 = vmul.f32 %v2685_v43, %v6134_v25  ;;  %v2689_v36 = vsel %vm2688_vm12, %v2500_v27, %v2687_v8  ;;  %v4146_v26 = vpop.eup %4145 }
 0x4a5   : > { %v2807_v47 = vmul.f32 %v4142_v1, %v2726_v10  ;;  %v2692_v57 = vsel %vm2690_vm13, %v2691_v35, %v2689_v36 }
 0x4a6   : > { %v2725_v13 = vmul.f32 %v2692_v57, %v6137_v15  ;;  %v2805_v59 = vmul.f32 %v4144_v63, %v2724_v17 }
 0x4a7   : > { %v3125_v50 = vpack.c.bf16 %v2807_v47, %v2807_v47 }
 0x4a8   : > { %v2806_v39 = vmul.f32 %v4146_v26, %v2725_v13 }
 0x4a9   : > { %2943 = vst [vmem:[%s6160_s27 + $0x68] sm:$0xf] %v3125_v50 }
 0x4aa   : > { %v3241_v19 = vpack.c.bf16 %v2806_v39, %v2805_v59 }
 0x4ac   : > { %3266 = vst [vmem:[%s6160_s27 + $0x60] sm:$0xff] %v3241_v19  }
 0x4ad PF: > { %s15_s15 = sadd.s32 1, %s4185_s15  }
 0x4ae   : > { %p12_p2 = scmp.ge.s32.totalorder %s15_s15, 4  }
 0x4b0   :  { %14 = sbr.rel (!%p12_p2) target bundleno = 1 (0x1), region = 71 }
 0x4b7   :  { %2965 = vsyncpa [#allocation3], 1 }
 0x4b8   :  { %2967 = vsyncpa [#allocation3 + $0x1], 1 }

// kernel: _forward_im2col.1
= control target key start
LH: loop header
LB: loop body
LE: loop exit
PB: predicated region body
PF: predicated region fallthrough
CT: control target
= control target key end

     0   :  { %s1397_s15 = smov 0   ;;  %s1617_s0 = inlined_call_operand.vmem [shape: bf16[128,512], index: 0, kind: input, shape index: {}]   ;;  %s1618_s1 = inlined_call_operand.vmem [shape: bf16[512,128], index: 1, kind: input, shape index: {}]   ;;  %s1619_s2 = inlined_call_operand.vmem [shape: f32[1,128], index: 2, kind: input, shape index: {}]   ;;  %s1620_s3 = inlined_call_operand.vmem [shape: bf16[128,128], index: 3, kind: input, shape index: {}]   ;;  %s1621_s4 = inlined_call_operand.vmem [shape: bf16[128,128], index: 4, kind: output, shape index: {}]  }
   0x1 LB: > { %s1019_s16 = sadd.s32 4294967295, %s1370_s15   ;;  %p1023_p0 = scmp.ge.s32.totalorder %s1370_s15, 1  ;;  %s1370_s15 = sphi %s1397_s15, %s14_s15  }
   0x2   : > { %p164_p1 = scmp.lt.s32.totalorder %s1370_s15, 3 }
   0x4   : > { %p165_p2 = pnand %p1023_p0, %p164_p1 }
   0x5   : > { %v1268_v0 = vld [vmem:[%s1618_s1 + $0x40] sm:$0xff] (!%p165_p2)   ;;  %v1272_v4 = vld [vmem:[%s1618_s1 + $0x48] sm:$0xff] (!%p165_p2)   ;;  %v1276_v8 = vld [vmem:[%s1618_s1 + $0x50] sm:$0xff] (!%p165_p2)   ;;  %s1024_s25 = sshll.u32 (!%p165_p2), %s1019_s16, 3 }
   0x6   : > { %168 = sbr.rel (%p165_p2) target bundleno = 525 (0x20d), region = 36  ;;  %v1269_v1 = vld [vmem:[%s1618_s1 + $0xc0] sm:$0xff] (!%p165_p2)   ;;  %1128 = vmatprep.subr.bf16.mxu0 (!%p165_p2), %v1268_v0  ;;  %v1273_v5 = vld [vmem:[%s1618_s1 + $0xc8] sm:$0xff] (!%p165_p2)   ;;  %v1277_v9 = vld [vmem:[%s1618_s1 + $0xd0] sm:$0xff] (!%p165_p2)   ;;  %p192_p3 = scmp.lt.s32.totalorder (!%p165_p2), %s1024_s25, 15 }
   0x7   : > { %v1270_v2 = vld [vmem:[%s1618_s1] sm:$0xff] (!%p165_p2)   ;;  %1168 = vmatprep.subr.bf16.mxu1 (!%p165_p2), %v1269_v1  ;;  %v1274_v6 = vld [vmem:[%s1618_s1 + $0x8] sm:$0xff] (!%p165_p2)   ;;  %v1278_v10 = vld [vmem:[%s1618_s1 + $0x10] sm:$0xff] (!%p165_p2)  }
   0x8   : > { %v1271_v3 = vld [vmem:[%s1618_s1 + $0x80] sm:$0xff] (!%p165_p2)   ;;  %1129 = vmatpush3.bf16.msra.mxu0 (!%p165_p2), %v1270_v2  ;;  %v1275_v7 = vld [vmem:[%s1618_s1 + $0x88] sm:$0xff] (!%p165_p2)   ;;  %v1279_v11 = vld [vmem:[%s1618_s1 + $0x90] sm:$0xff] (!%p165_p2)  }
   0x9   : > { %1169 = vmatpush3.bf16.msra.mxu1 (!%p165_p2), %v1271_v3  ;;  %1130 = vmatprep.subr.bf16.mxu0 (!%p165_p2), %v1272_v4  ;;  %v1280_v12 = vld [vmem:[%s1618_s1 + $0x58] sm:$0xff] (!%p165_p2)   ;;  %v1284_v16 = vld [vmem:[%s1618_s1 + $0x60] sm:$0xff] (!%p165_p2)   ;;  %v1288_v20 = vld [vmem:[%s1618_s1 + $0x68] sm:$0xff] (!%p165_p2)  }
   0xa   : > { %1170 = vmatprep.subr.bf16.mxu1 (!%p165_p2), %v1273_v5  ;;  %v1281_v13 = vld [vmem:[%s1618_s1 + $0xd8] sm:$0xff] (!%p165_p2)   ;;  %v1285_v17 = vld [vmem:[%s1618_s1 + $0xe0] sm:$0xff] (!%p165_p2)   ;;  %v1289_v21 = vld [vmem:[%s1618_s1 + $0xe8] sm:$0xff] (!%p165_p2)  }
   0xb   : > { %v1282_v14 = vld [vmem:[%s1618_s1 + $0x18] sm:$0xff] (!%p165_p2)   ;;  %v1286_v18 = vld [vmem:[%s1618_s1 + $0x20] sm:$0xff] (!%p165_p2)   ;;  %v1290_v22 = vld [vmem:[%s1618_s1 + $0x28] sm:$0xff] (!%p165_p2)  }
   0xc   : > { %1131 = vmatpush3.bf16.msra.mxu0 (!%p165_p2), %v1274_v6  ;;  %v1283_v15 = vld [vmem:[%s1618_s1 + $0x98] sm:$0xff] (!%p165_p2)   ;;  %v1287_v19 = vld [vmem:[%s1618_s1 + $0xa0] sm:$0xff] (!%p165_p2)   ;;  %v1291_v23 = vld [vmem:[%s1618_s1 + $0xa8] sm:$0xff] (!%p165_p2)  }
   0xd   : > { %1171 = vmatpush3.bf16.msra.mxu1 %v1275_v7  ;;  %1132 = vmatprep.subr.bf16.mxu0 %v1276_v8  ;;  %s1623_s25 = smov (!%p192_p3, %s1024_s25), 15  ;;  %v1292_v24 = vld [vmem:[%s1618_s1 + $0x70] sm:$0xff]   ;;  %v1296_v28 = vld [vmem:[%s1618_s1 + $0x78] sm:$0xff]   ;;  %v1324_v42 = vld [vmem:[%s1620_s3] sm:$0xff]  }
   0xe   : > { %1172 = vmatprep.subr.bf16.mxu1 %v1277_v9  ;;  %v1293_v25 = vld [vmem:[%s1618_s1 + $0xf0] sm:$0xff]   ;;  %s1096_s23 = sshll.u32 %s1623_s25, 4  ;;  %v1297_v29 = vld [vmem:[%s1618_s1 + $0xf8] sm:$0xff]   ;;  %v1325_v43 = vld [vmem:[%s1620_s3 + $0x8] sm:$0xff]   ;;  %s1028_s6 = sshll.u32 %s1623_s25, 2 }
   0xf   : > { %v1294_v26 = vld [vmem:[%s1618_s1 + $0x30] sm:$0xff]   ;;  %s1503_s7 = scalar_lea.vmem %s1617_s0, %s1096_s23  ;;  %v1298_v30 = vld [vmem:[%s1618_s1 + $0x38] sm:$0xff]   ;;  %v1328_v52 = vld [vmem:[%s1620_s3 + $0x20] sm:$0xff]   ;;  %s1603_s8 = scalar_lea.vmem %s1621_s4, %s1028_s6 }
  0x10   : > { %1133 = vmatpush3.bf16.msra.mxu0 %v1278_v10  ;;  %v1295_v27 = vld [vmem:[%s1618_s1 + $0xb0] sm:$0xff]   ;;  %v1299_v31 = vld [vmem:[%s1618_s1 + $0xb8] sm:$0xff]   ;;  %v1329_v53 = vld [vmem:[%s1620_s3 + $0x28] sm:$0xff]  }
  0x11   : > { %1173 = vmatpush3.bf16.msra.mxu1 %v1279_v11  ;;  %1134 = vmatprep.subr.bf16.mxu0 %v1280_v12  ;;  %v1300_v32 = vld [vmem:[%s1503_s7] ss:$16 sps:$4 sm:$0xff]   ;;  %v1302_v33 = vld [vmem:[%s1503_s7 + $0x4] ss:$16 sps:$4 sm:$0xff]   ;;  %v1303_v34 = vld [vmem:[%s1503_s7 + $0x8] ss:$16 sps:$4 sm:$0xff]  }
  0x12   : > { %1174 = vmatprep.subr.bf16.mxu1 %v1281_v13  ;;  %v1305_v35 = vld [vmem:[%s1503_s7 + $0xc] ss:$16 sps:$4 sm:$0xff]   ;;  %596 = vmatprep.mubr.bf16.mxu0 %v1302_v33  ;;  %v1306_v36 = vld [vmem:[%s1503_s7 + $0x24] ss:$16 sps:$4 sm:$0xff]   ;;  %v1310_v38 = vld [vmem:[%s1503_s7 + $0x20] ss:$16 sps:$4 sm:$0xff]  }
  0x13   : > { %661 = vmatprep.mubr.bf16.mxu1 %v1305_v35  ;;  %v1308_v37 = vld [vmem:[%s1503_s7 + $0x2c] ss:$16 sps:$4 sm:$0xff]   ;;  %v1311_v39 = vld [vmem:[%s1503_s7 + $0x28] ss:$16 sps:$4 sm:$0xff]   ;;  %v1312_v40 = vld [vmem:[%s1503_s7 + $0x44] ss:$16 sps:$4 sm:$0xff]  }
  0x14   : > { %1135 = vmatpush3.bf16.msra.mxu0 %v1282_v14  ;;  %v1314_v41 = vld [vmem:[%s1503_s7 + $0x4c] ss:$16 sps:$4 sm:$0xff]   ;;  %v1316_v44 = vld [vmem:[%s1503_s7 + $0x40] ss:$16 sps:$4 sm:$0xff]   ;;  %v1317_v46 = vld [vmem:[%s1503_s7 + $0x48] ss:$16 sps:$4 sm:$0xff]  }
  0x15   : > { %1175 = vmatpush3.bf16.msra.mxu1 %v1283_v15  ;;  %1136 = vmatprep.subr.bf16.mxu0 %v1284_v16  ;;  %v1326_v45 = vld [vmem:[%s1620_s3 + $0x10] sm:$0xff]   ;;  %v1320_v48 = vld [vmem:[%s1503_s7 + $0x6c] ss:$16 sps:$4 sm:$0xff]   ;;  %v1323_v50 = vld [vmem:[%s1503_s7 + $0x68] ss:$16 sps:$4 sm:$0xff]  }
  0x16   : > { %1176 = vmatprep.subr.bf16.mxu1 %v1285_v17  ;;  %v1318_v47 = vld [vmem:[%s1503_s7 + $0x64] ss:$16 sps:$4 sm:$0xff]   ;;  %v1322_v49 = vld [vmem:[%s1503_s7 + $0x60] ss:$16 sps:$4 sm:$0xff]   ;;  %v1327_v51 = vld [vmem:[%s1620_s3 + $0x18] sm:$0xff]  }
  0x17   : > { %v1330_v54 = vld [vmem:[%s1620_s3 + $0x30] sm:$0xff]   ;;  %v1331_v55 = vld [vmem:[%s1620_s3 + $0x38] sm:$0xff]   ;;  %v1554_v58 = vld [vmem:[%s1619_s2] ss:$0 sm:$0xff] }
  0x18   : > { %1137 = vmatpush3.bf16.msra.mxu0 %v1286_v18 }
  0x19   : > { %1177 = vmatpush3.bf16.msra.mxu1 %v1287_v19  ;;  %1138 = vmatprep.subr.bf16.mxu0 %v1288_v20 }
  0x1a   : > { %1178 = vmatprep.subr.bf16.mxu1 %v1289_v21 }
  0x1c   : > { %1139 = vmatpush3.bf16.msra.mxu0 %v1290_v22 }
  0x1d   : > { %1179 = vmatpush3.bf16.msra.mxu1 %v1291_v23  ;;  %1140 = vmatprep.subr.bf16.mxu0 %v1292_v24 }
  0x1e   : > { %1180 = vmatprep.subr.bf16.mxu1 %v1293_v25 }
  0x20   : > { %1141 = vmatpush3.bf16.msra.mxu0 %v1294_v26 }
  0x21   : > { %1181 = vmatpush3.bf16.msra.mxu1 %v1295_v27  ;;  %1142 = vmatprep.subr.bf16.mxu0 %v1296_v28 }
  0x22   : > { %1182 = vmatprep.subr.bf16.mxu1 %v1297_v29 }
  0x24   : > { %1143 = vmatpush3.bf16.msra.mxu0 %v1298_v30 }
  0x25   : > { %1183 = vmatpush3.bf16.msra.mxu1 %v1299_v31  ;;  %1220 = vmatprep.subr.bf16.mxu0 %v1324_v42 }
  0x26   : > { %1244 = vmatprep.subr.bf16.mxu1 %v1324_v42 }
  0x27   : > { %597 = vmatmul.mubr.bf16.vlgmr.msra.gmra.mrb[0].mxu0 %v1300_v32 }
  0x28   : > { %662 = vmatmul.mubr.bf16.vlgmr.msra.gmra.mrb[0].mxu1 %v1303_v34  ;;  %604 = vmatprep.mubr.bf16.mxu0 %v1306_v36 }
  0x29   : > { %669 = vmatprep.mubr.bf16.mxu1 %v1308_v37  ;;  %1221 = vmatpush3.bf16.msra.mxu0 %v1324_v42 }
  0x2a   : > { %1222 = vmatprep.subr.bf16.mxu0 %v1325_v43  ;;  %1252 = vmatpush3.bf16.msra.mxu1 %v1324_v42 }
  0x2b   : > { %1245 = vmatprep.subr.bf16.mxu1 %v1325_v43 }
  0x2d   : > { %1223 = vmatpush3.bf16.msra.mxu0 %v1325_v43 }
  0x2e   : > { %1224 = vmatprep.subr.bf16.mxu0 %v1326_v45  ;;  %1253 = vmatpush3.bf16.msra.mxu1 %v1325_v43 }
  0x2f   : > { %605 = vmatmul.mubr.bf16.gmra.mrb[4].mxu0 %v1310_v38  ;;  %1246 = vmatprep.subr.bf16.mxu1 %v1326_v45 }
  0x30   : > { %670 = vmatmul.mubr.bf16.gmra.mrb[4].mxu1 %v1311_v39  ;;  %612 = vmatprep.mubr.bf16.mxu0 %v1312_v40 }
  0x31   : > { %677 = vmatprep.mubr.bf16.mxu1 %v1314_v41  ;;  %1225 = vmatpush3.bf16.msra.mxu0 %v1326_v45 }
  0x32   : > { %1254 = vmatpush3.bf16.msra.mxu1 %v1326_v45  ;;  %1226 = vmatprep.subr.bf16.mxu0 %v1327_v51 }
  0x33   : > { %1247 = vmatprep.subr.bf16.mxu1 %v1327_v51 }
  0x35   : > { %1227 = vmatpush3.bf16.msra.mxu0 %v1327_v51 }
  0x36   : > { %1255 = vmatpush3.bf16.msra.mxu1 %v1327_v51  ;;  %1228 = vmatprep.subr.bf16.mxu0 %v1328_v52 }
  0x37   : > { %613 = vmatmul.mubr.bf16.gmra.mrb[8].mxu0 %v1316_v44  ;;  %1248 = vmatprep.subr.bf16.mxu1 %v1328_v52 }
  0x38   : > { %678 = vmatmul.mubr.bf16.gmra.mrb[8].mxu1 %v1317_v46  ;;  %620 = vmatprep.mubr.bf16.mxu0 %v1318_v47 }
  0x39   : > { %685 = vmatprep.mubr.bf16.mxu1 %v1320_v48  ;;  %1229 = vmatpush3.bf16.msra.mxu0 %v1328_v52 }
  0x3a   : > { %1256 = vmatpush3.bf16.msra.mxu1 %v1328_v52  ;;  %1230 = vmatprep.subr.bf16.mxu0 %v1329_v53 }
  0x3b   : > { %1249 = vmatprep.subr.bf16.mxu1 %v1329_v53 }
  0x3d   : > { %1231 = vmatpush3.bf16.msra.mxu0 %v1329_v53 }
  0x3e   : > { %1257 = vmatpush3.bf16.msra.mxu1 %v1329_v53  ;;  %1232 = vmatprep.subr.bf16.mxu0 %v1330_v54 }
  0x3f   : > { %621 = vmatmul.mubr.bf16.gmra.mrb[12].mxu0 %v1322_v49  ;;  %1250 = vmatprep.subr.bf16.mxu1 %v1330_v54 }
  0x40   : > { %686 = vmatmul.mubr.bf16.gmra.mrb[12].mxu1 %v1323_v50 }
  0x41   : > { %1233 = vmatpush3.bf16.msra.mxu0 %v1330_v54 }
  0x42   : > { %1258 = vmatpush3.bf16.msra.mxu1 %v1330_v54  ;;  %1234 = vmatprep.subr.bf16.mxu0 %v1331_v55 }
  0x43   : > { %1251 = vmatprep.subr.bf16.mxu1 %v1331_v55 }
  0x45   : > { %1235 = vmatpush3.bf16.msra.mxu0 %v1331_v55 }
  0x46   : > { %1259 = vmatpush3.bf16.msra.mxu1 %v1331_v55 }
  0xfa   : > { %v1144_v56 = vpop.f32.mrb[0].mxu0 }
  0xfb   : > { %v1184_v57 = vpop.f32.mrb[0].mxu1  ;;  %v1145_v59 = vpop.f32.mrb[1].mxu0 }
  0xfc   : > { %v1146_v60 = vadd.f32 %v1145_v59, %v1144_v56  ;;  %v1185_v61 = vpop.f32.mrb[1].mxu1  ;;  %v1147_v62 = vpop.f32.mrb[2].mxu0 }
  0xfd   : > { %v1186_v63 = vadd.f32 %v1185_v61, %v1184_v57  ;;  %v1187_v0 = vpop.f32.mrb[2].mxu1  ;;  %v1148_v1 = vpop.f32.mrb[3].mxu0 }
  0xfe   : > { %v599_v2 = vadd.f32 %v1146_v60, %v1554_v58  ;;  %v1149_v3 = vadd.f32 %v1148_v1, %v1147_v62  ;;  %v1188_v4 = vpop.f32.mrb[3].mxu1 }
  0xff   : > { %v1189_v5 = vadd.f32 %v1188_v4, %v1187_v0 }
 0x100   : > { %v1557_v6 = vadd.f32 %v1186_v63, %v599_v2  ;;  %v602_v7 = vadd.f32 %v1149_v3, %v1554_v58 }
 0x102   : > { %v1560_v8 = vadd.f32 %v1189_v5, %v602_v7  ;;  %v1150_v9 = vpop.f32.mrb[4].mxu0  ;;  %v694_v12 = vmul.f32 %v1557_v6, %v1557_v6 }
 0x103   : > { %v1190_v10 = vpop.f32.mrb[4].mxu1  ;;  %v1151_v11 = vpop.f32.mrb[5].mxu0 }
 0x104   : > { %v695_v13 = vmul.f32 %v1560_v8, %v1560_v8  ;;  %v1152_v14 = vadd.f32 %v1151_v11, %v1150_v9  ;;  %v1191_v15 = vpop.f32.mrb[5].mxu1  ;;  %v1153_v16 = vpop.f32.mrb[6].mxu0 }
 0x105   : > { %v1192_v17 = vadd.f32 %v1191_v15, %v1190_v10  ;;  %v1193_v18 = vpop.f32.mrb[6].mxu1  ;;  %v1154_v19 = vpop.f32.mrb[7].mxu0 }
 0x106   : > { %v607_v20 = vadd.f32 %v1152_v14, %v1554_v58  ;;  %v1155_v21 = vadd.f32 %v1154_v19, %v1153_v16  ;;  %v1194_v22 = vpop.f32.mrb[7].mxu1  ;;  %v702_v23 = vpack.c.bf16 %v695_v13, %v694_v12 }
 0x107   : > { %v1195_v24 = vadd.f32 %v1194_v22, %v1193_v18 }
 0x108   : > { %v1567_v25 = vadd.f32 %v1192_v17, %v607_v20  ;;  %v610_v26 = vadd.f32 %v1155_v21, %v1554_v58  ;;  %1236 = vmatprep.mubr.bf16.mxu0 %v702_v23 }
 0x10a   : > { %v1570_v27 = vadd.f32 %v1195_v24, %v610_v26  ;;  %v1156_v28 = vpop.f32.mrb[8].mxu0  ;;  %v696_v31 = vmul.f32 %v1567_v25, %v1567_v25 }
 0x10b   : > { %v1196_v29 = vpop.f32.mrb[8].mxu1  ;;  %v1157_v30 = vpop.f32.mrb[9].mxu0 }
 0x10c   : > { %v697_v32 = vmul.f32 %v1570_v27, %v1570_v27  ;;  %v1158_v33 = vadd.f32 %v1157_v30, %v1156_v28  ;;  %v1197_v34 = vpop.f32.mrb[9].mxu1  ;;  %v1159_v35 = vpop.f32.mrb[10].mxu0 }
 0x10d   : > { %v1198_v36 = vadd.f32 %v1197_v34, %v1196_v29  ;;  %v1199_v37 = vpop.f32.mrb[10].mxu1  ;;  %v1160_v38 = vpop.f32.mrb[11].mxu0 }
 0x10e   : > { %v703_v39 = vpack.c.bf16 %v697_v32, %v696_v31  ;;  %v615_v40 = vadd.f32 %v1158_v33, %v1554_v58  ;;  %v1161_v41 = vadd.f32 %v1160_v38, %v1159_v35  ;;  %v1200_v42 = vpop.f32.mrb[11].mxu1 }
 0x10f   : > { %v1201_v43 = vadd.f32 %v1200_v42, %v1199_v37 }
 0x110   : > { %v1577_v44 = vadd.f32 %v1198_v36, %v615_v40  ;;  %v618_v45 = vadd.f32 %v1161_v41, %v1554_v58  ;;  %1237 = vmatmul.mubr.bf16.vlgmr.msra.gmra.mrb[16].mxu0 %v703_v39 }
 0x112   : > { %v1580_v46 = vadd.f32 %v1201_v43, %v618_v45  ;;  %v1162_v47 = vpop.f32.mrb[12].mxu0  ;;  %v698_v50 = vmul.f32 %v1577_v44, %v1577_v44 }
 0x113   : > { %v1202_v48 = vpop.f32.mrb[12].mxu1  ;;  %v1163_v49 = vpop.f32.mrb[13].mxu0 }
 0x114   : > { %v699_v51 = vmul.f32 %v1580_v46, %v1580_v46  ;;  %v1164_v52 = vadd.f32 %v1163_v49, %v1162_v47  ;;  %v1203_v53 = vpop.f32.mrb[13].mxu1  ;;  %v1165_v54 = vpop.f32.mrb[14].mxu0 }
 0x115   : > { %v1204_v55 = vadd.f32 %v1203_v53, %v1202_v48  ;;  %v1205_v56 = vpop.f32.mrb[14].mxu1  ;;  %v1166_v57 = vpop.f32.mrb[15].mxu0 }
 0x116   : > { %v623_v59 = vadd.f32 %v1164_v52, %v1554_v58  ;;  %v1167_v60 = vadd.f32 %v1166_v57, %v1165_v54  ;;  %v1206_v61 = vpop.f32.mrb[15].mxu1  ;;  %v704_v62 = vpack.c.bf16 %v699_v51, %v698_v50 }
 0x117   : > { %v1207_v63 = vadd.f32 %v1206_v61, %v1205_v56 }
 0x118   : > { %v1587_v0 = vadd.f32 %v1204_v55, %v623_v59  ;;  %v626_v1 = vadd.f32 %v1167_v60, %v1554_v58  ;;  %1240 = vmatprep.mubr.bf16.mxu1 %v704_v62 }
 0x11a   : > { %v1590_v2 = vadd.f32 %v1207_v63, %v626_v1  ;;  %v700_v3 = vmul.f32 %v1587_v0, %v1587_v0 }
 0x11c   : > { %v701_v4 = vmul.f32 %v1590_v2, %v1590_v2 }
 0x11e   : > { %v705_v5 = vpack.c.bf16 %v701_v4, %v700_v3 }
 0x120   : > { %1241 = vmatmul.mubr.bf16.vlgmr.msra.gmra.mrb[16].mxu1 %v705_v5 }
 0x1e3   : > { %v1238_v7 = vpop.f32.mrb[16].mxu0 }
 0x1e4   : > { %1332 = vrsqrt.f32 %v1238_v7  ;;  %v804_v9 = vpop.f32.mrb[17].mxu0  ;;  %v901_v12 = vadd.f32 1.0, %v1238_v7  ;;  %vm851_vm0 = vcmp.eq.f32.partialorder %v1238_v7, inf  ;;  %vm853_vm1 = vcmp.eq.f32.partialorder %v1238_v7, 0.0 }
 0x1e5   : > { %1334 = vrsqrt.f32 %v804_v9  ;;  %v1239_v10 = vpop.f32.mrb[18].mxu0  ;;  %v899_v13 = vadd.f32 1.0, %v804_v9  ;;  %v854_v19 = vand.u32 2147483648, %v1238_v7  ;;  %vm837_vm2 = vcmp.eq.f32.partialorder %v804_v9, inf }
 0x1e6   : > { %1336 = vrsqrt.f32 %v1239_v10  ;;  %v807_v11 = vpop.f32.mrb[19].mxu0  ;;  %v902_v58 = vadd.f32 1.0, %v1239_v10  ;;  %v840_v22 = vand.u32 2147483648, %v804_v9  ;;  %vm858_vm3 = vcmp.eq.f32.partialorder %v1239_v10, inf }
 0x1e7   : > { %1338 = vrsqrt.f32 %v807_v11  ;;  %v900_v14 = vadd.f32 1.0, %v807_v11  ;;  %v861_v28 = vand.u32 2147483648, %v1239_v10  ;;  %vm839_vm4 = vcmp.eq.f32.partialorder %v804_v9, 0.0 }
 0x1e8   : > { %1340 = vrcp.f32 %v901_v12  ;;  %vm860_vm5 = vcmp.eq.f32.partialorder %v1239_v10, 0.0  ;;  %vm844_vm6 = vcmp.eq.f32.partialorder %v807_v11, inf  ;;  %vm846_vm7 = vcmp.eq.f32.partialorder %v807_v11, 0.0 }
 0x1e9   : > { %1342 = vrcp.f32 %v902_v58  ;;  %v847_v41 = vand.u32 2147483648, %v807_v11 }
 0x1ea   : > { %1344 = vrcp.f32 %v899_v13 }
 0x1eb   : > { %1346 = vrcp.f32 %v900_v14 }
 0x1ee   : > { %v1333_v15 = vpop.eup %1332 }
 0x1ef   : > { %v1335_v16 = vpop.eup %1334  ;;  %v850_v17 = vmul.f32 %v1333_v15, %v1238_v7 }
 0x1f0   : > { %v1337_v18 = vpop.eup %1336  ;;  %v836_v20 = vmul.f32 %v1335_v16, %v804_v9 }
 0x1f1   : > { %v852_v21 = vsel %vm851_vm0, %v1238_v7, %v850_v17  ;;  %v857_v23 = vmul.f32 %v1337_v18, %v1239_v10  ;;  %v1339_v32 = vpop.eup %1338 }
 0x1f2   : > { %v855_v24 = vsel %vm853_vm1, %v854_v19, %v852_v21  ;;  %v838_v26 = vsel %vm837_vm2, %v804_v9, %v836_v20  ;;  %v1341_v36 = vpop.eup %1340  ;;  %v843_v38 = vmul.f32 %v1339_v32, %v807_v11 }
 0x1f3   : > { %v893_v29 = vmul.f32 %v855_v24, %v1567_v25  ;;  %v859_v30 = vsel %vm858_vm3, %v1239_v10, %v857_v23  ;;  %v1242_v31 = vpop.f32.mrb[16].mxu1  ;;  %v841_v33 = vsel %vm839_vm4, %v840_v22, %v838_v26  ;;  %v1343_v40 = vpop.eup %1342 }
 0x1f4   : > { %v862_v34 = vsel %vm860_vm5, %v861_v28, %v859_v30  ;;  %1348 = vrsqrt.f32 %v1242_v31  ;;  %v820_v35 = vpop.f32.mrb[17].mxu1  ;;  %v891_v43 = vmul.f32 %v841_v33, %v1557_v6  ;;  %v845_v47 = vsel %vm844_vm6, %v807_v11, %v843_v38  ;;  %v1345_v48 = vpop.eup %1344 }
 0x1f5   : > { %v894_v37 = vmul.f32 %v862_v34, %v1570_v27  ;;  %v1243_v39 = vpop.f32.mrb[18].mxu1  ;;  %1350 = vrsqrt.f32 %v820_v35  ;;  %v917_v42 = vmul.f32 %v1341_v36, %v893_v29  ;;  %v848_v27 = vsel %vm846_vm7, %v847_v41, %v845_v47  ;;  %v1347_v51 = vpop.eup %1346 }
 0x1f6   : > { %v823_v25 = vpop.f32.mrb[19].mxu1  ;;  %v892_v50 = vmul.f32 %v848_v27, %v1560_v8  ;;  %1352 = vrsqrt.f32 %v1243_v39  ;;  %v905_v52 = vadd.f32 1.0, %v1242_v31  ;;  %v915_v53 = vmul.f32 %v1345_v48, %v891_v43 }
 0x1f7   : > { %v918_v45 = vmul.f32 %v1343_v40, %v894_v37  ;;  %v906_v54 = vadd.f32 1.0, %v1243_v39  ;;  %1354 = vrsqrt.f32 %v823_v25  ;;  %v903_v55 = vadd.f32 1.0, %v820_v35 }
 0x1f8   : > { %v916_v6 = vmul.f32 %v1347_v51, %v892_v50  ;;  %v904_v57 = vadd.f32 1.0, %v823_v25  ;;  %1356 = vrcp.f32 %v905_v52  ;;  %vm879_vm8 = vcmp.eq.f32.partialorder %v1242_v31, inf }
 0x1f9   : > { %v1113_v49 = vpack.c.bf16 %v918_v45, %v917_v42  ;;  %1358 = vrcp.f32 %v906_v54  ;;  %v882_v62 = vand.u32 2147483648, %v1242_v31  ;;  %vm881_vm9 = vcmp.eq.f32.partialorder %v1242_v31, 0.0 }
 0x1fa   : > { %v1108_v56 = vpack.c.bf16 %v916_v6, %v915_v53  ;;  %1360 = vrcp.f32 %v903_v55  ;;  %vm865_vm10 = vcmp.eq.f32.partialorder %v820_v35, inf  ;;  %v868_v5 = vand.u32 2147483648, %v820_v35 }
 0x1fb   : > { %1125 = vst [vmem:[%s1603_s8 + $0x8] sm:$0xff] %v1113_v49   ;;  %1362 = vrcp.f32 %v904_v57  ;;  %vm867_vm11 = vcmp.eq.f32.partialorder %v820_v35, 0.0  ;;  %vm886_vm12 = vcmp.eq.f32.partialorder %v1243_v39, inf  ;;  %v889_v11 = vand.u32 2147483648, %v1243_v39 }
 0x1fc   : > { %1109 = vst [vmem:[%s1603_s8] sm:$0xff] %v1108_v56   ;;  %vm888_vm13 = vcmp.eq.f32.partialorder %v1243_v39, 0.0  ;;  %vm872_vm14 = vcmp.eq.f32.partialorder %v823_v25, inf  ;;  %v875_v15 = vand.u32 2147483648, %v823_v25  ;;  %vm874_vm15 = vcmp.eq.f32.partialorder %v823_v25, 0.0 }
 0x1fe   : > { %v1349_v59 = vpop.eup %1348 }
 0x1ff   : > { %v878_v60 = vmul.f32 %v1349_v59, %v1242_v31  ;;  %v1351_v61 = vpop.eup %1350 }
 0x200   : > { %v864_v63 = vmul.f32 %v1351_v61, %v820_v35  ;;  %v1353_v1 = vpop.eup %1352 }
 0x201   : > { %v880_v8 = vsel %vm879_vm8, %v1242_v31, %v878_v60  ;;  %v885_v7 = vmul.f32 %v1353_v1, %v1243_v39  ;;  %v1355_v9 = vpop.eup %1354 }
 0x202   : > { %v883_v3 = vsel %vm881_vm9, %v882_v62, %v880_v8  ;;  %v866_v4 = vsel %vm865_vm10, %v820_v35, %v864_v63  ;;  %v871_v13 = vmul.f32 %v1355_v9, %v823_v25  ;;  %v1357_v16 = vpop.eup %1356 }
 0x203   : > { %v869_v10 = vsel %vm867_vm11, %v868_v5, %v866_v4  ;;  %v897_v12 = vmul.f32 %v883_v3, %v1587_v0  ;;  %v887_v58 = vsel %vm886_vm12, %v1243_v39, %v885_v7  ;;  %v1359_v20 = vpop.eup %1358 }
 0x204   : > { %v890_v14 = vsel %vm888_vm13, %v889_v11, %v887_v58  ;;  %v895_v17 = vmul.f32 %v869_v10, %v1577_v44  ;;  %v873_v19 = vsel %vm872_vm14, %v823_v25, %v871_v13  ;;  %v1361_v22 = vpop.eup %1360 }
 0x205   : > { %v898_v18 = vmul.f32 %v890_v14, %v1590_v2  ;;  %v876_v21 = vsel %vm874_vm15, %v875_v15, %v873_v19  ;;  %v921_v23 = vmul.f32 %v1357_v16, %v897_v12  ;;  %v1363_v26 = vpop.eup %1362 }
 0x206   : > { %v896_v24 = vmul.f32 %v876_v21, %v1580_v46  ;;  %v919_v28 = vmul.f32 %v1361_v22, %v895_v17 }
 0x207   : > { %v922_v0 = vmul.f32 %v1359_v20, %v898_v18 }
 0x208   : > { %v920_v30 = vmul.f32 %v1363_v26, %v896_v24 }
 0x209   : > { %v1123_v29 = vpack.c.bf16 %v922_v0, %v921_v23 }
 0x20a   : > { %v1118_v31 = vpack.c.bf16 %v920_v30, %v919_v28 }
 0x20b   : > { %1127 = vst [vmem:[%s1603_s8 + $0x18] sm:$0xff] %v1123_v29  }
 0x20c   : > { %1126 = vst [vmem:[%s1603_s8 + $0x10] sm:$0xff] %v1118_v31  }
 0x20d PF: > { %s14_s15 = sadd.s32 1, %s1370_s15  }
 0x20e   : > { %p11_p4 = scmp.ge.s32.totalorder %s14_s15, 4  }
 0x210   :  { %13 = sbr.rel (!%p11_p4) target bundleno = 1 (0x1), region = 66 }

</bundles_post_ra>
